<compile_context>
chip_gen: v6e
topology: v6e:2x2x1
jax: 0.10.0
libtpu: 0.0.40
codegen_flags: <defaults>
</compile_context>

<pallas_src>
import math

import numpy as np
import jax
import jax.numpy as jnp
from jax import lax
from jax.experimental import pallas as pl
from jax.experimental.pallas import tpu as pltpu


# ----------------------------- architecture ---------------------------------
C_IN, H_IN, W_IN = 3, 32, 32
C1, KH = 6, 5            # conv1: 3 -> 6, 5x5, valid
C2 = 16                  # conv2: 6 -> 16, 5x5, valid
PH1, PW1 = 14, 14        # pool1 output spatial
PH2, PW2 = 5, 5          # pool2 output spatial
F1, F2, F3 = 120, 84, 10
LANES = 128
N2 = 2 * LANES           # conv matmul N: even-x outputs | odd-x outputs


# ------------------------------- fused kernel -------------------------------
def _lenet_kernel(x_ref, w1_ref, b1_ref, w2_ref, b2_ref,
                  wf1_ref, bf1_ref, wf2_ref, bf2_ref, wf3_ref, bf3_ref,
                  out_ref, p1_ref, p2_ref):
    f32 = jnp.float32

    # ---------------- conv1 + ReLU + 2x2 maxpool -----------------------------
    # x_ref: (32, 128), lane = x*3 + c_in (lanes >=96 are zero padding).
    # Row parity p selects even/odd conv OUTPUT rows (LHS rows di+p, stride 2);
    # even/odd conv output COLUMNS live in the two lane-halves of W1's N dim.
    acc0 = acc1 = None
    for di in range(KH):
        w = w1_ref[di]                                              # (128, 256)
        t0 = jnp.dot(x_ref[pl.ds(di, PH1, 2), :], w,
                     preferred_element_type=f32)                    # even rows
        t1 = jnp.dot(x_ref[pl.ds(di + 1, PH1, 2), :], w,
                     preferred_element_type=f32)                    # odd rows
        acc0 = t0 if acc0 is None else acc0 + t0
        acc1 = t1 if acc1 is None else acc1 + t1
    m = jnp.maximum(acc0, acc1)                        # y-pair max   (14, 256)
    xm = jnp.maximum(m[:, :LANES], m[:, LANES:])       # x-pair max   (14, 128)
    p1_ref[...] = jnp.maximum(xm + b1_ref[...], 0.0)   # bias + ReLU  (14, 128)
    # p1 lane layout: px*6 + c1  (lanes >= 84 are exactly 0)

    # ---------------- conv2 + ReLU + 2x2 maxpool -----------------------------
    acc0 = acc1 = None
    for di in range(KH):
        w = w2_ref[di]                                              # (128, 256)
        t0 = jnp.dot(p1_ref[pl.ds(di, PH2, 2), :], w,
                     preferred_element_type=f32)
        t1 = jnp.dot(p1_ref[pl.ds(di + 1, PH2, 2), :], w,
                     preferred_element_type=f32)
        acc0 = t0 if acc0 is None else acc0 + t0
        acc1 = t1 if acc1 is None else acc1 + t1
    m = jnp.maximum(acc0, acc1)                        # (5, 256)
    xm = jnp.maximum(m[:, :LANES], m[:, LANES:])       # (5, 128)
    p2_ref[...] = jnp.maximum(xm + b2_ref[...], 0.0)   # (5, 128)
    # p2 lane layout: qx*16 + c2  (lanes >= 80 are exactly 0)

    # ---------------- fc1 (accumulated per pooled row) / fc2 / fc3 -----------
    acc = None
    for qy in range(PH2):
        t = jnp.dot(p2_ref[pl.ds(qy, 1), :], wf1_ref[qy],
                    preferred_element_type=f32)                     # (1, 128)
        acc = t if acc is None else acc + t
    h = jnp.maximum(acc + bf1_ref[...], 0.0)
    h = jnp.maximum(jnp.dot(h, wf2_ref[...], preferred_element_type=f32)
                    + bf2_ref[...], 0.0)
    out_ref[...] = (jnp.dot(h, wf3_ref[...], preferred_element_type=f32)
                    + bf3_ref[...])                                  # (1, 128)


# ------------------------- host-side weight prep ----------------------------
def prepare_params(params):
    """Build structured, zero-padded weight matrices ONCE, outside jit."""
    w1 = np.asarray(params["conv1_w"], np.float32)   # (6, 3, 5, 5)  (co,ci,di,dj)
    b1 = np.asarray(params["conv1_b"], np.float32)
    w2 = np.asarray(params["conv2_w"], np.float32)   # (16, 6, 5, 5)
    b2 = np.asarray(params["conv2_b"], np.float32)
    fw1 = np.asarray(params["fc1_w"], np.float32)    # (120, 400)
    fb1 = np.asarray(params["fc1_b"], np.float32)
    fw2 = np.asarray(params["fc2_w"], np.float32)    # (84, 120)
    fb2 = np.asarray(params["fc2_b"], np.float32)
    fw3 = np.asarray(params["fc3_w"], np.float32)    # (10, 84)
    fb3 = np.asarray(params["fc3_b"], np.float32)

    # conv1: W1[di][xin*3+ci, half*128 + px*6 + co] = w1[co, ci, di, xin-xo]
    #        with xo = 2*px + half  (half 0 = even conv column, 1 = odd).
    W1 = np.zeros((KH, LANES, N2), np.float32)
    for di in range(KH):
        for half in range(2):
            for px in range(PW1):
                xo = 2 * px + half
                for dj in range(KH):
                    xin = xo + dj
                    W1[di, xin * C_IN:(xin + 1) * C_IN,
                       half * LANES + px * C1: half * LANES + px * C1 + C1] = \
                        w1[:, :, di, dj].T
    B1 = np.zeros((1, LANES), np.float32)
    for px in range(PW1):
        B1[0, px * C1:(px + 1) * C1] = b1

    # conv2: same structure over the pooled-1 lane layout (px*6 + ci).
    W2 = np.zeros((KH, LANES, N2), np.float32)
    for di in range(KH):
        for half in range(2):
            for qx in range(PW2):
                xo = 2 * qx + half
                for dj in range(KH):
                    pxi = xo + dj
                    W2[di, pxi * C1:(pxi + 1) * C1,
                       half * LANES + qx * C2: half * LANES + qx * C2 + C2] = \
                        w2[:, :, di, dj].T
    B2 = np.zeros((1, LANES), np.float32)
    for qx in range(PW2):
        B2[0, qx * C2:(qx + 1) * C2] = b2

    # fc1: per pooled row qy, rows = (qx*16 + co), torch feature = co*25+qy*5+qx.
    WF1 = np.zeros((PH2, LANES, LANES), np.float32)
    for qy in range(PH2):
        for qx in range(PW2):
            cols = np.arange(C2) * (PH2 * PW2) + qy * PW2 + qx
            WF1[qy, qx * C2:(qx + 1) * C2, :F1] = fw1[:, cols].T
    BF1 = np.zeros((1, LANES), np.float32); BF1[0, :F1] = fb1

    WF2 = np.zeros((LANES, LANES), np.float32); WF2[:F1, :F2] = fw2.T
    BF2 = np.zeros((1, LANES), np.float32); BF2[0, :F2] = fb2
    WF3 = np.zeros((LANES, LANES), np.float32); WF3[:F2, :F3] = fw3.T
    BF3 = np.zeros((1, LANES), np.float32); BF3[0, :F3] = fb3

    # TODO(synk): on v6e/v7x, cast W1/W2/WF1 (and the in-kernel LHS) to bf16 to
    # halve weight DMA / MXU passes; kept f32 here for exact f32 parity.
    return {k: jnp.asarray(v) for k, v in dict(
        w1=W1, b1=B1, w2=W2, b2=B2, wf1=WF1, bf1=BF1,
        wf2=WF2, bf2=BF2, wf3=WF3, bf3=BF3).items()}


# ------------------------------- forward ------------------------------------
@jax.jit
def net_forward(x, prepped):
    B = x.shape[0]
    # Lane-dense input: (B, H, W*C = 96) padded to 128 lanes.
    xw = jnp.transpose(x, (0, 2, 3, 1)).reshape(B, H_IN, W_IN * C_IN)
    xw = jnp.pad(xw, ((0, 0), (0, 0), (0, LANES - W_IN * C_IN)))

    flops_per_img = (2 * KH * 2 * PH1 * LANES * N2      # conv1
                     + 2 * KH * 2 * PH2 * LANES * N2    # conv2
                     + PH2 * 2 * LANES * LANES          # fc1
                     + 2 * 2 * LANES * LANES)           # fc2 + fc3
    w_bytes = sum(int(np.prod(v.shape)) * 4 for v in prepped.values())
    bytes_accessed = w_bytes + B * H_IN * LANES * 4 + B * LANES * 4

    const3 = lambda b: (0, 0, 0)
    const2 = lambda b: (0, 0)

    out = pl.pallas_call(
        _lenet_kernel,
        out_shape=jax.ShapeDtypeStruct((B, 1, LANES), jnp.float32),
        grid=(B,),
        in_specs=[
            pl.BlockSpec((None, H_IN, LANES), lambda b: (b, 0, 0)),   # x
            pl.BlockSpec((KH, LANES, N2), const3),                    # w1
            pl.BlockSpec((1, LANES), const2),                         # b1
            pl.BlockSpec((KH, LANES, N2), const3),                    # w2
            pl.BlockSpec((1, LANES), const2),                         # b2
            pl.BlockSpec((PH2, LANES, LANES), const3),                # wf1
            pl.BlockSpec((1, LANES), const2),                         # bf1
            pl.BlockSpec((LANES, LANES), const2),                     # wf2
            pl.BlockSpec((1, LANES), const2),                         # bf2
            pl.BlockSpec((LANES, LANES), const2),                     # wf3
            pl.BlockSpec((1, LANES), const2),                         # bf3
        ],
        out_specs=pl.BlockSpec((None, 1, LANES), lambda b: (b, 0, 0)),
        scratch_shapes=[
            pltpu.VMEM((PH1, LANES), jnp.float32),   # pool1 output
            pltpu.VMEM((PH2, LANES), jnp.float32),   # pool2 output
        ],
        compiler_params=pltpu.CompilerParams(
            dimension_semantics=("parallel",),
            vmem_limit_bytes=32 * 1024 * 1024),
        cost_estimate=pl.CostEstimate(flops=B * flops_per_img,
                                      transcendentals=0,
                                      bytes_accessed=bytes_accessed),
    )(xw, prepped["w1"], prepped["b1"], prepped["w2"], prepped["b2"],
      prepped["wf1"], prepped["bf1"], prepped["wf2"], prepped["bf2"],
      prepped["wf3"], prepped["bf3"])
    return out[:, 0, :F3]


# ------------------------------ reference (jnp) ------------------------------
def ref_forward(x, params):
    dn = ("NCHW", "OIHW", "NCHW")

    def conv(x, w, b):
        y = lax.conv_general_dilated(x, w, (1, 1), "VALID", dimension_numbers=dn)
        return y + b[None, :, None, None]

    def pool(x):
        B, C, H, W = x.shape
        return x.reshape(B, C, H // 2, 2, W // 2, 2).max(axis=(3, 5))

    x = pool(jnp.maximum(conv(x, params["conv1_w"], params["conv1_b"]), 0))
    x = pool(jnp.maximum(conv(x, params["conv2_w"], params["conv2_b"]), 0))
    x = x.reshape(x.shape[0], -1)
    x = jnp.maximum(x @ params["fc1_w"].T + params["fc1_b"], 0)
    x = jnp.maximum(x @ params["fc2_w"].T + params["fc2_b"], 0)
    return x @ params["fc3_w"].T + params["fc3_b"]


# ------------------------------ params init ---------------------------------
def init_params(key):
    def uniform(k, shape, fan_in):
        bound = 1.0 / math.sqrt(fan_in)
        return jax.random.uniform(k, shape, jnp.float32, -bound, bound)

    ks = jax.random.split(key, 10)
    return {
        "conv1_w": uniform(ks[0], (6, 3, 5, 5), 3 * 5 * 5),
        "conv1_b": uniform(ks[1], (6,), 3 * 5 * 5),
        "conv2_w": uniform(ks[2], (16, 6, 5, 5), 6 * 5 * 5),
        "conv2_b": uniform(ks[3], (16,), 6 * 5 * 5),
        "fc1_w": uniform(ks[4], (120, 400), 400),
        "fc1_b": uniform(ks[5], (120,), 400),
        "fc2_w": uniform(ks[6], (84, 120), 120),
        "fc2_b": uniform(ks[7], (84,), 120),
        "fc3_w": uniform(ks[8], (10, 84), 84),
        "fc3_b": uniform(ks[9], (10,), 84),
    }


if __name__ == "__main__":
    key = jax.random.PRNGKey(0)
    k_param, k_x = jax.random.split(key)
    params = init_params(k_param)
    # fc1 expects 16*5*5 features -> 3x32x32 input images.
    x = jax.random.normal(k_x, (2, 3, 32, 32), dtype=jnp.float32)

    prepped = prepare_params(params)          # once, outside jit
    out = jax.block_until_ready(net_forward(x, prepped))
    assert out.shape == (2, 10), out.shape

    ref = jax.block_until_ready(ref_forward(x, params))
    assert jnp.allclose(out, ref, atol=1e-2, rtol=1e-2), (
        "mismatch vs reference; max abs err = "
        + str(float(jnp.max(jnp.abs(out - ref)))))

    print("KERNEL_OK")
</pallas_src>

<mosaic_0001>
module attributes {stable_mosaic.version = 11 : i64} {
  func.func @_lenet_kernel(%arg0: i32, %arg1: memref<1x32x128xf32, #tpu.memory_space<vmem>>, %arg2: memref<5x128x256xf32, #tpu.memory_space<vmem>>, %arg3: memref<1x128xf32, #tpu.memory_space<vmem>>, %arg4: memref<5x128x256xf32, #tpu.memory_space<vmem>>, %arg5: memref<1x128xf32, #tpu.memory_space<vmem>>, %arg6: memref<5x128x128xf32, #tpu.memory_space<vmem>>, %arg7: memref<1x128xf32, #tpu.memory_space<vmem>>, %arg8: memref<128x128xf32, #tpu.memory_space<vmem>>, %arg9: memref<1x128xf32, #tpu.memory_space<vmem>>, %arg10: memref<128x128xf32, #tpu.memory_space<vmem>>, %arg11: memref<1x128xf32, #tpu.memory_space<vmem>>, %arg12: memref<1x1x128xf32, #tpu.memory_space<vmem>>, %arg13: memref<14x128xf32, #tpu.memory_space<vmem>>, %arg14: memref<5x128xf32, #tpu.memory_space<vmem>>) attributes {dimension_semantics = [#tpu.dimension_semantics<parallel>], iteration_bounds = array<i64: 2>, scalar_prefetch = 0 : i64, scratch_operands = 2 : i64, tpu.core_type = #tpu.core_type<tc>, window_params = [{transform_indices = @transform_0, window_bounds = array<i64: 1, 32, 128>}, {pipeline_mode = #tpu.pipeline_mode<synchronous>, transform_indices = @transform_1, window_bounds = array<i64: 5, 128, 256>}, {pipeline_mode = #tpu.pipeline_mode<synchronous>, transform_indices = @transform_2, window_bounds = array<i64: 1, 128>}, {pipeline_mode = #tpu.pipeline_mode<synchronous>, transform_indices = @transform_3, window_bounds = array<i64: 5, 128, 256>}, {pipeline_mode = #tpu.pipeline_mode<synchronous>, transform_indices = @transform_4, window_bounds = array<i64: 1, 128>}, {pipeline_mode = #tpu.pipeline_mode<synchronous>, transform_indices = @transform_5, window_bounds = array<i64: 5, 128, 128>}, {pipeline_mode = #tpu.pipeline_mode<synchronous>, transform_indices = @transform_6, window_bounds = array<i64: 1, 128>}, {pipeline_mode = #tpu.pipeline_mode<synchronous>, transform_indices = @transform_7, window_bounds = array<i64: 128, 128>}, {pipeline_mode = #tpu.pipeline_mode<synchronous>, transform_indices = @transform_8, window_bounds = array<i64: 1, 128>}, {pipeline_mode = #tpu.pipeline_mode<synchronous>, transform_indices = @transform_9, window_bounds = array<i64: 128, 128>}, {pipeline_mode = #tpu.pipeline_mode<synchronous>, transform_indices = @transform_10, window_bounds = array<i64: 1, 128>}, {transform_indices = @transform_11, window_bounds = array<i64: 1, 1, 128>}]} {
    %c0 = arith.constant 0 : index
    %c0_0 = arith.constant 0 : index
    %c0_1 = arith.constant 0 : index
    %0 = vector.load %arg2[%c0, %c0_0, %c0_1] : memref<5x128x256xf32, #tpu.memory_space<vmem>>, vector<1x128x256xf32>
    %1 = vector.shape_cast %0 : vector<1x128x256xf32> to vector<128x256xf32>
    %c0_2 = arith.constant 0 : index
    %c0_3 = arith.constant 0 : index
    %c0_4 = arith.constant 0 : index
    %2 = tpu.strided_load %arg1[%c0_2, %c0_3, %c0_4] {strides = array<i32: 1, 2, 1>} : memref<1x32x128xf32, #tpu.memory_space<vmem>>, vector<1x14x128xf32>
    %3 = vector.shape_cast %2 : vector<1x14x128xf32> to vector<14x128xf32>
    %cst = arith.constant dense<0.000000e+00> : vector<14x256xf32>
    %4 = tpu.matmul %3, %1, %cst {dimension_numbers = #tpu.dot_dimension_numbers<[1], [0], [0], [1], [0, 0, 1, 1], [], []>} : vector<14x128xf32>, vector<128x256xf32>, vector<14x256xf32> -> vector<14x256xf32>
    %c0_5 = arith.constant 0 : index
    %c1 = arith.constant 1 : index
    %c0_6 = arith.constant 0 : index
    %5 = tpu.strided_load %arg1[%c0_5, %c1, %c0_6] {strides = array<i32: 1, 2, 1>} : memref<1x32x128xf32, #tpu.memory_space<vmem>>, vector<1x14x128xf32>
    %6 = vector.shape_cast %5 : vector<1x14x128xf32> to vector<14x128xf32>
    %cst_7 = arith.constant dense<0.000000e+00> : vector<14x256xf32>
    %7 = tpu.matmul %6, %1, %cst_7 {dimension_numbers = #tpu.dot_dimension_numbers<[1], [0], [0], [1], [0, 0, 1, 1], [], []>} : vector<14x128xf32>, vector<128x256xf32>, vector<14x256xf32> -> vector<14x256xf32>
    %c1_8 = arith.constant 1 : index
    %c0_9 = arith.constant 0 : index
    %c0_10 = arith.constant 0 : index
    %8 = vector.load %arg2[%c1_8, %c0_9, %c0_10] : memref<5x128x256xf32, #tpu.memory_space<vmem>>, vector<1x128x256xf32>
    %9 = vector.shape_cast %8 : vector<1x128x256xf32> to vector<128x256xf32>
    %c0_11 = arith.constant 0 : index
    %c1_12 = arith.constant 1 : index
    %c0_13 = arith.constant 0 : index
    %10 = tpu.strided_load %arg1[%c0_11, %c1_12, %c0_13] {strides = array<i32: 1, 2, 1>} : memref<1x32x128xf32, #tpu.memory_space<vmem>>, vector<1x14x128xf32>
    %11 = vector.shape_cast %10 : vector<1x14x128xf32> to vector<14x128xf32>
    %cst_14 = arith.constant dense<0.000000e+00> : vector<14x256xf32>
    %12 = tpu.matmul %11, %9, %cst_14 {dimension_numbers = #tpu.dot_dimension_numbers<[1], [0], [0], [1], [0, 0, 1, 1], [], []>} : vector<14x128xf32>, vector<128x256xf32>, vector<14x256xf32> -> vector<14x256xf32>
    %c0_15 = arith.constant 0 : index
    %c2 = arith.constant 2 : index
    %c0_16 = arith.constant 0 : index
    %13 = tpu.strided_load %arg1[%c0_15, %c2, %c0_16] {strides = array<i32: 1, 2, 1>} : memref<1x32x128xf32, #tpu.memory_space<vmem>>, vector<1x14x128xf32>
    %14 = vector.shape_cast %13 : vector<1x14x128xf32> to vector<14x128xf32>
    %cst_17 = arith.constant dense<0.000000e+00> : vector<14x256xf32>
    %15 = tpu.matmul %14, %9, %cst_17 {dimension_numbers = #tpu.dot_dimension_numbers<[1], [0], [0], [1], [0, 0, 1, 1], [], []>} : vector<14x128xf32>, vector<128x256xf32>, vector<14x256xf32> -> vector<14x256xf32>
    %16 = arith.addf %4, %12 : vector<14x256xf32>
    %17 = arith.addf %7, %15 : vector<14x256xf32>
    %c2_18 = arith.constant 2 : index
    %c0_19 = arith.constant 0 : index
    %c0_20 = arith.constant 0 : index
    %18 = vector.load %arg2[%c2_18, %c0_19, %c0_20] : memref<5x128x256xf32, #tpu.memory_space<vmem>>, vector<1x128x256xf32>
    %19 = vector.shape_cast %18 : vector<1x128x256xf32> to vector<128x256xf32>
    %c0_21 = arith.constant 0 : index
    %c2_22 = arith.constant 2 : index
    %c0_23 = arith.constant 0 : index
    %20 = tpu.strided_load %arg1[%c0_21, %c2_22, %c0_23] {strides = array<i32: 1, 2, 1>} : memref<1x32x128xf32, #tpu.memory_space<vmem>>, vector<1x14x128xf32>
    %21 = vector.shape_cast %20 : vector<1x14x128xf32> to vector<14x128xf32>
    %cst_24 = arith.constant dense<0.000000e+00> : vector<14x256xf32>
    %22 = tpu.matmul %21, %19, %cst_24 {dimension_numbers = #tpu.dot_dimension_numbers<[1], [0], [0], [1], [0, 0, 1, 1], [], []>} : vector<14x128xf32>, vector<128x256xf32>, vector<14x256xf32> -> vector<14x256xf32>
    %c0_25 = arith.constant 0 : index
    %c3 = arith.constant 3 : index
    %c0_26 = arith.constant 0 : index
    %23 = tpu.strided_load %arg1[%c0_25, %c3, %c0_26] {strides = array<i32: 1, 2, 1>} : memref<1x32x128xf32, #tpu.memory_space<vmem>>, vector<1x14x128xf32>
    %24 = vector.shape_cast %23 : vector<1x14x128xf32> to vector<14x128xf32>
    %cst_27 = arith.constant dense<0.000000e+00> : vector<14x256xf32>
    %25 = tpu.matmul %24, %19, %cst_27 {dimension_numbers = #tpu.dot_dimension_numbers<[1], [0], [0], [1], [0, 0, 1, 1], [], []>} : vector<14x128xf32>, vector<128x256xf32>, vector<14x256xf32> -> vector<14x256xf32>
    %26 = arith.addf %16, %22 : vector<14x256xf32>
    %27 = arith.addf %17, %25 : vector<14x256xf32>
    %c3_28 = arith.constant 3 : index
    %c0_29 = arith.constant 0 : index
    %c0_30 = arith.constant 0 : index
    %28 = vector.load %arg2[%c3_28, %c0_29, %c0_30] : memref<5x128x256xf32, #tpu.memory_space<vmem>>, vector<1x128x256xf32>
    %29 = vector.shape_cast %28 : vector<1x128x256xf32> to vector<128x256xf32>
    %c0_31 = arith.constant 0 : index
    %c3_32 = arith.constant 3 : index
    %c0_33 = arith.constant 0 : index
    %30 = tpu.strided_load %arg1[%c0_31, %c3_32, %c0_33] {strides = array<i32: 1, 2, 1>} : memref<1x32x128xf32, #tpu.memory_space<vmem>>, vector<1x14x128xf32>
    %31 = vector.shape_cast %30 : vector<1x14x128xf32> to vector<14x128xf32>
    %cst_34 = arith.constant dense<0.000000e+00> : vector<14x256xf32>
    %32 = tpu.matmul %31, %29, %cst_34 {dimension_numbers = #tpu.dot_dimension_numbers<[1], [0], [0], [1], [0, 0, 1, 1], [], []>} : vector<14x128xf32>, vector<128x256xf32>, vector<14x256xf32> -> vector<14x256xf32>
    %c0_35 = arith.constant 0 : index
    %c4 = arith.constant 4 : index
    %c0_36 = arith.constant 0 : index
    %33 = tpu.strided_load %arg1[%c0_35, %c4, %c0_36] {strides = array<i32: 1, 2, 1>} : memref<1x32x128xf32, #tpu.memory_space<vmem>>, vector<1x14x128xf32>
    %34 = vector.shape_cast %33 : vector<1x14x128xf32> to vector<14x128xf32>
    %cst_37 = arith.constant dense<0.000000e+00> : vector<14x256xf32>
    %35 = tpu.matmul %34, %29, %cst_37 {dimension_numbers = #tpu.dot_dimension_numbers<[1], [0], [0], [1], [0, 0, 1, 1], [], []>} : vector<14x128xf32>, vector<128x256xf32>, vector<14x256xf32> -> vector<14x256xf32>
    %36 = arith.addf %26, %32 : vector<14x256xf32>
    %37 = arith.addf %27, %35 : vector<14x256xf32>
    %c4_38 = arith.constant 4 : index
    %c0_39 = arith.constant 0 : index
    %c0_40 = arith.constant 0 : index
    %38 = vector.load %arg2[%c4_38, %c0_39, %c0_40] : memref<5x128x256xf32, #tpu.memory_space<vmem>>, vector<1x128x256xf32>
    %39 = vector.shape_cast %38 : vector<1x128x256xf32> to vector<128x256xf32>
    %c0_41 = arith.constant 0 : index
    %c4_42 = arith.constant 4 : index
    %c0_43 = arith.constant 0 : index
    %40 = tpu.strided_load %arg1[%c0_41, %c4_42, %c0_43] {strides = array<i32: 1, 2, 1>} : memref<1x32x128xf32, #tpu.memory_space<vmem>>, vector<1x14x128xf32>
    %41 = vector.shape_cast %40 : vector<1x14x128xf32> to vector<14x128xf32>
    %cst_44 = arith.constant dense<0.000000e+00> : vector<14x256xf32>
    %42 = tpu.matmul %41, %39, %cst_44 {dimension_numbers = #tpu.dot_dimension_numbers<[1], [0], [0], [1], [0, 0, 1, 1], [], []>} : vector<14x128xf32>, vector<128x256xf32>, vector<14x256xf32> -> vector<14x256xf32>
    %c0_45 = arith.constant 0 : index
    %c5 = arith.constant 5 : index
    %c0_46 = arith.constant 0 : index
    %43 = tpu.strided_load %arg1[%c0_45, %c5, %c0_46] {strides = array<i32: 1, 2, 1>} : memref<1x32x128xf32, #tpu.memory_space<vmem>>, vector<1x14x128xf32>
    %44 = vector.shape_cast %43 : vector<1x14x128xf32> to vector<14x128xf32>
    %cst_47 = arith.constant dense<0.000000e+00> : vector<14x256xf32>
    %45 = tpu.matmul %44, %39, %cst_47 {dimension_numbers = #tpu.dot_dimension_numbers<[1], [0], [0], [1], [0, 0, 1, 1], [], []>} : vector<14x128xf32>, vector<128x256xf32>, vector<14x256xf32> -> vector<14x256xf32>
    %46 = arith.addf %36, %42 : vector<14x256xf32>
    %47 = arith.addf %37, %45 : vector<14x256xf32>
    %48 = arith.maximumf %46, %47 : vector<14x256xf32>
    %49 = vector.extract_strided_slice %48 {offsets = [0, 0], sizes = [14, 128], strides = [1, 1]} : vector<14x256xf32> to vector<14x128xf32>
    %50 = vector.extract_strided_slice %48 {offsets = [0, 128], sizes = [14, 128], strides = [1, 1]} : vector<14x256xf32> to vector<14x128xf32>
    %51 = arith.maximumf %49, %50 : vector<14x128xf32>
    %c0_48 = arith.constant 0 : index
    %c0_49 = arith.constant 0 : index
    %52 = vector.load %arg3[%c0_48, %c0_49] : memref<1x128xf32, #tpu.memory_space<vmem>>, vector<1x128xf32>
    %53 = vector.broadcast %52 : vector<1x128xf32> to vector<14x128xf32>
    %54 = arith.addf %51, %53 : vector<14x128xf32>
    %cst_50 = arith.constant 0.000000e+00 : f32
    %55 = vector.broadcast %cst_50 : f32 to vector<14x128xf32>
    %56 = arith.maximumf %54, %55 : vector<14x128xf32>
    %c0_51 = arith.constant 0 : index
    %c0_52 = arith.constant 0 : index
    %57 = vector.load %arg13[%c0_51, %c0_52] : memref<14x128xf32, #tpu.memory_space<vmem>>, vector<14x128xf32>
    tpu.vector_store %arg13[%c0_51, %c0_52], %56 {strides = array<i32>} : memref<14x128xf32, #tpu.memory_space<vmem>>, vector<14x128xf32>,
    %c0_53 = arith.constant 0 : index
    %c0_54 = arith.constant 0 : index
    %c0_55 = arith.constant 0 : index
    %58 = vector.load %arg4[%c0_53, %c0_54, %c0_55] : memref<5x128x256xf32, #tpu.memory_space<vmem>>, vector<1x128x256xf32>
    %59 = vector.shape_cast %58 : vector<1x128x256xf32> to vector<128x256xf32>
    %c0_56 = arith.constant 0 : index
    %c0_57 = arith.constant 0 : index
    %60 = tpu.strided_load %arg13[%c0_56, %c0_57] {strides = array<i32: 2, 1>} : memref<14x128xf32, #tpu.memory_space<vmem>>, vector<5x128xf32>
    %cst_58 = arith.constant dense<0.000000e+00> : vector<5x256xf32>
    %61 = tpu.matmul %60, %59, %cst_58 {dimension_numbers = #tpu.dot_dimension_numbers<[1], [0], [0], [1], [0, 0, 1, 1], [], []>} : vector<5x128xf32>, vector<128x256xf32>, vector<5x256xf32> -> vector<5x256xf32>
    %c1_59 = arith.constant 1 : index
    %c0_60 = arith.constant 0 : index
    %62 = tpu.strided_load %arg13[%c1_59, %c0_60] {strides = array<i32: 2, 1>} : memref<14x128xf32, #tpu.memory_space<vmem>>, vector<5x128xf32>
    %cst_61 = arith.constant dense<0.000000e+00> : vector<5x256xf32>
    %63 = tpu.matmul %62, %59, %cst_61 {dimension_numbers = #tpu.dot_dimension_numbers<[1], [0], [0], [1], [0, 0, 1, 1], [], []>} : vector<5x128xf32>, vector<128x256xf32>, vector<5x256xf32> -> vector<5x256xf32>
    %c1_62 = arith.constant 1 : index
    %c0_63 = arith.constant 0 : index
    %c0_64 = arith.constant 0 : index
    %64 = vector.load %arg4[%c1_62, %c0_63, %c0_64] : memref<5x128x256xf32, #tpu.memory_space<vmem>>, vector<1x128x256xf32>
    %65 = vector.shape_cast %64 : vector<1x128x256xf32> to vector<128x256xf32>
    %c1_65 = arith.constant 1 : index
    %c0_66 = arith.constant 0 : index
    %66 = tpu.strided_load %arg13[%c1_65, %c0_66] {strides = array<i32: 2, 1>} : memref<14x128xf32, #tpu.memory_space<vmem>>, vector<5x128xf32>
    %cst_67 = arith.constant dense<0.000000e+00> : vector<5x256xf32>
    %67 = tpu.matmul %66, %65, %cst_67 {dimension_numbers = #tpu.dot_dimension_numbers<[1], [0], [0], [1], [0, 0, 1, 1], [], []>} : vector<5x128xf32>, vector<128x256xf32>, vector<5x256xf32> -> vector<5x256xf32>
    %c2_68 = arith.constant 2 : index
    %c0_69 = arith.constant 0 : index
    %68 = tpu.strided_load %arg13[%c2_68, %c0_69] {strides = array<i32: 2, 1>} : memref<14x128xf32, #tpu.memory_space<vmem>>, vector<5x128xf32>
    %cst_70 = arith.constant dense<0.000000e+00> : vector<5x256xf32>
    %69 = tpu.matmul %68, %65, %cst_70 {dimension_numbers = #tpu.dot_dimension_numbers<[1], [0], [0], [1], [0, 0, 1, 1], [], []>} : vector<5x128xf32>, vector<128x256xf32>, vector<5x256xf32> -> vector<5x256xf32>
    %70 = arith.addf %61, %67 : vector<5x256xf32>
    %71 = arith.addf %63, %69 : vector<5x256xf32>
    %c2_71 = arith.constant 2 : index
    %c0_72 = arith.constant 0 : index
    %c0_73 = arith.constant 0 : index
    %72 = vector.load %arg4[%c2_71, %c0_72, %c0_73] : memref<5x128x256xf32, #tpu.memory_space<vmem>>, vector<1x128x256xf32>
    %73 = vector.shape_cast %72 : vector<1x128x256xf32> to vector<128x256xf32>
    %c2_74 = arith.constant 2 : index
    %c0_75 = arith.constant 0 : index
    %74 = tpu.strided_load %arg13[%c2_74, %c0_75] {strides = array<i32: 2, 1>} : memref<14x128xf32, #tpu.memory_space<vmem>>, vector<5x128xf32>
    %cst_76 = arith.constant dense<0.000000e+00> : vector<5x256xf32>
    %75 = tpu.matmul %74, %73, %cst_76 {dimension_numbers = #tpu.dot_dimension_numbers<[1], [0], [0], [1], [0, 0, 1, 1], [], []>} : vector<5x128xf32>, vector<128x256xf32>, vector<5x256xf32> -> vector<5x256xf32>
    %c3_77 = arith.constant 3 : index
    %c0_78 = arith.constant 0 : index
    %76 = tpu.strided_load %arg13[%c3_77, %c0_78] {strides = array<i32: 2, 1>} : memref<14x128xf32, #tpu.memory_space<vmem>>, vector<5x128xf32>
    %cst_79 = arith.constant dense<0.000000e+00> : vector<5x256xf32>
    %77 = tpu.matmul %76, %73, %cst_79 {dimension_numbers = #tpu.dot_dimension_numbers<[1], [0], [0], [1], [0, 0, 1, 1], [], []>} : vector<5x128xf32>, vector<128x256xf32>, vector<5x256xf32> -> vector<5x256xf32>
    %78 = arith.addf %70, %75 : vector<5x256xf32>
    %79 = arith.addf %71, %77 : vector<5x256xf32>
    %c3_80 = arith.constant 3 : index
    %c0_81 = arith.constant 0 : index
    %c0_82 = arith.constant 0 : index
    %80 = vector.load %arg4[%c3_80, %c0_81, %c0_82] : memref<5x128x256xf32, #tpu.memory_space<vmem>>, vector<1x128x256xf32>
    %81 = vector.shape_cast %80 : vector<1x128x256xf32> to vector<128x256xf32>
    %c3_83 = arith.constant 3 : index
    %c0_84 = arith.constant 0 : index
    %82 = tpu.strided_load %arg13[%c3_83, %c0_84] {strides = array<i32: 2, 1>} : memref<14x128xf32, #tpu.memory_space<vmem>>, vector<5x128xf32>
    %cst_85 = arith.constant dense<0.000000e+00> : vector<5x256xf32>
    %83 = tpu.matmul %82, %81, %cst_85 {dimension_numbers = #tpu.dot_dimension_numbers<[1], [0], [0], [1], [0, 0, 1, 1], [], []>} : vector<5x128xf32>, vector<128x256xf32>, vector<5x256xf32> -> vector<5x256xf32>
    %c4_86 = arith.constant 4 : index
    %c0_87 = arith.constant 0 : index
    %84 = tpu.strided_load %arg13[%c4_86, %c0_87] {strides = array<i32: 2, 1>} : memref<14x128xf32, #tpu.memory_space<vmem>>, vector<5x128xf32>
    %cst_88 = arith.constant dense<0.000000e+00> : vector<5x256xf32>
    %85 = tpu.matmul %84, %81, %cst_88 {dimension_numbers = #tpu.dot_dimension_numbers<[1], [0], [0], [1], [0, 0, 1, 1], [], []>} : vector<5x128xf32>, vector<128x256xf32>, vector<5x256xf32> -> vector<5x256xf32>
    %86 = arith.addf %78, %83 : vector<5x256xf32>
    %87 = arith.addf %79, %85 : vector<5x256xf32>
    %c4_89 = arith.constant 4 : index
    %c0_90 = arith.constant 0 : index
    %c0_91 = arith.constant 0 : index
    %88 = vector.load %arg4[%c4_89, %c0_90, %c0_91] : memref<5x128x256xf32, #tpu.memory_space<vmem>>, vector<1x128x256xf32>
    %89 = vector.shape_cast %88 : vector<1x128x256xf32> to vector<128x256xf32>
    %c4_92 = arith.constant 4 : index
    %c0_93 = arith.constant 0 : index
    %90 = tpu.strided_load %arg13[%c4_92, %c0_93] {strides = array<i32: 2, 1>} : memref<14x128xf32, #tpu.memory_space<vmem>>, vector<5x128xf32>
    %cst_94 = arith.constant dense<0.000000e+00> : vector<5x256xf32>
    %91 = tpu.matmul %90, %89, %cst_94 {dimension_numbers = #tpu.dot_dimension_numbers<[1], [0], [0], [1], [0, 0, 1, 1], [], []>} : vector<5x128xf32>, vector<128x256xf32>, vector<5x256xf32> -> vector<5x256xf32>
    %c5_95 = arith.constant 5 : index
    %c0_96 = arith.constant 0 : index
    %92 = tpu.strided_load %arg13[%c5_95, %c0_96] {strides = array<i32: 2, 1>} : memref<14x128xf32, #tpu.memory_space<vmem>>, vector<5x128xf32>
    %cst_97 = arith.constant dense<0.000000e+00> : vector<5x256xf32>
    %93 = tpu.matmul %92, %89, %cst_97 {dimension_numbers = #tpu.dot_dimension_numbers<[1], [0], [0], [1], [0, 0, 1, 1], [], []>} : vector<5x128xf32>, vector<128x256xf32>, vector<5x256xf32> -> vector<5x256xf32>
    %94 = arith.addf %86, %91 : vector<5x256xf32>
    %95 = arith.addf %87, %93 : vector<5x256xf32>
    %96 = arith.maximumf %94, %95 : vector<5x256xf32>
    %97 = vector.extract_strided_slice %96 {offsets = [0, 0], sizes = [5, 128], strides = [1, 1]} : vector<5x256xf32> to vector<5x128xf32>
    %98 = vector.extract_strided_slice %96 {offsets = [0, 128], sizes = [5, 128], strides = [1, 1]} : vector<5x256xf32> to vector<5x128xf32>
    %99 = arith.maximumf %97, %98 : vector<5x128xf32>
    %c0_98 = arith.constant 0 : index
    %c0_99 = arith.constant 0 : index
    %100 = vector.load %arg5[%c0_98, %c0_99] : memref<1x128xf32, #tpu.memory_space<vmem>>, vector<1x128xf32>
    %101 = vector.broadcast %100 : vector<1x128xf32> to vector<5x128xf32>
    %102 = arith.addf %99, %101 : vector<5x128xf32>
    %cst_100 = arith.constant 0.000000e+00 : f32
    %103 = vector.broadcast %cst_100 : f32 to vector<5x128xf32>
    %104 = arith.maximumf %102, %103 : vector<5x128xf32>
    %c0_101 = arith.constant 0 : index
    %c0_102 = arith.constant 0 : index
    %105 = vector.load %arg14[%c0_101, %c0_102] : memref<5x128xf32, #tpu.memory_space<vmem>>, vector<5x128xf32>
    tpu.vector_store %arg14[%c0_101, %c0_102], %104 {strides = array<i32>} : memref<5x128xf32, #tpu.memory_space<vmem>>, vector<5x128xf32>,
    %c0_103 = arith.constant 0 : index
    %c0_104 = arith.constant 0 : index
    %106 = vector.load %arg14[%c0_103, %c0_104] : memref<5x128xf32, #tpu.memory_space<vmem>>, vector<1x128xf32>
    %c0_105 = arith.constant 0 : index
    %c0_106 = arith.constant 0 : index
    %c0_107 = arith.constant 0 : index
    %107 = vector.load %arg6[%c0_105, %c0_106, %c0_107] : memref<5x128x128xf32, #tpu.memory_space<vmem>>, vector<1x128x128xf32>
    %108 = vector.shape_cast %107 : vector<1x128x128xf32> to vector<128x128xf32>
    %cst_108 = arith.constant dense<0.000000e+00> : vector<1x128xf32>
    %109 = tpu.matmul %106, %108, %cst_108 {dimension_numbers = #tpu.dot_dimension_numbers<[1], [0], [0], [1], [0, 0, 1, 1], [], []>} : vector<1x128xf32>, vector<128x128xf32>, vector<1x128xf32> -> vector<1x128xf32>
    %c1_109 = arith.constant 1 : index
    %c0_110 = arith.constant 0 : index
    %110 = vector.load %arg14[%c1_109, %c0_110] : memref<5x128xf32, #tpu.memory_space<vmem>>, vector<1x128xf32>
    %c1_111 = arith.constant 1 : index
    %c0_112 = arith.constant 0 : index
    %c0_113 = arith.constant 0 : index
    %111 = vector.load %arg6[%c1_111, %c0_112, %c0_113] : memref<5x128x128xf32, #tpu.memory_space<vmem>>, vector<1x128x128xf32>
    %112 = vector.shape_cast %111 : vector<1x128x128xf32> to vector<128x128xf32>
    %cst_114 = arith.constant dense<0.000000e+00> : vector<1x128xf32>
    %113 = tpu.matmul %110, %112, %cst_114 {dimension_numbers = #tpu.dot_dimension_numbers<[1], [0], [0], [1], [0, 0, 1, 1], [], []>} : vector<1x128xf32>, vector<128x128xf32>, vector<1x128xf32> -> vector<1x128xf32>
    %114 = arith.addf %109, %113 : vector<1x128xf32>
    %c2_115 = arith.constant 2 : index
    %c0_116 = arith.constant 0 : index
    %115 = vector.load %arg14[%c2_115, %c0_116] : memref<5x128xf32, #tpu.memory_space<vmem>>, vector<1x128xf32>
    %c2_117 = arith.constant 2 : index
    %c0_118 = arith.constant 0 : index
    %c0_119 = arith.constant 0 : index
    %116 = vector.load %arg6[%c2_117, %c0_118, %c0_119] : memref<5x128x128xf32, #tpu.memory_space<vmem>>, vector<1x128x128xf32>
    %117 = vector.shape_cast %116 : vector<1x128x128xf32> to vector<128x128xf32>
    %cst_120 = arith.constant dense<0.000000e+00> : vector<1x128xf32>
    %118 = tpu.matmul %115, %117, %cst_120 {dimension_numbers = #tpu.dot_dimension_numbers<[1], [0], [0], [1], [0, 0, 1, 1], [], []>} : vector<1x128xf32>, vector<128x128xf32>, vector<1x128xf32> -> vector<1x128xf32>
    %119 = arith.addf %114, %118 : vector<1x128xf32>
    %c3_121 = arith.constant 3 : index
    %c0_122 = arith.constant 0 : index
    %120 = vector.load %arg14[%c3_121, %c0_122] : memref<5x128xf32, #tpu.memory_space<vmem>>, vector<1x128xf32>
    %c3_123 = arith.constant 3 : index
    %c0_124 = arith.constant 0 : index
    %c0_125 = arith.constant 0 : index
    %121 = vector.load %arg6[%c3_123, %c0_124, %c0_125] : memref<5x128x128xf32, #tpu.memory_space<vmem>>, vector<1x128x128xf32>
    %122 = vector.shape_cast %121 : vector<1x128x128xf32> to vector<128x128xf32>
    %cst_126 = arith.constant dense<0.000000e+00> : vector<1x128xf32>
    %123 = tpu.matmul %120, %122, %cst_126 {dimension_numbers = #tpu.dot_dimension_numbers<[1], [0], [0], [1], [0, 0, 1, 1], [], []>} : vector<1x128xf32>, vector<128x128xf32>, vector<1x128xf32> -> vector<1x128xf32>
    %124 = arith.addf %119, %123 : vector<1x128xf32>
    %c4_127 = arith.constant 4 : index
    %c0_128 = arith.constant 0 : index
    %125 = vector.load %arg14[%c4_127, %c0_128] : memref<5x128xf32, #tpu.memory_space<vmem>>, vector<1x128xf32>
    %c4_129 = arith.constant 4 : index
    %c0_130 = arith.constant 0 : index
    %c0_131 = arith.constant 0 : index
    %126 = vector.load %arg6[%c4_129, %c0_130, %c0_131] : memref<5x128x128xf32, #tpu.memory_space<vmem>>, vector<1x128x128xf32>
    %127 = vector.shape_cast %126 : vector<1x128x128xf32> to vector<128x128xf32>
    %cst_132 = arith.constant dense<0.000000e+00> : vector<1x128xf32>
    %128 = tpu.matmul %125, %127, %cst_132 {dimension_numbers = #tpu.dot_dimension_numbers<[1], [0], [0], [1], [0, 0, 1, 1], [], []>} : vector<1x128xf32>, vector<128x128xf32>, vector<1x128xf32> -> vector<1x128xf32>
    %129 = arith.addf %124, %128 : vector<1x128xf32>
    %c0_133 = arith.constant 0 : index
    %c0_134 = arith.constant 0 : index
    %130 = vector.load %arg7[%c0_133, %c0_134] : memref<1x128xf32, #tpu.memory_space<vmem>>, vector<1x128xf32>
    %131 = arith.addf %129, %130 : vector<1x128xf32>
    %cst_135 = arith.constant 0.000000e+00 : f32
    %132 = vector.broadcast %cst_135 : f32 to vector<1x128xf32>
    %133 = arith.maximumf %131, %132 : vector<1x128xf32>
    %c0_136 = arith.constant 0 : index
    %c0_137 = arith.constant 0 : index
    %134 = vector.load %arg8[%c0_136, %c0_137] : memref<128x128xf32, #tpu.memory_space<vmem>>, vector<128x128xf32>
    %cst_138 = arith.constant dense<0.000000e+00> : vector<1x128xf32>
    %135 = tpu.matmul %133, %134, %cst_138 {dimension_numbers = #tpu.dot_dimension_numbers<[1], [0], [0], [1], [0, 0, 1, 1], [], []>} : vector<1x128xf32>, vector<128x128xf32>, vector<1x128xf32> -> vector<1x128xf32>
    %c0_139 = arith.constant 0 : index
    %c0_140 = arith.constant 0 : index
    %136 = vector.load %arg9[%c0_139, %c0_140] : memref<1x128xf32, #tpu.memory_space<vmem>>, vector<1x128xf32>
    %137 = arith.addf %135, %136 : vector<1x128xf32>
    %cst_141 = arith.constant 0.000000e+00 : f32
    %138 = vector.broadcast %cst_141 : f32 to vector<1x128xf32>
    %139 = arith.maximumf %137, %138 : vector<1x128xf32>
    %c0_142 = arith.constant 0 : index
    %c0_143 = arith.constant 0 : index
    %140 = vector.load %arg10[%c0_142, %c0_143] : memref<128x128xf32, #tpu.memory_space<vmem>>, vector<128x128xf32>
    %cst_144 = arith.constant dense<0.000000e+00> : vector<1x128xf32>
    %141 = tpu.matmul %139, %140, %cst_144 {dimension_numbers = #tpu.dot_dimension_numbers<[1], [0], [0], [1], [0, 0, 1, 1], [], []>} : vector<1x128xf32>, vector<128x128xf32>, vector<1x128xf32> -> vector<1x128xf32>
    %c0_145 = arith.constant 0 : index
    %c0_146 = arith.constant 0 : index
    %142 = vector.load %arg11[%c0_145, %c0_146] : memref<1x128xf32, #tpu.memory_space<vmem>>, vector<1x128xf32>
    %143 = arith.addf %141, %142 : vector<1x128xf32>
    %c0_147 = arith.constant 0 : index
    %c0_148 = arith.constant 0 : index
    %c0_149 = arith.constant 0 : index
    %144 = vector.load %arg12[%c0_147, %c0_148, %c0_149] : memref<1x1x128xf32, #tpu.memory_space<vmem>>, vector<1x1x128xf32>
    %145 = vector.shape_cast %144 : vector<1x1x128xf32> to vector<1x128xf32>
    %146 = vector.shape_cast %143 : vector<1x128xf32> to vector<1x1x128xf32>
    tpu.vector_store %arg12[%c0_147, %c0_148, %c0_149], %146 {strides = array<i32>} : memref<1x1x128xf32, #tpu.memory_space<vmem>>, vector<1x1x128xf32>,
    return
  }
  func.func @transform_0(%arg0: i32) -> (i32, i32, i32) {
    %c0_i32 = arith.constant 0 : i32
    %c0_i32_0 = arith.constant 0 : i32
    %c0_i32_1 = arith.constant 0 : i32
    return %arg0, %c0_i32, %c0_i32_0 : i32, i32, i32
  }
  func.func @transform_1(%arg0: i32) -> (i32, i32, i32) {
    %c0_i32 = arith.constant 0 : i32
    %c0_i32_0 = arith.constant 0 : i32
    %c0_i32_1 = arith.constant 0 : i32
    %c0_i32_2 = arith.constant 0 : i32
    return %c0_i32, %c0_i32_0, %c0_i32_1 : i32, i32, i32
  }
  func.func @transform_2(%arg0: i32) -> (i32, i32) {
    %c0_i32 = arith.constant 0 : i32
    %c0_i32_0 = arith.constant 0 : i32
    %c0_i32_1 = arith.constant 0 : i32
    return %c0_i32, %c0_i32_0 : i32, i32
  }
  func.func @transform_3(%arg0: i32) -> (i32, i32, i32) {
    %c0_i32 = arith.constant 0 : i32
    %c0_i32_0 = arith.constant 0 : i32
    %c0_i32_1 = arith.constant 0 : i32
    %c0_i32_2 = arith.constant 0 : i32
    return %c0_i32, %c0_i32_0, %c0_i32_1 : i32, i32, i32
  }
  func.func @transform_4(%arg0: i32) -> (i32, i32) {
    %c0_i32 = arith.constant 0 : i32
    %c0_i32_0 = arith.constant 0 : i32
    %c0_i32_1 = arith.constant 0 : i32
    return %c0_i32, %c0_i32_0 : i32, i32
  }
  func.func @transform_5(%arg0: i32) -> (i32, i32, i32) {
    %c0_i32 = arith.constant 0 : i32
    %c0_i32_0 = arith.constant 0 : i32
    %c0_i32_1 = arith.constant 0 : i32
    %c0_i32_2 = arith.constant 0 : i32
    return %c0_i32, %c0_i32_0, %c0_i32_1 : i32, i32, i32
  }
  func.func @transform_6(%arg0: i32) -> (i32, i32) {
    %c0_i32 = arith.constant 0 : i32
    %c0_i32_0 = arith.constant 0 : i32
    %c0_i32_1 = arith.constant 0 : i32
    return %c0_i32, %c0_i32_0 : i32, i32
  }
  func.func @transform_7(%arg0: i32) -> (i32, i32) {
    %c0_i32 = arith.constant 0 : i32
    %c0_i32_0 = arith.constant 0 : i32
    %c0_i32_1 = arith.constant 0 : i32
    return %c0_i32, %c0_i32_0 : i32, i32
  }
  func.func @transform_8(%arg0: i32) -> (i32, i32) {
    %c0_i32 = arith.constant 0 : i32
    %c0_i32_0 = arith.constant 0 : i32
    %c0_i32_1 = arith.constant 0 : i32
    return %c0_i32, %c0_i32_0 : i32, i32
  }
  func.func @transform_9(%arg0: i32) -> (i32, i32) {
    %c0_i32 = arith.constant 0 : i32
    %c0_i32_0 = arith.constant 0 : i32
    %c0_i32_1 = arith.constant 0 : i32
    return %c0_i32, %c0_i32_0 : i32, i32
  }
  func.func @transform_10(%arg0: i32) -> (i32, i32) {
    %c0_i32 = arith.constant 0 : i32
    %c0_i32_0 = arith.constant 0 : i32
    %c0_i32_1 = arith.constant 0 : i32
    return %c0_i32, %c0_i32_0 : i32, i32
  }
  func.func @transform_11(%arg0: i32) -> (i32, i32, i32) {
    %c0_i32 = arith.constant 0 : i32
    %c0_i32_0 = arith.constant 0 : i32
    %c0_i32_1 = arith.constant 0 : i32
    return %arg0, %c0_i32, %c0_i32_0 : i32, i32, i32
  }
}

</mosaic_0001>

<bundles_post_ra>
// kernel: net_forward.1
= control target key start
LH: loop header
LB: loop body
LE: loop exit
PB: predicated region body
PF: predicated region fallthrough
CT: control target
= control target key end

     0   :  { %16 = vsyncpa [#allocation5], 0  ;;  %s4468_s0 = inlined_call_operand.vmem [shape: f32[2,32,128], index: 0, kind: input, shape index: {}]   ;;  %s4469_s1 = inlined_call_operand.hbm [shape: f32[5,128,256], index: 1, kind: input, shape index: {}]   ;;  %s4470_s2 = inlined_call_operand.vmem [shape: f32[1,128], index: 2, kind: input, shape index: {}]   ;;  %s4471_s3 = inlined_call_operand.hbm [shape: f32[5,128,256], index: 3, kind: input, shape index: {}]   ;;  %s4472_s4 = inlined_call_operand.vmem [shape: f32[1,128], index: 4, kind: input, shape index: {}]   ;;  %s4473_s5 = inlined_call_operand.vmem [shape: f32[5,128,128], index: 5, kind: input, shape index: {}]   ;;  %s4474_s6 = inlined_call_operand.vmem [shape: f32[1,128], index: 6, kind: input, shape index: {}]   ;;  %s4475_s7 = inlined_call_operand.vmem [shape: f32[128,128], index: 7, kind: input, shape index: {}]   ;;  %s4476_s8 = inlined_call_operand.vmem [shape: f32[1,128], index: 8, kind: input, shape index: {}]   ;;  %s4477_s9 = inlined_call_operand.hbm [shape: f32[128,128], index: 9, kind: input, shape index: {}]   ;;  %s4478_s10 = inlined_call_operand.vmem [shape: f32[1,128], index: 10, kind: input, shape index: {}]   ;;  %s4479_s11 = inlined_call_operand.hbm [shape: f32[2,1,128], index: 11, kind: output, shape index: {}]  }
   0x1   :  { %17 = vsyncpa [#allocation8], 0 }
   0x2   :  { %18 = vsyncpa [#allocation6], 0 }
   0x3   :  { %20 = vsyncpa [#allocation6 + $0x1], 0  ;;  %s3809_s17 = smov 0   ;;  %s3811_s18 = smov 0  }
   0x4   :  { %s3813_s19 = smov 0   ;;  %s3815_s20 = smov 0  }
   0x5 LB: > { %4483 = sst [smem:[#allocation14_spill]] %s3733_s19  ;;  %s3830_s21 = sadd.s32 4294967295, %s3737_s20   ;;  %s3737_s20 = sphi %s3815_s20, %s4499_s20   ;;  %s3733_s19 = sphi %s3813_s19, %s4496_s19   ;;  %s3729_s18 = sphi %s3811_s18, %s4498_s18   ;;  %s3725_s17 = sphi %s3809_s17, %s4497_s17  }
   0x6   : > { %s3058_s22 = sadd.s32 4294967294, %s3737_s20   ;;  %s3834_s23 = sadd.s32 1, %s3737_s20  }
   0x7   : > { %s269_s24 = sadd.s32 1, %s3733_s19  ;;  %s266_s25 = ssub.s32 %s3737_s20, %s3834_s23 }
   0x8   : > { %p279_p0 = scmp.ne.s32.totalorder %s3733_s19, %s3729_s18  ;;  %p267_p1 = scmp.eq.s32.totalorder %s266_s25, 0 }
   0x9   : > { %p280_p2 = scmp.eq.s32.totalorder %s3830_s21, 1  ;;  %p285_p3 = scmp.ne.s32.totalorder %s3729_s18, %s3725_s17 }
   0xa   : > { %p286_p4 = scmp.eq.s32.totalorder %s3058_s22, 1  ;;  %p3059_p7 = scmp.ge.s32.totalorder %s3737_s20, 1 }
   0xb   : > { %s3845_s26 = scalar_select %p267_p1, %s3733_s19, %s269_s24  }
   0xc   : > { %p3847_p5 = por %p280_p2, %p279_p0  ;;  %p3851_p6 = por %p286_p4, %p285_p3 }
   0xd   : > { %4484 = sst [smem:[#allocation15_spill]] %s3845_s26  ;;  %p293_p8 = scmp.lt.s32.totalorder %s3737_s20, 3 }
   0xe   : > { %s4485_s27 = scalar_select %p3847_p5, 1, 0 }
   0xf   : > { %s4486_s28 = scalar_select %p3851_p6, 1, 0 }
  0x10   : > { %p4480_p9 = scmp.eq.s32.totalorder %s3830_s21, 0  ;;  %p3858_p10 = pnand %p3059_p7, %p293_p8 }
  0x11   : > { %s3739_s30 = smov [#allocation7]   ;;  %s3740_s14 = smov [#allocation4]  }
  0x12   : > { %p3529_p11 = pneg %p3858_p10  ;;  %s321_s12 = sshll.u32 %s3739_s30, 4  ;;  %s322_s12 = int_to_ptr.vmem [resolvable:$true] %s321_s12 }
  0x13   : > { %s305_s15 = sshll.u32 %s3740_s14, 4  ;;  %s3741_s16 = smov [#allocation9]   ;;  %s306_s15 = int_to_ptr.vmem [resolvable:$true] %s305_s15 }
  0x14   : > { %p3866_p12 = pnand %p4480_p9, %p3529_p11  ;;  %s349_s22 = sshll.u32 %s3741_s16, 4  ;;  %s350_s22 = int_to_ptr.vmem [resolvable:$true] %s349_s22 }
  0x15   : > { %s3602_s24 = scalar_lea.vmem %s322_s12, 20480  ;;  %p3610_p3 = scmp.lt.s32.totalorder %s322_s12, %s322_s12 }
  0x16   : > { %p3593_p13 = pneg %p3866_p12  ;;  %p3603_p0 = scmp.ne.s32.totalorder %s322_s12, %s3602_s24 }
  0x17   : > { %p3611_p4 = scmp.lt.s32.totalorder %s3602_s24, %s3602_s24 }
  0x18   : > { %p3605_p1 = pnand %p3603_p0, %p3593_p13 }
  0x19   : > { %p3612_p7 = por %p3611_p4, %p3610_p3 }
  0x1a   : > { %p3606_p2 = pneg %p3605_p1 }
  0x1c   : > { %p3613_p8 = pnand %p3612_p7, %p3606_p2 }
  0x1e   : > { %3616 = shalt.err (!%p3613_p8)
}
  0x1f   : > { %s3742_s25 = smov 256   ;;  %s3743_s30 = smov 16  }
  0x20   : > { %3535 = dma.hbm_to_vmem [thread:$0]  (!%p3866_p12), %s4471_s3, 20480, %s322_s12, [#allocation8], %s3742_s25, %s3742_s25, %s3743_s30  }
  0x21   : > { %s3628_s26 = scalar_lea.vmem %s306_s15, 20480  ;;  %p3636_p9 = scmp.lt.s32.totalorder %s306_s15, %s306_s15 }
  0x22   : > { %p3629_p11 = scmp.ne.s32.totalorder %s306_s15, %s3628_s26  ;;  %p3637_p6 = scmp.lt.s32.totalorder %s3628_s26, %s3628_s26 }
  0x24   : > { %p3631_p0 = pnand %p3629_p11, %p3593_p13  ;;  %p3638_p3 = por %p3637_p6, %p3636_p9 }
  0x26   : > { %p3632_p1 = pneg %p3631_p0 }
  0x28   : > { %p3639_p2 = pnand %p3638_p3, %p3632_p1 }
  0x2a   : > { %3642 = shalt.err (!%p3639_p2)
}
  0x2b   : > { %3532 = dma.hbm_to_vmem [thread:$0]  (!%p3866_p12), %s4469_s1, 20480, %s306_s15, [#allocation5], %s3742_s25, %s3742_s25, %s3743_s30  }
  0x2c   : > { %s3654_s12 = scalar_lea.vmem %s350_s22, 2048  ;;  %p3662_p11 = scmp.lt.s32.totalorder %s350_s22, %s350_s22 }
  0x2d   : > { %p3655_p4 = scmp.ne.s32.totalorder %s350_s22, %s3654_s12  ;;  %p3663_p0 = scmp.lt.s32.totalorder %s3654_s12, %s3654_s12 }
  0x2f   : > { %p3657_p7 = pnand %p3655_p4, %p3593_p13  ;;  %p3664_p5 = por %p3663_p0, %p3662_p11 }
  0x31   : > { %p3658_p8 = pneg %p3657_p7 }
  0x33   : > { %p3665_p6 = pnand %p3664_p5, %p3658_p8 }
  0x35   : > { %3668 = shalt.err (!%p3665_p6)
}
  0x36   : > { %s3744_s26 = smov 128   ;;  %s3745_s14 = smov 8  }
  0x37   : > { %3538 = dma.hbm_to_vmem [thread:$0]  (!%p3866_p12), %s4477_s9, 2048, %s350_s22, [#allocation8], %s3744_s26, %s3744_s26, %s3745_s14  }
  0x38   : > { %376 = sbr.rel (%p3858_p10) target bundleno = 1478 (0x5c6), region = 64  ;;  %p4489_p9 = scmp.eq.s32.totalorder (!%p3858_p10), %s3830_s21, 0 }
  0x3d   : > { %3712 = dma.done.wait (%p4489_p9), [#allocation5], 20480   ;;  %p4490_p13 = pmov %p4489_p9 }
  0x3e   : > { %p4491_p5 = pmov %p4489_p9 }
  0x3f   : > { %3714 = vsyncadd (%p4490_p13), [#allocation5], 4294946816 }
  0x40   : > { %3716 = dma.done.wait (%p4491_p5), [#allocation8], 22528   ;;  %p4492_p1 = pmov %p4491_p5 }
  0x41   : > { %v3746_v0 = vmov 0.0   ;;  %v499_v1 = vld [vmem:[#allocation4 + $0x1f8] sm:$0xff]  ;;  %v498_v2 = vld [vmem:[#allocation4 + $0x1f0] sm:$0xff]  ;;  %v497_v3 = vld [vmem:[#allocation4 + $0x1e8] sm:$0xff]  ;;  %p423_p10 = scmp.lt.s32.totalorder %s3830_s21, 1  ;;  %vm3747_vm0 = vmmov 0  }
  0x42   : > { %3718 = vsyncadd (%p4492_p1), [#allocation8], 4294944768  ;;  %564 = vmatprep.mubr.f32.mxu0 %v3746_v0  ;;  %645 = vmatprep.mubr.f32.mxu1 %v3746_v0  ;;  %v496_v4 = vld [vmem:[#allocation4 + $0x1e0] sm:$0xff]  ;;  %v495_v5 = vld [vmem:[#allocation4 + $0x1d8] sm:$0xff]  ;;  %p4493_p3 = scmp.ne.s32.totalorder %s4485_s27, 0 }
  0x43   : > { %500 = vmatprep.subr.mxu0 %v499_v1  ;;  %581 = vmatprep.subr.mxu1 %v499_v1  ;;  %v494_v6 = vld [vmem:[#allocation4 + $0x1d0] sm:$0xff]  ;;  %v493_v7 = vld [vmem:[#allocation4 + $0x1c8] sm:$0xff]  ;;  %v492_v8 = vld [vmem:[#allocation4 + $0x1c0] sm:$0xff]  ;;  %s424_s29 = scalar_select %p423_p10, %s3830_s21, 1 }
  0x44   : > { %501 = vmatpush1.msra.mxu0 %v498_v2  ;;  %582 = vmatpush1.msra.mxu1 %v498_v2  ;;  %v491_v9 = vld [vmem:[#allocation4 + $0x1b8] sm:$0xff]  ;;  %v490_v10 = vld [vmem:[#allocation4 + $0x1b0] sm:$0xff]  ;;  %v489_v11 = vld [vmem:[#allocation4 + $0x1a8] sm:$0xff] }
  0x45   : > { %502 = vmatprep.subr.mxu0 %v497_v3  ;;  %583 = vmatprep.subr.mxu1 %v497_v3  ;;  %v488_v12 = vld [vmem:[#allocation4 + $0x1a0] sm:$0xff]  ;;  %v487_v13 = vld [vmem:[#allocation4 + $0x198] sm:$0xff]  ;;  %v486_v14 = vld [vmem:[#allocation4 + $0x190] sm:$0xff]  ;;  %s3150_s13 = sshll.u32 %s424_s29, 5  ;;  %s3748_s29 = smov [#allocation10]  }
  0x46   : > { %503 = vmatpush1.msra.mxu0 %v496_v4  ;;  %584 = vmatpush1.msra.mxu1 %v496_v4  ;;  %v485_v15 = vld [vmem:[#allocation4 + $0x188] sm:$0xff]  ;;  %v484_v16 = vld [vmem:[#allocation4 + $0x180] sm:$0xff]  ;;  %v483_v17 = vld [vmem:[#allocation4 + $0x178] sm:$0xff]  ;;  %s3913_s25 = scalar_lea.vmem %s4468_s0, %s3150_s13  ;;  %s421_s13 = sand.u32 1, %s3729_s18  }
  0x47   : > { %504 = vmatprep.subr.mxu0 %v495_v5  ;;  %585 = vmatprep.subr.mxu1 %v495_v5  ;;  %v482_v18 = vld [vmem:[#allocation4 + $0x170] sm:$0xff]  ;;  %v481_v19 = vld [vmem:[#allocation4 + $0x168] sm:$0xff]  ;;  %v480_v20 = vld [vmem:[#allocation4 + $0x160] sm:$0xff]  ;;  %s422_s30 = scalar_lea.vmem [#allocation10], %s421_s13  ;;  %s2960_s16 = scalar_lea.sflag [#allocation6], %s421_s13 }
  0x48   : > { %505 = vmatpush1.msra.mxu0 %v494_v6  ;;  %586 = vmatpush1.msra.mxu1 %v494_v6  ;;  %v479_v21 = vld [vmem:[#allocation4 + $0x158] sm:$0xff]  ;;  %v478_v22 = vld [vmem:[#allocation4 + $0x150] sm:$0xff]  ;;  %v477_v23 = vld [vmem:[#allocation4 + $0x148] sm:$0xff]  ;;  %s2972_s24 = sshll.u32 %s422_s30, 4  ;;  %s2973_s24 = int_to_ptr.vmem [resolvable:$true] %s2972_s24 }
  0x49   : > { %506 = vmatprep.subr.mxu0 %v493_v7  ;;  %587 = vmatprep.subr.mxu1 %v493_v7  ;;  %v476_v24 = vld [vmem:[#allocation4 + $0x140] sm:$0xff]  ;;  %v475_v25 = vld [vmem:[#allocation4 + $0x138] sm:$0xff]  ;;  %v474_v26 = vld [vmem:[#allocation4 + $0x130] sm:$0xff]  ;;  %s3669_s19 = scalar_lea.vmem %s2973_s24, 16 }
  0x4a   : > { %507 = vmatpush1.msra.mxu0 %v492_v8  ;;  %588 = vmatpush1.msra.mxu1 %v492_v8  ;;  %v473_v27 = vld [vmem:[#allocation4 + $0x128] sm:$0xff]  ;;  %v472_v28 = vld [vmem:[#allocation4 + $0x120] sm:$0xff]  ;;  %v471_v29 = vld [vmem:[#allocation4 + $0x118] sm:$0xff]  ;;  %p3670_p12 = scmp.ne.s32.totalorder %s2973_s24, %s3669_s19 }
  0x4b   : > { %508 = vmatprep.subr.mxu0 %v491_v9  ;;  %589 = vmatprep.subr.mxu1 %v491_v9  ;;  %v470_v30 = vld [vmem:[#allocation4 + $0x110] sm:$0xff]  ;;  %v469_v31 = vld [vmem:[#allocation4 + $0x108] sm:$0xff]  ;;  %v468_v32 = vld [vmem:[#allocation4 + $0x100] sm:$0xff] }
  0x4c   : > { %509 = vmatpush1.msra.mxu0 %v490_v10  ;;  %590 = vmatpush1.msra.mxu1 %v490_v10  ;;  %v3916_v33 = vld [vmem:[%s3913_s25 + $0x1] ss:$2 sm:$0xff]  ;;  %v3919_v34 = vld [vmem:[%s3913_s25 + $0x2] ss:$2 sm:$0xff]  ;;  %v456_v38 = vld [vmem:[#allocation4 + $0xe0] sm:$0xff]  ;;  %p3671_p2 = pnand %p3670_p12, %p4493_p3 }
  0x4d   : > { %510 = vmatprep.subr.mxu0 %v489_v11  ;;  %591 = vmatprep.subr.mxu1 %v489_v11  ;;  %v459_v35 = vld [vmem:[#allocation4 + $0xf8] sm:$0xff]  ;;  %v458_v36 = vld [vmem:[#allocation4 + $0xf0] sm:$0xff]  ;;  %v457_v37 = vld [vmem:[#allocation4 + $0xe8] sm:$0xff] }
  0x4e   : > { %511 = vmatpush1.msra.mxu0 %v488_v12  ;;  %592 = vmatpush1.msra.mxu1 %v488_v12  ;;  %v455_v39 = vld [vmem:[#allocation4 + $0xd8] sm:$0xff]  ;;  %v454_v40 = vld [vmem:[#allocation4 + $0xd0] sm:$0xff]  ;;  %v453_v41 = vld [vmem:[#allocation4 + $0xc8] sm:$0xff]  ;;  %p3672_p4 = pneg %p3671_p2 }
  0x4f   : > { %512 = vmatprep.subr.mxu0 %v487_v13  ;;  %593 = vmatprep.subr.mxu1 %v487_v13  ;;  %v452_v42 = vld [vmem:[#allocation4 + $0xc0] sm:$0xff]  ;;  %v451_v43 = vld [vmem:[#allocation4 + $0xb8] sm:$0xff]  ;;  %v450_v44 = vld [vmem:[#allocation4 + $0xb0] sm:$0xff] }
  0x50   : > { %513 = vmatpush1.msra.mxu0 %v486_v14  ;;  %594 = vmatpush1.msra.mxu1 %v486_v14  ;;  %v449_v45 = vld [vmem:[#allocation4 + $0xa8] sm:$0xff]  ;;  %v448_v46 = vld [vmem:[#allocation4 + $0xa0] sm:$0xff]  ;;  %v447_v47 = vld [vmem:[#allocation4 + $0x98] sm:$0xff] }
  0x51   : > { %514 = vmatprep.subr.mxu0 %v485_v15  ;;  %595 = vmatprep.subr.mxu1 %v485_v15  ;;  %v446_v48 = vld [vmem:[#allocation4 + $0x90] sm:$0xff]  ;;  %v445_v49 = vld [vmem:[#allocation4 + $0x88] sm:$0xff]  ;;  %v444_v50 = vld [vmem:[#allocation4 + $0x80] sm:$0xff] }
  0x52   : > { %515 = vmatpush1.msra.mxu0 %v484_v16  ;;  %596 = vmatpush1.msra.mxu1 %v484_v16  ;;  %v443_v51 = vld [vmem:[#allocation4 + $0x78] sm:$0xff]  ;;  %v442_v52 = vld [vmem:[#allocation4 + $0x70] sm:$0xff]  ;;  %v441_v53 = vld [vmem:[#allocation4 + $0x68] sm:$0xff] }
  0x53   : > { %516 = vmatprep.subr.mxu0 %v483_v17  ;;  %597 = vmatprep.subr.mxu1 %v483_v17  ;;  %v440_v54 = vld [vmem:[#allocation4 + $0x60] sm:$0xff]  ;;  %v439_v55 = vld [vmem:[#allocation4 + $0x58] sm:$0xff]  ;;  %v438_v56 = vld [vmem:[#allocation4 + $0x50] sm:$0xff] }
  0x54   : > { %517 = vmatpush1.msra.mxu0 %v482_v18  ;;  %598 = vmatpush1.msra.mxu1 %v482_v18  ;;  %v437_v57 = vld [vmem:[#allocation4 + $0x48] sm:$0xff]  ;;  %v436_v58 = vld [vmem:[#allocation4 + $0x40] sm:$0xff]  ;;  %v435_v59 = vld [vmem:[#allocation4 + $0x38] sm:$0xff] }
  0x55   : > { %518 = vmatprep.subr.mxu0 %v481_v19  ;;  %599 = vmatprep.subr.mxu1 %v481_v19  ;;  %v434_v60 = vld [vmem:[#allocation4 + $0x30] sm:$0xff]  ;;  %v433_v61 = vld [vmem:[#allocation4 + $0x28] sm:$0xff]  ;;  %v3072_v62 = vld [vmem:[%s3913_s25 + $0x11] ss:$2 sm:$0x3f] }
  0x56   : > { %519 = vmatpush1.msra.mxu0 %v480_v20  ;;  %600 = vmatpush1.msra.mxu1 %v480_v20  ;;  %v3925_v63 = vld [vmem:[%s3913_s25 + $0x12] ss:$2 sm:$0x3f]  ;;  %v430_v3 = vld [vmem:[#allocation4 + $0x10] sm:$0xff]  ;;  %v429_v4 = vld [vmem:[#allocation4 + $0x8] sm:$0xff] }
  0x57   : > { %520 = vmatprep.subr.mxu0 %v479_v21  ;;  %601 = vmatprep.subr.mxu1 %v479_v21  ;;  %v432_v1 = vld [vmem:[#allocation4 + $0x20] sm:$0xff]  ;;  %v431_v2 = vld [vmem:[#allocation4 + $0x18] sm:$0xff]  ;;  %v460_v6 = vld [vmem:[%s3913_s25] ss:$2 sm:$0xff] }
  0x58   : > { %521 = vmatpush1.msra.mxu0 %v478_v22  ;;  %602 = vmatpush1.msra.mxu1 %v478_v22  ;;  %v428_v5 = vld [vmem:[#allocation4] sm:$0xff]  ;;  %v844_v7 = vld [vmem:[#allocation4 + $0x2f8] sm:$0xff]  ;;  %v843_v8 = vld [vmem:[#allocation4 + $0x2f0] sm:$0xff] }
  0x59   : > { %522 = vmatprep.subr.mxu0 %v477_v23  ;;  %603 = vmatprep.subr.mxu1 %v477_v23  ;;  %v842_v9 = vld [vmem:[#allocation4 + $0x2e8] sm:$0xff]  ;;  %v841_v10 = vld [vmem:[#allocation4 + $0x2e0] sm:$0xff]  ;;  %v840_v12 = vld [vmem:[#allocation4 + $0x2d8] sm:$0xff] }
  0x5a   : > { %523 = vmatpush1.msra.mxu0 %v476_v24  ;;  %604 = vmatpush1.msra.mxu1 %v476_v24  ;;  %v3070_v11 = vld [vmem:[%s3913_s25 + $0x10] ss:$2 sm:$0x3f]  ;;  %v839_v13 = vld [vmem:[#allocation4 + $0x2d0] sm:$0xff]  ;;  %v838_v14 = vld [vmem:[#allocation4 + $0x2c8] sm:$0xff] }
  0x5b   : > { %524 = vmatprep.subr.mxu0 %v475_v25  ;;  %605 = vmatprep.subr.mxu1 %v475_v25  ;;  %v837_v15 = vld [vmem:[#allocation4 + $0x2c0] sm:$0xff]  ;;  %v836_v16 = vld [vmem:[#allocation4 + $0x2b8] sm:$0xff]  ;;  %v835_v17 = vld [vmem:[#allocation4 + $0x2b0] sm:$0xff] }
  0x5c   : > { %525 = vmatpush1.msra.mxu0 %v474_v26  ;;  %606 = vmatpush1.msra.mxu1 %v474_v26  ;;  %v834_v18 = vld [vmem:[#allocation4 + $0x2a8] sm:$0xff]  ;;  %v833_v19 = vld [vmem:[#allocation4 + $0x2a0] sm:$0xff]  ;;  %v832_v20 = vld [vmem:[#allocation4 + $0x298] sm:$0xff] }
  0x5d   : > { %526 = vmatprep.subr.mxu0 %v473_v27  ;;  %607 = vmatprep.subr.mxu1 %v473_v27  ;;  %v831_v21 = vld [vmem:[#allocation4 + $0x290] sm:$0xff]  ;;  %v830_v22 = vld [vmem:[#allocation4 + $0x288] sm:$0xff]  ;;  %v829_v23 = vld [vmem:[#allocation4 + $0x280] sm:$0xff] }
  0x5e   : > { %527 = vmatpush1.msra.mxu0 %v472_v28  ;;  %608 = vmatpush1.msra.mxu1 %v472_v28  ;;  %v828_v24 = vld [vmem:[#allocation4 + $0x278] sm:$0xff]  ;;  %v827_v25 = vld [vmem:[#allocation4 + $0x270] sm:$0xff]  ;;  %v826_v26 = vld [vmem:[#allocation4 + $0x268] sm:$0xff] }
  0x5f   : > { %528 = vmatprep.subr.mxu0 %v471_v29  ;;  %609 = vmatprep.subr.mxu1 %v471_v29  ;;  %v825_v27 = vld [vmem:[#allocation4 + $0x260] sm:$0xff]  ;;  %v824_v28 = vld [vmem:[#allocation4 + $0x258] sm:$0xff]  ;;  %v823_v29 = vld [vmem:[#allocation4 + $0x250] sm:$0xff] }
  0x60   : > { %529 = vmatpush1.msra.mxu0 %v470_v30  ;;  %610 = vmatpush1.msra.mxu1 %v470_v30  ;;  %v822_v30 = vld [vmem:[#allocation4 + $0x248] sm:$0xff] }
  0x61   : > { %530 = vmatprep.subr.mxu0 %v469_v31  ;;  %611 = vmatprep.subr.mxu1 %v469_v31  ;;  %v821_v31 = vld [vmem:[#allocation4 + $0x240] sm:$0xff] }
  0x62   : > { %531 = vmatpush1.msra.mxu0 %v468_v32  ;;  %612 = vmatpush1.msra.mxu1 %v468_v32  ;;  %v820_v32 = vld [vmem:[#allocation4 + $0x238] sm:$0xff] }
  0x63   : > { %565 = vmatmul.mubr.f32.vlgmr.msra.gmra.mxu0 %v3916_v33  ;;  %646 = vmatmul.mubr.f32.vlgmr.msra.gmra.mxu1 %v3919_v34 }
  0x64   : > { %658 = vmatprep.subr.mxu0 %v459_v35  ;;  %735 = vmatprep.subr.mxu1 %v459_v35  ;;  %v818_v35 = vld [vmem:[#allocation4 + $0x228] sm:$0xff] }
  0x65   : > { %659 = vmatpush1.msra.mxu0 %v458_v36  ;;  %736 = vmatpush1.msra.mxu1 %v458_v36  ;;  %v817_v36 = vld [vmem:[#allocation4 + $0x220] sm:$0xff] }
  0x66   : > { %660 = vmatprep.subr.mxu0 %v457_v37  ;;  %737 = vmatprep.subr.mxu1 %v457_v37  ;;  %v816_v37 = vld [vmem:[#allocation4 + $0x218] sm:$0xff] }
  0x67   : > { %661 = vmatpush1.msra.mxu0 %v456_v38  ;;  %738 = vmatpush1.msra.mxu1 %v456_v38  ;;  %v815_v38 = vld [vmem:[#allocation4 + $0x210] sm:$0xff] }
  0x68   : > { %662 = vmatprep.subr.mxu0 %v455_v39  ;;  %739 = vmatprep.subr.mxu1 %v455_v39  ;;  %v814_v39 = vld [vmem:[#allocation4 + $0x208] sm:$0xff] }
  0x69   : > { %663 = vmatpush1.msra.mxu0 %v454_v40  ;;  %740 = vmatpush1.msra.mxu1 %v454_v40  ;;  %v813_v40 = vld [vmem:[#allocation4 + $0x200] sm:$0xff] }
  0x6a   : > { %664 = vmatprep.subr.mxu0 %v453_v41  ;;  %741 = vmatprep.subr.mxu1 %v453_v41  ;;  %v3938_v41 = vld [vmem:[%s3913_s25 + $0x3] ss:$2 sm:$0xff] }
  0x6b   : > { %665 = vmatpush1.msra.mxu0 %v452_v42  ;;  %742 = vmatpush1.msra.mxu1 %v452_v42  ;;  %v1043_v42 = vld [vmem:[#allocation4 + $0x3f8] sm:$0xff] }
  0x6c   : > { %666 = vmatprep.subr.mxu0 %v451_v43  ;;  %743 = vmatprep.subr.mxu1 %v451_v43  ;;  %v1042_v43 = vld [vmem:[#allocation4 + $0x3f0] sm:$0xff] }
  0x6d   : > { %667 = vmatpush1.msra.mxu0 %v450_v44  ;;  %744 = vmatpush1.msra.mxu1 %v450_v44  ;;  %v1041_v44 = vld [vmem:[#allocation4 + $0x3e8] sm:$0xff] }
  0x6e   : > { %668 = vmatprep.subr.mxu0 %v449_v45  ;;  %745 = vmatprep.subr.mxu1 %v449_v45  ;;  %v1040_v45 = vld [vmem:[#allocation4 + $0x3e0] sm:$0xff] }
  0x6f   : > { %669 = vmatpush1.msra.mxu0 %v448_v46  ;;  %746 = vmatpush1.msra.mxu1 %v448_v46  ;;  %v3945_v46 = vld [vmem:[%s3913_s25 + $0x13] ss:$2 sm:$0x3f] }
  0x70   : > { %670 = vmatprep.subr.mxu0 %v447_v47  ;;  %747 = vmatprep.subr.mxu1 %v447_v47  ;;  %v1039_v47 = vld [vmem:[#allocation4 + $0x3d8] sm:$0xff] }
  0x71   : > { %671 = vmatpush1.msra.mxu0 %v446_v48  ;;  %748 = vmatpush1.msra.mxu1 %v446_v48  ;;  %v1037_v48 = vld [vmem:[#allocation4 + $0x3c8] sm:$0xff] }
  0x72   : > { %672 = vmatprep.subr.mxu0 %v445_v49  ;;  %749 = vmatprep.subr.mxu1 %v445_v49  ;;  %v1036_v49 = vld [vmem:[#allocation4 + $0x3c0] sm:$0xff] }
  0x73   : > { %673 = vmatpush1.msra.mxu0 %v444_v50  ;;  %750 = vmatpush1.msra.mxu1 %v444_v50  ;;  %v1035_v50 = vld [vmem:[#allocation4 + $0x3b8] sm:$0xff] }
  0x74   : > { %674 = vmatprep.subr.mxu0 %v443_v51  ;;  %751 = vmatprep.subr.mxu1 %v443_v51  ;;  %v1034_v51 = vld [vmem:[#allocation4 + $0x3b0] sm:$0xff] }
  0x75   : > { %675 = vmatpush1.msra.mxu0 %v442_v52  ;;  %752 = vmatpush1.msra.mxu1 %v442_v52  ;;  %v1033_v52 = vld [vmem:[#allocation4 + $0x3a8] sm:$0xff] }
  0x76   : > { %676 = vmatprep.subr.mxu0 %v441_v53  ;;  %753 = vmatprep.subr.mxu1 %v441_v53  ;;  %v1032_v53 = vld [vmem:[#allocation4 + $0x3a0] sm:$0xff] }
  0x77   : > { %677 = vmatpush1.msra.mxu0 %v440_v54  ;;  %754 = vmatpush1.msra.mxu1 %v440_v54  ;;  %v1031_v54 = vld [vmem:[#allocation4 + $0x398] sm:$0xff] }
  0x78   : > { %678 = vmatprep.subr.mxu0 %v439_v55  ;;  %755 = vmatprep.subr.mxu1 %v439_v55  ;;  %v1030_v55 = vld [vmem:[#allocation4 + $0x390] sm:$0xff] }
  0x79   : > { %679 = vmatpush1.msra.mxu0 %v438_v56  ;;  %756 = vmatpush1.msra.mxu1 %v438_v56  ;;  %v1029_v56 = vld [vmem:[#allocation4 + $0x388] sm:$0xff] }
  0x7a   : > { %680 = vmatprep.subr.mxu0 %v437_v57  ;;  %757 = vmatprep.subr.mxu1 %v437_v57  ;;  %v1028_v57 = vld [vmem:[#allocation4 + $0x380] sm:$0xff] }
  0x7b   : > { %681 = vmatpush1.msra.mxu0 %v436_v58  ;;  %758 = vmatpush1.msra.mxu1 %v436_v58  ;;  %v1027_v58 = vld [vmem:[#allocation4 + $0x378] sm:$0xff] }
  0x7c   : > { %682 = vmatprep.subr.mxu0 %v435_v59  ;;  %759 = vmatprep.subr.mxu1 %v435_v59  ;;  %v1026_v59 = vld [vmem:[#allocation4 + $0x370] sm:$0xff] }
  0x7d   : > { %683 = vmatpush1.msra.mxu0 %v434_v60  ;;  %760 = vmatpush1.msra.mxu1 %v434_v60  ;;  %v1025_v60 = vld [vmem:[#allocation4 + $0x368] sm:$0xff] }
  0x7e   : > { %570 = vmatprep.mubr.f32.mxu0 %v3746_v0  ;;  %651 = vmatprep.mubr.f32.mxu1 %v3746_v0 }
  0x7f   : > { %684 = vmatprep.subr.mxu0 %v433_v61  ;;  %761 = vmatprep.subr.mxu1 %v433_v61  ;;  %v1024_v61 = vld [vmem:[#allocation4 + $0x360] sm:$0xff] }
  0x80   : > { %571 = vmatmul.mubr.f32.gmra.mxu0 %v3072_v62  ;;  %652 = vmatmul.mubr.f32.gmra.mxu1 %v3925_v63 }
  0x81   : > { %685 = vmatpush1.msra.mxu0 %v432_v1  ;;  %762 = vmatpush1.msra.mxu1 %v432_v1  ;;  %v1021_v1 = vld [vmem:[#allocation4 + $0x348] sm:$0xff] }
  0x82   : > { %686 = vmatprep.subr.mxu0 %v431_v2  ;;  %763 = vmatprep.subr.mxu1 %v431_v2  ;;  %v1020_v2 = vld [vmem:[#allocation4 + $0x340] sm:$0xff] }
  0x83   : > { %687 = vmatpush1.msra.mxu0 %v430_v3  ;;  %764 = vmatpush1.msra.mxu1 %v430_v3  ;;  %v1019_v3 = vld [vmem:[#allocation4 + $0x338] sm:$0xff] }
  0x84   : > { %688 = vmatprep.subr.mxu0 %v429_v4  ;;  %765 = vmatprep.subr.mxu1 %v429_v4  ;;  %v1018_v4 = vld [vmem:[#allocation4 + $0x330] sm:$0xff] }
  0x85   : > { %689 = vmatpush1.msra.mxu0 %v428_v5  ;;  %722 = vmatprep.mubr.f32.mxu0 %v3746_v0 }
  0x86   : > { %766 = vmatpush1.msra.mxu1 %v428_v5  ;;  %799 = vmatprep.mubr.f32.mxu1 %v3746_v0  ;;  %v1017_v5 = vld [vmem:[#allocation4 + $0x328] sm:$0xff] }
  0x87   : > { %723 = vmatmul.mubr.f32.vlgmr.msra.gmra.mxu0 %v460_v6  ;;  %800 = vmatmul.mubr.f32.vlgmr.msra.gmra.mxu1 %v3916_v33  ;;  %v819_v33 = vld [vmem:[#allocation4 + $0x230] sm:$0xff]  ;;  %v1016_v6 = vld [vmem:[#allocation4 + $0x320] sm:$0xff] }
  0x88   : > { %845 = vmatprep.subr.mxu0 %v844_v7  ;;  %926 = vmatprep.subr.mxu1 %v844_v7  ;;  %v1015_v7 = vld [vmem:[#allocation4 + $0x318] sm:$0xff] }
  0x89   : > { %846 = vmatpush1.msra.mxu0 %v843_v8  ;;  %927 = vmatpush1.msra.mxu1 %v843_v8  ;;  %v1014_v8 = vld [vmem:[#allocation4 + $0x310] sm:$0xff] }
  0x8a   : > { %847 = vmatprep.subr.mxu0 %v842_v9  ;;  %928 = vmatprep.subr.mxu1 %v842_v9  ;;  %v1013_v9 = vld [vmem:[#allocation4 + $0x308] sm:$0xff] }
  0x8b   : > { %728 = vmatprep.mubr.f32.mxu0 %v3746_v0  ;;  %805 = vmatprep.mubr.f32.mxu1 %v3746_v0 }
  0x8c   : > { %848 = vmatpush1.msra.mxu0 %v841_v10  ;;  %929 = vmatpush1.msra.mxu1 %v841_v10  ;;  %v1012_v10 = vld [vmem:[#allocation4 + $0x300] sm:$0xff] }
  0x8d   : > { %729 = vmatmul.mubr.f32.gmra.mxu0 %v3070_v11  ;;  %806 = vmatmul.mubr.f32.gmra.mxu1 %v3072_v62  ;;  %v1023_v62 = vld [vmem:[#allocation4 + $0x358] sm:$0xff] }
  0x8e   : > { %849 = vmatprep.subr.mxu0 %v840_v12  ;;  %930 = vmatprep.subr.mxu1 %v840_v12  ;;  %v3952_v11 = vld [vmem:[%s3913_s25 + $0x4] ss:$2 sm:$0xff] }
  0x8f   : > { %850 = vmatpush1.msra.mxu0 %v839_v13  ;;  %931 = vmatpush1.msra.mxu1 %v839_v13  ;;  %v1242_v12 = vld [vmem:[#allocation4 + $0x4f8] sm:$0xff]  ;;  %v1241_v13 = vld [vmem:[#allocation4 + $0x4f0] sm:$0xff] }
  0x90   : > { %851 = vmatprep.subr.mxu0 %v838_v14  ;;  %932 = vmatprep.subr.mxu1 %v838_v14  ;;  %v1240_v14 = vld [vmem:[#allocation4 + $0x4e8] sm:$0xff] }
  0x91   : > { %852 = vmatpush1.msra.mxu0 %v837_v15  ;;  %933 = vmatpush1.msra.mxu1 %v837_v15  ;;  %v1239_v15 = vld [vmem:[#allocation4 + $0x4e0] sm:$0xff] }
  0x92   : > { %853 = vmatprep.subr.mxu0 %v836_v16  ;;  %934 = vmatprep.subr.mxu1 %v836_v16  ;;  %v3959_v16 = vld [vmem:[%s3913_s25 + $0x14] ss:$2 sm:$0x3f] }
  0x93   : > { %854 = vmatpush1.msra.mxu0 %v835_v17  ;;  %935 = vmatpush1.msra.mxu1 %v835_v17  ;;  %v1238_v17 = vld [vmem:[#allocation4 + $0x4d8] sm:$0xff] }
  0x94   : > { %855 = vmatprep.subr.mxu0 %v834_v18  ;;  %936 = vmatprep.subr.mxu1 %v834_v18  ;;  %v1237_v18 = vld [vmem:[#allocation4 + $0x4d0] sm:$0xff] }
  0x95   : > { %856 = vmatpush1.msra.mxu0 %v833_v19  ;;  %937 = vmatpush1.msra.mxu1 %v833_v19  ;;  %v1236_v19 = vld [vmem:[#allocation4 + $0x4c8] sm:$0xff] }
  0x96   : > { %857 = vmatprep.subr.mxu0 %v832_v20  ;;  %938 = vmatprep.subr.mxu1 %v832_v20  ;;  %v1235_v20 = vld [vmem:[#allocation4 + $0x4c0] sm:$0xff] }
  0x97   : > { %858 = vmatpush1.msra.mxu0 %v831_v21  ;;  %939 = vmatpush1.msra.mxu1 %v831_v21  ;;  %v1234_v21 = vld [vmem:[#allocation4 + $0x4b8] sm:$0xff] }
  0x98   : > { %859 = vmatprep.subr.mxu0 %v830_v22  ;;  %940 = vmatprep.subr.mxu1 %v830_v22  ;;  %v1233_v22 = vld [vmem:[#allocation4 + $0x4b0] sm:$0xff] }
  0x99   : > { %860 = vmatpush1.msra.mxu0 %v829_v23  ;;  %941 = vmatpush1.msra.mxu1 %v829_v23  ;;  %v1232_v23 = vld [vmem:[#allocation4 + $0x4a8] sm:$0xff] }
  0x9a   : > { %861 = vmatprep.subr.mxu0 %v828_v24  ;;  %942 = vmatprep.subr.mxu1 %v828_v24  ;;  %v1231_v24 = vld [vmem:[#allocation4 + $0x4a0] sm:$0xff] }
  0x9b   : > { %862 = vmatpush1.msra.mxu0 %v827_v25  ;;  %943 = vmatpush1.msra.mxu1 %v827_v25  ;;  %v1230_v25 = vld [vmem:[#allocation4 + $0x498] sm:$0xff] }
  0x9c   : > { %863 = vmatprep.subr.mxu0 %v826_v26  ;;  %944 = vmatprep.subr.mxu1 %v826_v26  ;;  %v1229_v26 = vld [vmem:[#allocation4 + $0x490] sm:$0xff] }
  0x9d   : > { %864 = vmatpush1.msra.mxu0 %v825_v27  ;;  %945 = vmatpush1.msra.mxu1 %v825_v27  ;;  %v1228_v27 = vld [vmem:[#allocation4 + $0x488] sm:$0xff] }
  0x9e   : > { %865 = vmatprep.subr.mxu0 %v824_v28  ;;  %946 = vmatprep.subr.mxu1 %v824_v28  ;;  %v1227_v28 = vld [vmem:[#allocation4 + $0x480] sm:$0xff] }
  0x9f   : > { %866 = vmatpush1.msra.mxu0 %v823_v29  ;;  %947 = vmatpush1.msra.mxu1 %v823_v29  ;;  %v1226_v29 = vld [vmem:[#allocation4 + $0x478] sm:$0xff] }
  0xa0   : > { %867 = vmatprep.subr.mxu0 %v822_v30  ;;  %948 = vmatprep.subr.mxu1 %v822_v30  ;;  %v1225_v30 = vld [vmem:[#allocation4 + $0x470] sm:$0xff] }
  0xa1   : > { %868 = vmatpush1.msra.mxu0 %v821_v31  ;;  %949 = vmatpush1.msra.mxu1 %v821_v31  ;;  %v1224_v31 = vld [vmem:[#allocation4 + $0x468] sm:$0xff] }
  0xa2   : > { %869 = vmatprep.subr.mxu0 %v820_v32  ;;  %950 = vmatprep.subr.mxu1 %v820_v32  ;;  %v1223_v32 = vld [vmem:[#allocation4 + $0x460] sm:$0xff] }
  0xa3   : > { %870 = vmatpush1.msra.mxu0 %v819_v33  ;;  %951 = vmatpush1.msra.mxu1 %v819_v33  ;;  %v1222_v33 = vld [vmem:[#allocation4 + $0x458] sm:$0xff] }
  0xa4   : > { %871 = vmatprep.subr.mxu0 %v818_v35  ;;  %952 = vmatprep.subr.mxu1 %v818_v35  ;;  %v1221_v35 = vld [vmem:[#allocation4 + $0x450] sm:$0xff] }
  0xa5   : > { %872 = vmatpush1.msra.mxu0 %v817_v36  ;;  %953 = vmatpush1.msra.mxu1 %v817_v36  ;;  %v1220_v36 = vld [vmem:[#allocation4 + $0x448] sm:$0xff] }
  0xa6   : > { %873 = vmatprep.subr.mxu0 %v816_v37  ;;  %954 = vmatprep.subr.mxu1 %v816_v37  ;;  %v1219_v37 = vld [vmem:[#allocation4 + $0x440] sm:$0xff] }
  0xa7   : > { %874 = vmatpush1.msra.mxu0 %v815_v38  ;;  %955 = vmatpush1.msra.mxu1 %v815_v38  ;;  %v1218_v38 = vld [vmem:[#allocation4 + $0x438] sm:$0xff] }
  0xa8   : > { %875 = vmatprep.subr.mxu0 %v814_v39  ;;  %956 = vmatprep.subr.mxu1 %v814_v39  ;;  %v1217_v39 = vld [vmem:[#allocation4 + $0x430] sm:$0xff] }
  0xa9   : > { %876 = vmatpush1.msra.mxu0 %v813_v40  ;;  %909 = vmatprep.mubr.f32.mxu0 %v3746_v0 }
  0xaa   : > { %957 = vmatpush1.msra.mxu1 %v813_v40  ;;  %990 = vmatprep.mubr.f32.mxu1 %v3746_v0  ;;  %v1216_v40 = vld [vmem:[#allocation4 + $0x428] sm:$0xff] }
  0xab   : > { %910 = vmatmul.mubr.f32.vlgmr.msra.gmra.mxu0 %v3919_v34  ;;  %991 = vmatmul.mubr.f32.vlgmr.msra.gmra.mxu1 %v3938_v41  ;;  %v1038_v34 = vld [vmem:[#allocation4 + $0x3d0] sm:$0xff] }
  0xac   : > { %1044 = vmatprep.subr.mxu0 %v1043_v42  ;;  %1125 = vmatprep.subr.mxu1 %v1043_v42  ;;  %v1214_v42 = vld [vmem:[#allocation4 + $0x418] sm:$0xff] }
  0xad   : > { %1045 = vmatpush1.msra.mxu0 %v1042_v43  ;;  %1126 = vmatpush1.msra.mxu1 %v1042_v43  ;;  %v1213_v43 = vld [vmem:[#allocation4 + $0x410] sm:$0xff] }
  0xae   : > { %1046 = vmatprep.subr.mxu0 %v1041_v44  ;;  %1127 = vmatprep.subr.mxu1 %v1041_v44  ;;  %v1212_v44 = vld [vmem:[#allocation4 + $0x408] sm:$0xff] }
  0xaf   : > { %915 = vmatprep.mubr.f32.mxu0 %v3746_v0  ;;  %996 = vmatprep.mubr.f32.mxu1 %v3746_v0 }
  0xb0   : > { %1047 = vmatpush1.msra.mxu0 %v1040_v45  ;;  %1128 = vmatpush1.msra.mxu1 %v1040_v45  ;;  %v1211_v45 = vld [vmem:[#allocation4 + $0x400] sm:$0xff] }
  0xb1   : > { %916 = vmatmul.mubr.f32.gmra.mxu0 %v3925_v63  ;;  %997 = vmatmul.mubr.f32.gmra.mxu1 %v3945_v46  ;;  %v1022_v63 = vld [vmem:[#allocation4 + $0x350] sm:$0xff] }
  0xb2   : > { %1048 = vmatprep.subr.mxu0 %v1039_v47  ;;  %1129 = vmatprep.subr.mxu1 %v1039_v47  ;;  %v3080_v47 = vld [vmem:[%s3913_s25 + $0x15] ss:$2 sm:$0x3f] }
  0xb3   : > { %1049 = vmatpush1.msra.mxu0 %v1038_v34  ;;  %1130 = vmatpush1.msra.mxu1 %v1038_v34  ;;  %v1495_v34 = vld [vmem:[#allocation7 + $0x1f8] sm:$0xff] }
  0xb4   : > { %1050 = vmatprep.subr.mxu0 %v1037_v48  ;;  %1131 = vmatprep.subr.mxu1 %v1037_v48  ;;  %v1494_v48 = vld [vmem:[#allocation7 + $0x1f0] sm:$0xff] }
  0xb5   : > { %1051 = vmatpush1.msra.mxu0 %v1036_v49  ;;  %1132 = vmatpush1.msra.mxu1 %v1036_v49  ;;  %v1493_v49 = vld [vmem:[#allocation7 + $0x1e8] sm:$0xff] }
  0xb6   : > { %1052 = vmatprep.subr.mxu0 %v1035_v50  ;;  %1133 = vmatprep.subr.mxu1 %v1035_v50  ;;  %v1492_v50 = vld [vmem:[#allocation7 + $0x1e0] sm:$0xff] }
  0xb7   : > { %1053 = vmatpush1.msra.mxu0 %v1034_v51  ;;  %1134 = vmatpush1.msra.mxu1 %v1034_v51  ;;  %v1491_v51 = vld [vmem:[#allocation7 + $0x1d8] sm:$0xff] }
  0xb8   : > { %1054 = vmatprep.subr.mxu0 %v1033_v52  ;;  %1135 = vmatprep.subr.mxu1 %v1033_v52  ;;  %v1490_v52 = vld [vmem:[#allocation7 + $0x1d0] sm:$0xff] }
  0xb9   : > { %1055 = vmatpush1.msra.mxu0 %v1032_v53  ;;  %1136 = vmatpush1.msra.mxu1 %v1032_v53  ;;  %v1489_v53 = vld [vmem:[#allocation7 + $0x1c8] sm:$0xff] }
  0xba   : > { %1056 = vmatprep.subr.mxu0 %v1031_v54  ;;  %1137 = vmatprep.subr.mxu1 %v1031_v54  ;;  %v1488_v54 = vld [vmem:[#allocation7 + $0x1c0] sm:$0xff] }
  0xbb   : > { %1057 = vmatpush1.msra.mxu0 %v1030_v55  ;;  %1138 = vmatpush1.msra.mxu1 %v1030_v55  ;;  %v1487_v55 = vld [vmem:[#allocation7 + $0x1b8] sm:$0xff] }
  0xbc   : > { %1058 = vmatprep.subr.mxu0 %v1029_v56  ;;  %1139 = vmatprep.subr.mxu1 %v1029_v56  ;;  %v1486_v56 = vld [vmem:[#allocation7 + $0x1b0] sm:$0xff] }
  0xbd   : > { %1059 = vmatpush1.msra.mxu0 %v1028_v57  ;;  %1140 = vmatpush1.msra.mxu1 %v1028_v57  ;;  %v1485_v57 = vld [vmem:[#allocation7 + $0x1a8] sm:$0xff] }
  0xbe   : > { %1060 = vmatprep.subr.mxu0 %v1027_v58  ;;  %1141 = vmatprep.subr.mxu1 %v1027_v58  ;;  %v1484_v58 = vld [vmem:[#allocation7 + $0x1a0] sm:$0xff] }
  0xbf   : > { %1061 = vmatpush1.msra.mxu0 %v1026_v59  ;;  %1142 = vmatpush1.msra.mxu1 %v1026_v59  ;;  %v1483_v59 = vld [vmem:[#allocation7 + $0x198] sm:$0xff] }
  0xc0   : > { %1062 = vmatprep.subr.mxu0 %v1025_v60  ;;  %1143 = vmatprep.subr.mxu1 %v1025_v60  ;;  %v1482_v60 = vld [vmem:[#allocation7 + $0x190] sm:$0xff] }
  0xc1   : > { %1063 = vmatpush1.msra.mxu0 %v1024_v61  ;;  %1144 = vmatpush1.msra.mxu1 %v1024_v61  ;;  %v1481_v61 = vld [vmem:[#allocation7 + $0x188] sm:$0xff] }
  0xc2   : > { %1064 = vmatprep.subr.mxu0 %v1023_v62  ;;  %1145 = vmatprep.subr.mxu1 %v1023_v62  ;;  %v1480_v62 = vld [vmem:[#allocation7 + $0x180] sm:$0xff] }
  0xc3   : > { %1065 = vmatpush1.msra.mxu0 %v1022_v63  ;;  %1146 = vmatpush1.msra.mxu1 %v1022_v63  ;;  %v1479_v63 = vld [vmem:[#allocation7 + $0x178] sm:$0xff] }
  0xc4   : > { %1066 = vmatprep.subr.mxu0 %v1021_v1  ;;  %1147 = vmatprep.subr.mxu1 %v1021_v1  ;;  %v1478_v1 = vld [vmem:[#allocation7 + $0x170] sm:$0xff] }
  0xc5   : > { %1067 = vmatpush1.msra.mxu0 %v1020_v2  ;;  %1148 = vmatpush1.msra.mxu1 %v1020_v2  ;;  %v1477_v2 = vld [vmem:[#allocation7 + $0x168] sm:$0xff] }
  0xc6   : > { %1068 = vmatprep.subr.mxu0 %v1019_v3  ;;  %1149 = vmatprep.subr.mxu1 %v1019_v3  ;;  %v1476_v3 = vld [vmem:[#allocation7 + $0x160] sm:$0xff] }
  0xc7   : > { %1069 = vmatpush1.msra.mxu0 %v1018_v4  ;;  %1150 = vmatpush1.msra.mxu1 %v1018_v4  ;;  %v1475_v4 = vld [vmem:[#allocation7 + $0x158] sm:$0xff] }
  0xc8   : > { %1070 = vmatprep.subr.mxu0 %v1017_v5  ;;  %1151 = vmatprep.subr.mxu1 %v1017_v5  ;;  %v1474_v5 = vld [vmem:[#allocation7 + $0x150] sm:$0xff] }
  0xc9   : > { %1071 = vmatpush1.msra.mxu0 %v1016_v6  ;;  %1152 = vmatpush1.msra.mxu1 %v1016_v6  ;;  %v1473_v6 = vld [vmem:[#allocation7 + $0x148] sm:$0xff] }
  0xca   : > { %1072 = vmatprep.subr.mxu0 %v1015_v7  ;;  %1153 = vmatprep.subr.mxu1 %v1015_v7  ;;  %v1472_v7 = vld [vmem:[#allocation7 + $0x140] sm:$0xff] }
  0xcb   : > { %1073 = vmatpush1.msra.mxu0 %v1014_v8  ;;  %1154 = vmatpush1.msra.mxu1 %v1014_v8  ;;  %v1471_v8 = vld [vmem:[#allocation7 + $0x138] sm:$0xff] }
  0xcc   : > { %1074 = vmatprep.subr.mxu0 %v1013_v9  ;;  %1155 = vmatprep.subr.mxu1 %v1013_v9  ;;  %v1470_v9 = vld [vmem:[#allocation7 + $0x130] sm:$0xff] }
  0xcd   : > { %1075 = vmatpush1.msra.mxu0 %v1012_v10  ;;  %1108 = vmatprep.mubr.f32.mxu0 %v3746_v0 }
  0xce   : > { %1156 = vmatpush1.msra.mxu1 %v1012_v10  ;;  %1189 = vmatprep.mubr.f32.mxu1 %v3746_v0  ;;  %v1469_v10 = vld [vmem:[#allocation7 + $0x128] sm:$0xff] }
  0xcf   : > { %1109 = vmatmul.mubr.f32.vlgmr.msra.gmra.mxu0 %v3938_v41  ;;  %1190 = vmatmul.mubr.f32.vlgmr.msra.gmra.mxu1 %v3952_v11  ;;  %v1215_v41 = vld [vmem:[#allocation4 + $0x420] sm:$0xff] }
  0xd0   : > { %1243 = vmatprep.subr.mxu0 %v1242_v12  ;;  %1324 = vmatprep.subr.mxu1 %v1242_v12  ;;  %v1467_v12 = vld [vmem:[#allocation7 + $0x118] sm:$0xff] }
  0xd1   : > { %1244 = vmatpush1.msra.mxu0 %v1241_v13  ;;  %1325 = vmatpush1.msra.mxu1 %v1241_v13  ;;  %v1466_v13 = vld [vmem:[#allocation7 + $0x110] sm:$0xff] }
  0xd2   : > { %1245 = vmatprep.subr.mxu0 %v1240_v14  ;;  %1326 = vmatprep.subr.mxu1 %v1240_v14  ;;  %v1465_v14 = vld [vmem:[#allocation7 + $0x108] sm:$0xff] }
  0xd3   : > { %1114 = vmatprep.mubr.f32.mxu0 %v3746_v0  ;;  %1195 = vmatprep.mubr.f32.mxu1 %v3746_v0 }
  0xd4   : > { %1246 = vmatpush1.msra.mxu0 %v1239_v15  ;;  %1327 = vmatpush1.msra.mxu1 %v1239_v15  ;;  %v1464_v15 = vld [vmem:[#allocation7 + $0x100] sm:$0xff] }
  0xd5   : > { %1115 = vmatmul.mubr.f32.gmra.mxu0 %v3945_v46  ;;  %1196 = vmatmul.mubr.f32.gmra.mxu1 %v3959_v16  ;;  %v3079_v46 = vld [vmem:[%s3913_s25 + $0x5] ss:$2 sm:$0xff]  ;;  %s3147_s25 = sshll.u32 %s3830_s21, 4  ;;  %s3673_s21 = sshll.u32 %s3748_s29, 4  ;;  %s3674_s21 = int_to_ptr.vmem [resolvable:$false] %s3673_s21 }
  0xd6   : > { %1247 = vmatprep.subr.mxu0 %v1238_v17  ;;  %1328 = vmatprep.subr.mxu1 %v1238_v17  ;;  %s4433_s14 = scalar_lea.hbm %s4479_s11, %s3147_s25  ;;  %s3675_s15 = scalar_lea.vmem %s3674_s21, 32 }
  0xd7   : > { %1248 = vmatpush1.msra.mxu0 %v1237_v18  ;;  %1329 = vmatpush1.msra.mxu1 %v1237_v18  ;;  %p3676_p7 = scmp.lt.s32.totalorder %s2973_s24, %s3674_s21  ;;  %p3677_p8 = scmp.lt.s32.totalorder %s3675_s15, %s3669_s19 }
  0xd8   : > { %1249 = vmatprep.subr.mxu0 %v1236_v19  ;;  %1330 = vmatprep.subr.mxu1 %v1236_v19 }
  0xd9   : > { %1250 = vmatpush1.msra.mxu0 %v1235_v20  ;;  %1331 = vmatpush1.msra.mxu1 %v1235_v20  ;;  %p3678_p11 = por %p3677_p8, %p3676_p7 }
  0xda   : > { %1251 = vmatprep.subr.mxu0 %v1234_v21  ;;  %1332 = vmatprep.subr.mxu1 %v1234_v21 }
  0xdb   : > { %1252 = vmatpush1.msra.mxu0 %v1233_v22  ;;  %1333 = vmatpush1.msra.mxu1 %v1233_v22  ;;  %p3679_p0 = pnand %p3678_p11, %p3672_p4 }
  0xdc   : > { %1253 = vmatprep.subr.mxu0 %v1232_v23  ;;  %1334 = vmatprep.subr.mxu1 %v1232_v23 }
  0xdd   : > { %1254 = vmatpush1.msra.mxu0 %v1231_v24  ;;  %1335 = vmatpush1.msra.mxu1 %v1231_v24 }
  0xde   : > { %1255 = vmatprep.subr.mxu0 %v1230_v25  ;;  %1336 = vmatprep.subr.mxu1 %v1230_v25 }
  0xdf   : > { %1256 = vmatpush1.msra.mxu0 %v1229_v26  ;;  %1337 = vmatpush1.msra.mxu1 %v1229_v26 }
  0xe0   : > { %1257 = vmatprep.subr.mxu0 %v1228_v27  ;;  %1338 = vmatprep.subr.mxu1 %v1228_v27 }
  0xe1   : > { %1258 = vmatpush1.msra.mxu0 %v1227_v28  ;;  %1339 = vmatpush1.msra.mxu1 %v1227_v28 }
  0xe2   : > { %1259 = vmatprep.subr.mxu0 %v1226_v29  ;;  %1340 = vmatprep.subr.mxu1 %v1226_v29 }
  0xe3   : > { %1260 = vmatpush1.msra.mxu0 %v1225_v30  ;;  %1341 = vmatpush1.msra.mxu1 %v1225_v30 }
  0xe4   : > { %1261 = vmatprep.subr.mxu0 %v1224_v31  ;;  %1342 = vmatprep.subr.mxu1 %v1224_v31 }
  0xe5   : > { %1262 = vmatpush1.msra.mxu0 %v1223_v32  ;;  %1343 = vmatpush1.msra.mxu1 %v1223_v32 }
  0xe6   : > { %1263 = vmatprep.subr.mxu0 %v1222_v33  ;;  %1344 = vmatprep.subr.mxu1 %v1222_v33 }
  0xe7   : > { %1264 = vmatpush1.msra.mxu0 %v1221_v35  ;;  %1345 = vmatpush1.msra.mxu1 %v1221_v35 }
  0xe8   : > { %1265 = vmatprep.subr.mxu0 %v1220_v36  ;;  %1346 = vmatprep.subr.mxu1 %v1220_v36 }
  0xe9   : > { %1266 = vmatpush1.msra.mxu0 %v1219_v37  ;;  %1347 = vmatpush1.msra.mxu1 %v1219_v37 }
  0xea   : > { %1267 = vmatprep.subr.mxu0 %v1218_v38  ;;  %1348 = vmatprep.subr.mxu1 %v1218_v38 }
  0xeb   : > { %1268 = vmatpush1.msra.mxu0 %v1217_v39  ;;  %1349 = vmatpush1.msra.mxu1 %v1217_v39 }
  0xec   : > { %1269 = vmatprep.subr.mxu0 %v1216_v40  ;;  %1350 = vmatprep.subr.mxu1 %v1216_v40 }
  0xed   : > { %1270 = vmatpush1.msra.mxu0 %v1215_v41  ;;  %1351 = vmatpush1.msra.mxu1 %v1215_v41 }
  0xee   : > { %1271 = vmatprep.subr.mxu0 %v1214_v42  ;;  %1352 = vmatprep.subr.mxu1 %v1214_v42 }
  0xef   : > { %1272 = vmatpush1.msra.mxu0 %v1213_v43  ;;  %1353 = vmatpush1.msra.mxu1 %v1213_v43 }
  0xf0   : > { %1273 = vmatprep.subr.mxu0 %v1212_v44  ;;  %1354 = vmatprep.subr.mxu1 %v1212_v44 }
  0xf1   : > { %1274 = vmatpush1.msra.mxu0 %v1211_v45  ;;  %1307 = vmatprep.mubr.f32.mxu0 %v3746_v0 }
  0xf2   : > { %1355 = vmatpush1.msra.mxu1 %v1211_v45  ;;  %1388 = vmatprep.mubr.f32.mxu1 %v3746_v0 }
  0xf3   : > { %1308 = vmatmul.mubr.f32.vlgmr.msra.gmra.mxu0 %v3952_v11  ;;  %1389 = vmatmul.mubr.f32.vlgmr.msra.gmra.mxu1 %v3079_v46  ;;  %v1468_v11 = vld [vmem:[#allocation7 + $0x120] sm:$0xff] }
  0xf4   : > { %1313 = vmatprep.mubr.f32.mxu0 %v3746_v0  ;;  %1394 = vmatprep.mubr.f32.mxu1 %v3746_v0 }
  0xf5   : > { %1496 = vmatprep.subr.mxu0 %v1495_v34  ;;  %1569 = vmatprep.subr.mxu1 %v1495_v34 }
  0xf6   : > { %1497 = vmatpush1.msra.mxu0 %v1494_v48  ;;  %1570 = vmatpush1.msra.mxu1 %v1494_v48 }
  0xf7   : > { %1314 = vmatmul.mubr.f32.gmra.mxu0 %v3959_v16  ;;  %1395 = vmatmul.mubr.f32.gmra.mxu1 %v3080_v47  ;;  %v1459_v16 = vld [vmem:[#allocation7 + $0xf8] sm:$0xff] }
  0xf8   : > { %1560 = vmatprep.mubr.f32.mxu0 %v3746_v0  ;;  %1633 = vmatprep.mubr.f32.mxu1 %v3746_v0 }
  0xf9   : > { %1498 = vmatprep.subr.mxu0 %v1493_v49  ;;  %1571 = vmatprep.subr.mxu1 %v1493_v49 }
  0xfa   : > { %1499 = vmatpush1.msra.mxu0 %v1492_v50  ;;  %1572 = vmatpush1.msra.mxu1 %v1492_v50 }
  0xfb   : > { %1500 = vmatprep.subr.mxu0 %v1491_v51  ;;  %1573 = vmatprep.subr.mxu1 %v1491_v51 }
  0xfc   : > { %1501 = vmatpush1.msra.mxu0 %v1490_v52  ;;  %1574 = vmatpush1.msra.mxu1 %v1490_v52 }
  0xfd   : > { %1502 = vmatprep.subr.mxu0 %v1489_v53  ;;  %1575 = vmatprep.subr.mxu1 %v1489_v53 }
  0xfe   : > { %1503 = vmatpush1.msra.mxu0 %v1488_v54  ;;  %1576 = vmatpush1.msra.mxu1 %v1488_v54 }
  0xff   : > { %1504 = vmatprep.subr.mxu0 %v1487_v55  ;;  %1577 = vmatprep.subr.mxu1 %v1487_v55 }
 0x100   : > { %1505 = vmatpush1.msra.mxu0 %v1486_v56  ;;  %1578 = vmatpush1.msra.mxu1 %v1486_v56 }
 0x101   : > { %1506 = vmatprep.subr.mxu0 %v1485_v57  ;;  %1579 = vmatprep.subr.mxu1 %v1485_v57 }
 0x102   : > { %1507 = vmatpush1.msra.mxu0 %v1484_v58  ;;  %1580 = vmatpush1.msra.mxu1 %v1484_v58 }
 0x103   : > { %1508 = vmatprep.subr.mxu0 %v1483_v59  ;;  %1581 = vmatprep.subr.mxu1 %v1483_v59 }
 0x104   : > { %1509 = vmatpush1.msra.mxu0 %v1482_v60  ;;  %1582 = vmatpush1.msra.mxu1 %v1482_v60 }
 0x105   : > { %1510 = vmatprep.subr.mxu0 %v1481_v61  ;;  %1583 = vmatprep.subr.mxu1 %v1481_v61 }
 0x106   : > { %1511 = vmatpush1.msra.mxu0 %v1480_v62  ;;  %1584 = vmatpush1.msra.mxu1 %v1480_v62 }
 0x107   : > { %1512 = vmatprep.subr.mxu0 %v1479_v63  ;;  %1585 = vmatprep.subr.mxu1 %v1479_v63 }
 0x108   : > { %1513 = vmatpush1.msra.mxu0 %v1478_v1  ;;  %1586 = vmatpush1.msra.mxu1 %v1478_v1 }
 0x109   : > { %1514 = vmatprep.subr.mxu0 %v1477_v2  ;;  %1587 = vmatprep.subr.mxu1 %v1477_v2 }
 0x10a   : > { %1515 = vmatpush1.msra.mxu0 %v1476_v3  ;;  %1588 = vmatpush1.msra.mxu1 %v1476_v3 }
 0x10b   : > { %1516 = vmatprep.subr.mxu0 %v1475_v4  ;;  %1589 = vmatprep.subr.mxu1 %v1475_v4 }
 0x10c   : > { %1517 = vmatpush1.msra.mxu0 %v1474_v5  ;;  %1590 = vmatpush1.msra.mxu1 %v1474_v5 }
 0x10d   : > { %1518 = vmatprep.subr.mxu0 %v1473_v6  ;;  %1591 = vmatprep.subr.mxu1 %v1473_v6 }
 0x10e   : > { %1519 = vmatpush1.msra.mxu0 %v1472_v7  ;;  %1592 = vmatpush1.msra.mxu1 %v1472_v7 }
 0x10f   : > { %1520 = vmatprep.subr.mxu0 %v1471_v8  ;;  %1593 = vmatprep.subr.mxu1 %v1471_v8 }
 0x110   : > { %1521 = vmatpush1.msra.mxu0 %v1470_v9  ;;  %1594 = vmatpush1.msra.mxu1 %v1470_v9 }
 0x111   : > { %1522 = vmatprep.subr.mxu0 %v1469_v10  ;;  %1595 = vmatprep.subr.mxu1 %v1469_v10 }
 0x112   : > { %1523 = vmatpush1.msra.mxu0 %v1468_v11  ;;  %1596 = vmatpush1.msra.mxu1 %v1468_v11 }
 0x113   : > { %1524 = vmatprep.subr.mxu0 %v1467_v12  ;;  %1597 = vmatprep.subr.mxu1 %v1467_v12 }
 0x114   : > { %1525 = vmatpush1.msra.mxu0 %v1466_v13  ;;  %1598 = vmatpush1.msra.mxu1 %v1466_v13 }
 0x115   : > { %1526 = vmatprep.subr.mxu0 %v1465_v14  ;;  %1599 = vmatprep.subr.mxu1 %v1465_v14 }
 0x116   : > { %1527 = vmatpush1.msra.mxu0 %v1464_v15  ;;  %1600 = vmatpush1.msra.mxu1 %v1464_v15 }
 0x117   : > { %1640 = vmatprep.subr.mxu0 %v1459_v16  ;;  %1711 = vmatprep.subr.mxu1 %v1459_v16 }
 0x123   : > { %v566_v17 = vpop.f32.mrf.mxu0  ;;  %v647_v18 = vpop.f32.mrf.mxu1 }
 0x125   : > { %v568_v19 = vpop.f32.mrf.mxu0  ;;  %v649_v20 = vpop.f32.mrf.mxu1 }
 0x140   : > { %v572_v21 = vpop.f32.mrf.mxu0  ;;  %v653_v22 = vpop.f32.mrf.mxu1 }
 0x142   : > { %v574_v23 = vpop.f32.mrf.mxu0  ;;  %v655_v24 = vpop.f32.mrf.mxu1 }
 0x147   : > { %v724_v25 = vpop.f32.mrf.mxu0  ;;  %v801_v26 = vpop.f32.mrf.mxu1 }
 0x148   : > { %v725_v34 = vadd.f32 %v724_v25, %v566_v17  ;;  %v802_v48 = vadd.f32 %v801_v26, %v647_v18 }
 0x149   : > { %v726_v27 = vpop.f32.mrf.mxu0  ;;  %v803_v28 = vpop.f32.mrf.mxu1 }
 0x14a   : > { %v727_v49 = vadd.f32 %v726_v27, %v568_v19  ;;  %v804_v50 = vadd.f32 %v803_v28, %v649_v20 }
 0x14d   : > { %v730_v29 = vpop.f32.mrf.mxu0  ;;  %v807_v30 = vpop.f32.mrf.mxu1 }
 0x14e   : > { %v731_v53 = vadd.f32 %v730_v29, %v572_v21  ;;  %v808_v54 = vadd.f32 %v807_v30, %v653_v22 }
 0x14f   : > { %v732_v31 = vpop.f32.mrf.mxu0  ;;  %v809_v32 = vpop.f32.mrf.mxu1 }
 0x150   : > { %v733_v61 = vadd.f32 %v732_v31, %v574_v23  ;;  %v810_v62 = vadd.f32 %v809_v32, %v655_v24  ;;  %v3081_v24 = vld [vmem:[%s4470_s2] ss:$0 sm:$0xff] }
 0x16b   : > { %v911_v33 = vpop.f32.mrf.mxu0  ;;  %v992_v35 = vpop.f32.mrf.mxu1 }
 0x16c   : > { %v1003_v51 = vadd.f32 %v911_v33, %v725_v34  ;;  %v1007_v52 = vadd.f32 %v992_v35, %v802_v48  ;;  %v1450_v34 = vld [vmem:[#allocation7 + $0xb0] sm:$0xff]  ;;  %v1449_v48 = vld [vmem:[#allocation7 + $0xa8] sm:$0xff] }
 0x16d   : > { %v913_v36 = vpop.f32.mrf.mxu0  ;;  %v994_v37 = vpop.f32.mrf.mxu1 }
 0x16e   : > { %v1004_v57 = vadd.f32 %v913_v36, %v727_v49  ;;  %v1008_v58 = vadd.f32 %v994_v37, %v804_v50  ;;  %v1448_v49 = vld [vmem:[#allocation7 + $0xa0] sm:$0xff]  ;;  %v1447_v50 = vld [vmem:[#allocation7 + $0x98] sm:$0xff] }
 0x171   : > { %v917_v38 = vpop.f32.mrf.mxu0  ;;  %v998_v39 = vpop.f32.mrf.mxu1 }
 0x172   : > { %v1005_v63 = vadd.f32 %v917_v38, %v731_v53  ;;  %v1009_v1 = vadd.f32 %v998_v39, %v808_v54  ;;  %v1458_v38 = vld [vmem:[#allocation7 + $0xf0] sm:$0xff]  ;;  %v1457_v39 = vld [vmem:[#allocation7 + $0xe8] sm:$0xff]  ;;  %v1444_v53 = vld [vmem:[#allocation7 + $0x80] sm:$0xff] }
 0x173   : > { %v919_v40 = vpop.f32.mrf.mxu0  ;;  %v1000_v41 = vpop.f32.mrf.mxu1  ;;  %v1443_v54 = vld [vmem:[#allocation7 + $0x78] sm:$0xff] }
 0x174   : > { %v1006_v8 = vadd.f32 %v919_v40, %v733_v61  ;;  %v1010_v9 = vadd.f32 %v1000_v41, %v810_v62  ;;  %v1436_v61 = vld [vmem:[#allocation7 + $0x40] sm:$0xff]  ;;  %v1435_v62 = vld [vmem:[#allocation7 + $0x38] sm:$0xff] }
 0x18f   : > { %v1110_v42 = vpop.f32.mrf.mxu0  ;;  %v1191_v43 = vpop.f32.mrf.mxu1 }
 0x190   : > { %v1202_v59 = vadd.f32 %v1110_v42, %v1003_v51  ;;  %v1206_v60 = vadd.f32 %v1191_v43, %v1007_v52  ;;  %v1456_v42 = vld [vmem:[#allocation7 + $0xe0] sm:$0xff]  ;;  %v1455_v43 = vld [vmem:[#allocation7 + $0xd8] sm:$0xff]  ;;  %v1446_v51 = vld [vmem:[#allocation7 + $0x90] sm:$0xff] }
 0x191   : > { %v1112_v44 = vpop.f32.mrf.mxu0  ;;  %v1193_v45 = vpop.f32.mrf.mxu1  ;;  %v1445_v52 = vld [vmem:[#allocation7 + $0x88] sm:$0xff] }
 0x192   : > { %v1203_v4 = vadd.f32 %v1112_v44, %v1004_v57  ;;  %v1207_v5 = vadd.f32 %v1193_v45, %v1008_v58  ;;  %v1454_v44 = vld [vmem:[#allocation7 + $0xd0] sm:$0xff]  ;;  %v1453_v45 = vld [vmem:[#allocation7 + $0xc8] sm:$0xff]  ;;  %v1440_v57 = vld [vmem:[#allocation7 + $0x60] sm:$0xff] }
 0x193   : > { %v1439_v58 = vld [vmem:[#allocation7 + $0x58] sm:$0xff] }
 0x195   : > { %v1116_v46 = vpop.f32.mrf.mxu0  ;;  %v1197_v47 = vpop.f32.mrf.mxu1 }
 0x196   : > { %v1204_v12 = vadd.f32 %v1116_v46, %v1005_v63  ;;  %v1208_v13 = vadd.f32 %v1197_v47, %v1009_v1  ;;  %v1452_v46 = vld [vmem:[#allocation7 + $0xc0] sm:$0xff]  ;;  %v1451_v47 = vld [vmem:[#allocation7 + $0xb8] sm:$0xff]  ;;  %v1434_v63 = vld [vmem:[#allocation7 + $0x30] sm:$0xff] }
 0x197   : > { %v1118_v55 = vpop.f32.mrf.mxu0  ;;  %v1199_v56 = vpop.f32.mrf.mxu1  ;;  %v1433_v1 = vld [vmem:[#allocation7 + $0x28] sm:$0xff] }
 0x198   : > { %v1205_v16 = vadd.f32 %v1118_v55, %v1006_v8  ;;  %v1209_v17 = vadd.f32 %v1199_v56, %v1010_v9  ;;  %v1442_v55 = vld [vmem:[#allocation7 + $0x70] sm:$0xff]  ;;  %v1441_v56 = vld [vmem:[#allocation7 + $0x68] sm:$0xff] }
 0x199   : > { %v1813_v9 = vld [vmem:[#allocation7 + $0x2f0] sm:$0xff] }
 0x1b3   : > { %v1309_v2 = vpop.f32.mrf.mxu0  ;;  %v1390_v3 = vpop.f32.mrf.mxu1 }
 0x1b4   : > { %v1401_v6 = vadd.f32 %v1309_v2, %v1202_v59  ;;  %v1405_v7 = vadd.f32 %v1390_v3, %v1206_v60  ;;  %v1438_v59 = vld [vmem:[#allocation7 + $0x50] sm:$0xff]  ;;  %v1437_v60 = vld [vmem:[#allocation7 + $0x48] sm:$0xff]  ;;  %v1432_v2 = vld [vmem:[#allocation7 + $0x20] sm:$0xff] }
 0x1b5   : > { %v1311_v10 = vpop.f32.mrf.mxu0  ;;  %v1392_v11 = vpop.f32.mrf.mxu1  ;;  %v1431_v3 = vld [vmem:[#allocation7 + $0x18] sm:$0xff] }
 0x1b6   : > { %v1402_v14 = vadd.f32 %v1311_v10, %v1203_v4  ;;  %v1406_v15 = vadd.f32 %v1392_v11, %v1207_v5  ;;  %v1409_v20 = vmax.f32 %v1401_v6, %v1405_v7  ;;  %v1430_v4 = vld [vmem:[#allocation7 + $0x10] sm:$0xff]  ;;  %v1429_v5 = vld [vmem:[#allocation7 + $0x8] sm:$0xff]  ;;  %v1428_v6 = vld [vmem:[#allocation7] sm:$0xff] }
 0x1b7   : > { %v1315_v18 = vpop.f32.mrf.mxu0  ;;  %v1396_v19 = vpop.f32.mrf.mxu1  ;;  %v1814_v7 = vld [vmem:[#allocation7 + $0x2f8] sm:$0xff]  ;;  %v1812_v10 = vld [vmem:[#allocation7 + $0x2e8] sm:$0xff]  ;;  %v1811_v11 = vld [vmem:[#allocation7 + $0x2e0] sm:$0xff] }
 0x1b8   : > { %v1410_v21 = vmax.f32 %v1402_v14, %v1406_v15  ;;  %v1403_v22 = vadd.f32 %v1315_v18, %v1204_v12  ;;  %v1407_v23 = vadd.f32 %v1396_v19, %v1208_v13  ;;  %v1810_v12 = vld [vmem:[#allocation7 + $0x2d8] sm:$0xff]  ;;  %v1809_v13 = vld [vmem:[#allocation7 + $0x2d0] sm:$0xff]  ;;  %v1808_v14 = vld [vmem:[#allocation7 + $0x2c8] sm:$0xff] }
 0x1b9   : > { %v1317_v25 = vpop.f32.mrf.mxu0  ;;  %v1398_v26 = vpop.f32.mrf.mxu1  ;;  %v1807_v15 = vld [vmem:[#allocation7 + $0x2c0] sm:$0xff]  ;;  %v1804_v18 = vld [vmem:[#allocation7 + $0x2a8] sm:$0xff] }
 0x1ba   : > { %v1413_v27 = vmax.f32 %v1409_v20, %v1410_v21  ;;  %v1404_v28 = vadd.f32 %v1317_v25, %v1205_v16  ;;  %v1408_v29 = vadd.f32 %v1398_v26, %v1209_v17  ;;  %v1411_v31 = vmax.f32 %v1403_v22, %v1407_v23  ;;  %v1806_v16 = vld [vmem:[#allocation7 + $0x2b8] sm:$0xff]  ;;  %v1805_v17 = vld [vmem:[#allocation7 + $0x2b0] sm:$0xff]  ;;  %v1803_v19 = vld [vmem:[#allocation7 + $0x2a0] sm:$0xff] }
 0x1bb   : > { %v1802_v20 = vld [vmem:[#allocation7 + $0x298] sm:$0xff]  ;;  %v1801_v21 = vld [vmem:[#allocation7 + $0x290] sm:$0xff]  ;;  %v1800_v22 = vld [vmem:[#allocation7 + $0x288] sm:$0xff] }
 0x1bc   : > { %v1422_v30 = vadd.f32 %v3081_v24, %v1413_v27  ;;  %v1412_v32 = vmax.f32 %v1404_v28, %v1408_v29  ;;  %v1799_v23 = vld [vmem:[#allocation7 + $0x280] sm:$0xff]  ;;  %v1797_v25 = vld [vmem:[#allocation7 + $0x270] sm:$0xff]  ;;  %v1796_v26 = vld [vmem:[#allocation7 + $0x268] sm:$0xff] }
 0x1bd   : > { %v1795_v27 = vld [vmem:[#allocation7 + $0x260] sm:$0xff]  ;;  %v1794_v28 = vld [vmem:[#allocation7 + $0x258] sm:$0xff]  ;;  %v1793_v29 = vld [vmem:[#allocation7 + $0x250] sm:$0xff] }
 0x1be   : > { %v1424_v33 = vmax.f32 %v1422_v30, 0.0  ;;  %v1414_v35 = vmax.f32 %v1411_v31, %v1412_v32  ;;  %v1792_v30 = vld [vmem:[#allocation7 + $0x248] sm:$0xff]  ;;  %v1791_v31 = vld [vmem:[#allocation7 + $0x240] sm:$0xff]  ;;  %v1790_v32 = vld [vmem:[#allocation7 + $0x238] sm:$0xff] }
 0x1c0   : > { %1426 = vst [vmem:[#allocation2] sm:$0xff] %v1424_v33  ;;  %v1423_v36 = vadd.f32 %v3081_v24, %v1414_v35  ;;  %v1798_v24 = vld [vmem:[#allocation7 + $0x278] sm:$0xff]  ;;  %v1789_v33 = vld [vmem:[#allocation7 + $0x230] sm:$0xff]  ;;  %v1788_v35 = vld [vmem:[#allocation7 + $0x228] sm:$0xff] }
 0x1c2   : > { %v1425_v37 = vmax.f32 %v1423_v36, 0.0  ;;  %v1787_v36 = vld [vmem:[#allocation7 + $0x220] sm:$0xff] }
 0x1c4   : > { %1427 = vst [vmem:[#allocation2 + $0x8] sm:$0x3f] %v1425_v37  ;;  %v1786_v37 = vld [vmem:[#allocation7 + $0x218] sm:$0xff] }
 0x1cb   : > { %v3978_v40 = vld [vmem:[#allocation2 + $0x1] ss:$2 sm:$0x1f]  ;;  %v3980_v41 = vld [vmem:[#allocation2 + $0x2] ss:$2 sm:$0x1f] }
 0x1cc   : > { %1561 = vmatmul.mubr.f32.vlgmr.msra.gmra.mxu0 %v3978_v40  ;;  %1634 = vmatmul.mubr.f32.vlgmr.msra.gmra.mxu1 %v3980_v41  ;;  %v1460_v8 = vld [vmem:[#allocation2] ss:$2 sm:$0x1f] }
 0x1cd   : > { %1641 = vmatpush1.msra.mxu0 %v1458_v38  ;;  %1712 = vmatpush1.msra.mxu1 %v1458_v38  ;;  %v1785_v38 = vld [vmem:[#allocation7 + $0x210] sm:$0xff] }
 0x1ce   : > { %1642 = vmatprep.subr.mxu0 %v1457_v39  ;;  %1713 = vmatprep.subr.mxu1 %v1457_v39  ;;  %v1784_v39 = vld [vmem:[#allocation7 + $0x208] sm:$0xff] }
 0x1cf   : > { %1643 = vmatpush1.msra.mxu0 %v1456_v42  ;;  %1714 = vmatpush1.msra.mxu1 %v1456_v42  ;;  %v1995_v42 = vld [vmem:[#allocation7 + $0x3f8] sm:$0xff] }
 0x1d0   : > { %1644 = vmatprep.subr.mxu0 %v1455_v43  ;;  %1715 = vmatprep.subr.mxu1 %v1455_v43  ;;  %v3989_v43 = vld [vmem:[#allocation2 + $0x3] ss:$2 sm:$0x1f] }
 0x1d1   : > { %1645 = vmatpush1.msra.mxu0 %v1454_v44  ;;  %1716 = vmatpush1.msra.mxu1 %v1454_v44  ;;  %v1994_v44 = vld [vmem:[#allocation7 + $0x3f0] sm:$0xff] }
 0x1d2   : > { %1646 = vmatprep.subr.mxu0 %v1453_v45  ;;  %1717 = vmatprep.subr.mxu1 %v1453_v45  ;;  %v1993_v45 = vld [vmem:[#allocation7 + $0x3e8] sm:$0xff] }
 0x1d3   : > { %1647 = vmatpush1.msra.mxu0 %v1452_v46  ;;  %1718 = vmatpush1.msra.mxu1 %v1452_v46  ;;  %v1992_v46 = vld [vmem:[#allocation7 + $0x3e0] sm:$0xff] }
 0x1d4   : > { %1648 = vmatprep.subr.mxu0 %v1451_v47  ;;  %1719 = vmatprep.subr.mxu1 %v1451_v47  ;;  %v1991_v47 = vld [vmem:[#allocation7 + $0x3d8] sm:$0xff] }
 0x1d5   : > { %1649 = vmatpush1.msra.mxu0 %v1450_v34  ;;  %1720 = vmatpush1.msra.mxu1 %v1450_v34  ;;  %v1990_v34 = vld [vmem:[#allocation7 + $0x3d0] sm:$0xff] }
 0x1d6   : > { %1650 = vmatprep.subr.mxu0 %v1449_v48  ;;  %1721 = vmatprep.subr.mxu1 %v1449_v48  ;;  %v1989_v48 = vld [vmem:[#allocation7 + $0x3c8] sm:$0xff] }
 0x1d7   : > { %1651 = vmatpush1.msra.mxu0 %v1448_v49  ;;  %1722 = vmatpush1.msra.mxu1 %v1448_v49  ;;  %v1988_v49 = vld [vmem:[#allocation7 + $0x3c0] sm:$0xff] }
 0x1d8   : > { %1652 = vmatprep.subr.mxu0 %v1447_v50  ;;  %1723 = vmatprep.subr.mxu1 %v1447_v50  ;;  %v1986_v50 = vld [vmem:[#allocation7 + $0x3b0] sm:$0xff] }
 0x1d9   : > { %1653 = vmatpush1.msra.mxu0 %v1446_v51  ;;  %1724 = vmatpush1.msra.mxu1 %v1446_v51  ;;  %v1985_v51 = vld [vmem:[#allocation7 + $0x3a8] sm:$0xff] }
 0x1da   : > { %1654 = vmatprep.subr.mxu0 %v1445_v52  ;;  %1725 = vmatprep.subr.mxu1 %v1445_v52  ;;  %v1984_v52 = vld [vmem:[#allocation7 + $0x3a0] sm:$0xff] }
 0x1db   : > { %1655 = vmatpush1.msra.mxu0 %v1444_v53  ;;  %1726 = vmatpush1.msra.mxu1 %v1444_v53  ;;  %v1983_v53 = vld [vmem:[#allocation7 + $0x398] sm:$0xff] }
 0x1dc   : > { %1656 = vmatprep.subr.mxu0 %v1443_v54  ;;  %1727 = vmatprep.subr.mxu1 %v1443_v54  ;;  %v1982_v54 = vld [vmem:[#allocation7 + $0x390] sm:$0xff] }
 0x1dd   : > { %1657 = vmatpush1.msra.mxu0 %v1442_v55  ;;  %1728 = vmatpush1.msra.mxu1 %v1442_v55  ;;  %v1981_v55 = vld [vmem:[#allocation7 + $0x388] sm:$0xff] }
 0x1de   : > { %1658 = vmatprep.subr.mxu0 %v1441_v56  ;;  %1729 = vmatprep.subr.mxu1 %v1441_v56  ;;  %v1980_v56 = vld [vmem:[#allocation7 + $0x380] sm:$0xff] }
 0x1df   : > { %1659 = vmatpush1.msra.mxu0 %v1440_v57  ;;  %1730 = vmatpush1.msra.mxu1 %v1440_v57  ;;  %v1979_v57 = vld [vmem:[#allocation7 + $0x378] sm:$0xff] }
 0x1e0   : > { %1660 = vmatprep.subr.mxu0 %v1439_v58  ;;  %1731 = vmatprep.subr.mxu1 %v1439_v58  ;;  %v1978_v58 = vld [vmem:[#allocation7 + $0x370] sm:$0xff] }
 0x1e1   : > { %1661 = vmatpush1.msra.mxu0 %v1438_v59  ;;  %1732 = vmatpush1.msra.mxu1 %v1438_v59  ;;  %v1977_v59 = vld [vmem:[#allocation7 + $0x368] sm:$0xff] }
 0x1e2   : > { %1662 = vmatprep.subr.mxu0 %v1437_v60  ;;  %1733 = vmatprep.subr.mxu1 %v1437_v60  ;;  %v1976_v60 = vld [vmem:[#allocation7 + $0x360] sm:$0xff] }
 0x1e3   : > { %1663 = vmatpush1.msra.mxu0 %v1436_v61  ;;  %1734 = vmatpush1.msra.mxu1 %v1436_v61  ;;  %v1975_v61 = vld [vmem:[#allocation7 + $0x358] sm:$0xff] }
 0x1e4   : > { %1664 = vmatprep.subr.mxu0 %v1435_v62  ;;  %1735 = vmatprep.subr.mxu1 %v1435_v62  ;;  %v1974_v62 = vld [vmem:[#allocation7 + $0x350] sm:$0xff] }
 0x1e5   : > { %1665 = vmatpush1.msra.mxu0 %v1434_v63  ;;  %1736 = vmatpush1.msra.mxu1 %v1434_v63  ;;  %v1973_v63 = vld [vmem:[#allocation7 + $0x348] sm:$0xff] }
 0x1e6   : > { %1666 = vmatprep.subr.mxu0 %v1433_v1  ;;  %1737 = vmatprep.subr.mxu1 %v1433_v1  ;;  %v1972_v1 = vld [vmem:[#allocation7 + $0x340] sm:$0xff] }
 0x1e7   : > { %1667 = vmatpush1.msra.mxu0 %v1432_v2  ;;  %1738 = vmatpush1.msra.mxu1 %v1432_v2  ;;  %v1971_v2 = vld [vmem:[#allocation7 + $0x338] sm:$0xff] }
 0x1e8   : > { %1668 = vmatprep.subr.mxu0 %v1431_v3  ;;  %1739 = vmatprep.subr.mxu1 %v1431_v3  ;;  %v1970_v3 = vld [vmem:[#allocation7 + $0x330] sm:$0xff] }
 0x1e9   : > { %1669 = vmatpush1.msra.mxu0 %v1430_v4  ;;  %1740 = vmatpush1.msra.mxu1 %v1430_v4  ;;  %v1969_v4 = vld [vmem:[#allocation7 + $0x328] sm:$0xff] }
 0x1ea   : > { %1670 = vmatprep.subr.mxu0 %v1429_v5  ;;  %1741 = vmatprep.subr.mxu1 %v1429_v5  ;;  %v1968_v5 = vld [vmem:[#allocation7 + $0x320] sm:$0xff] }
 0x1eb   : > { %1671 = vmatpush1.msra.mxu0 %v1428_v6  ;;  %1704 = vmatprep.mubr.f32.mxu0 %v3746_v0 }
 0x1ec   : > { %1742 = vmatpush1.msra.mxu1 %v1428_v6  ;;  %1775 = vmatprep.mubr.f32.mxu1 %v3746_v0  ;;  %v1967_v6 = vld [vmem:[#allocation7 + $0x318] sm:$0xff] }
 0x1ed   : > { %1705 = vmatmul.mubr.f32.vlgmr.msra.gmra.mxu0 %v1460_v8  ;;  %1776 = vmatmul.mubr.f32.vlgmr.msra.gmra.mxu1 %v3978_v40  ;;  %v1783_v40 = vld [vmem:[#allocation7 + $0x200] sm:$0xff]  ;;  %v1965_v8 = vld [vmem:[#allocation7 + $0x308] sm:$0xff] }
 0x1ee   : > { %1815 = vmatprep.subr.mxu0 %v1814_v7  ;;  %1888 = vmatprep.subr.mxu1 %v1814_v7  ;;  %v1966_v7 = vld [vmem:[#allocation7 + $0x310] sm:$0xff] }
 0x1ef   : > { %1816 = vmatpush1.msra.mxu0 %v1813_v9  ;;  %1889 = vmatpush1.msra.mxu1 %v1813_v9  ;;  %v1964_v9 = vld [vmem:[#allocation7 + $0x300] sm:$0xff] }
 0x1f0   : > { %1817 = vmatprep.subr.mxu0 %v1812_v10  ;;  %1890 = vmatprep.subr.mxu1 %v1812_v10  ;;  %v2176_v10 = vld [vmem:[#allocation7 + $0x4f8] sm:$0xff] }
 0x1f1   : > { %1818 = vmatpush1.msra.mxu0 %v1811_v11  ;;  %1891 = vmatpush1.msra.mxu1 %v1811_v11  ;;  %v3995_v11 = vld [vmem:[#allocation2 + $0x4] ss:$2 sm:$0x1f] }
 0x1f2   : > { %1819 = vmatprep.subr.mxu0 %v1810_v12  ;;  %1892 = vmatprep.subr.mxu1 %v1810_v12  ;;  %v2175_v12 = vld [vmem:[#allocation7 + $0x4f0] sm:$0xff] }
 0x1f3   : > { %1820 = vmatpush1.msra.mxu0 %v1809_v13  ;;  %1893 = vmatpush1.msra.mxu1 %v1809_v13  ;;  %v2174_v13 = vld [vmem:[#allocation7 + $0x4e8] sm:$0xff] }
 0x1f4   : > { %1821 = vmatprep.subr.mxu0 %v1808_v14  ;;  %1894 = vmatprep.subr.mxu1 %v1808_v14  ;;  %v2173_v14 = vld [vmem:[#allocation7 + $0x4e0] sm:$0xff] }
 0x1f5   : > { %1822 = vmatpush1.msra.mxu0 %v1807_v15  ;;  %1895 = vmatpush1.msra.mxu1 %v1807_v15  ;;  %v2172_v15 = vld [vmem:[#allocation7 + $0x4d8] sm:$0xff] }
 0x1f6   : > { %1823 = vmatprep.subr.mxu0 %v1806_v16  ;;  %1896 = vmatprep.subr.mxu1 %v1806_v16  ;;  %v2171_v16 = vld [vmem:[#allocation7 + $0x4d0] sm:$0xff] }
 0x1f7   : > { %1824 = vmatpush1.msra.mxu0 %v1805_v17  ;;  %1897 = vmatpush1.msra.mxu1 %v1805_v17  ;;  %v2170_v17 = vld [vmem:[#allocation7 + $0x4c8] sm:$0xff] }
 0x1f8   : > { %1825 = vmatprep.subr.mxu0 %v1804_v18  ;;  %1898 = vmatprep.subr.mxu1 %v1804_v18  ;;  %v2169_v18 = vld [vmem:[#allocation7 + $0x4c0] sm:$0xff] }
 0x1f9   : > { %1826 = vmatpush1.msra.mxu0 %v1803_v19  ;;  %1899 = vmatpush1.msra.mxu1 %v1803_v19  ;;  %v2168_v19 = vld [vmem:[#allocation7 + $0x4b8] sm:$0xff] }
 0x1fa   : > { %1827 = vmatprep.subr.mxu0 %v1802_v20  ;;  %1900 = vmatprep.subr.mxu1 %v1802_v20  ;;  %v2167_v20 = vld [vmem:[#allocation7 + $0x4b0] sm:$0xff] }
 0x1fb   : > { %1828 = vmatpush1.msra.mxu0 %v1801_v21  ;;  %1901 = vmatpush1.msra.mxu1 %v1801_v21  ;;  %v2166_v21 = vld [vmem:[#allocation7 + $0x4a8] sm:$0xff] }
 0x1fc   : > { %1829 = vmatprep.subr.mxu0 %v1800_v22  ;;  %1902 = vmatprep.subr.mxu1 %v1800_v22  ;;  %v2165_v22 = vld [vmem:[#allocation7 + $0x4a0] sm:$0xff] }
 0x1fd   : > { %1830 = vmatpush1.msra.mxu0 %v1799_v23  ;;  %1903 = vmatpush1.msra.mxu1 %v1799_v23  ;;  %v2164_v23 = vld [vmem:[#allocation7 + $0x498] sm:$0xff] }
 0x1fe   : > { %1831 = vmatprep.subr.mxu0 %v1798_v24  ;;  %1904 = vmatprep.subr.mxu1 %v1798_v24  ;;  %v2163_v24 = vld [vmem:[#allocation7 + $0x490] sm:$0xff] }
 0x1ff   : > { %1832 = vmatpush1.msra.mxu0 %v1797_v25  ;;  %1905 = vmatpush1.msra.mxu1 %v1797_v25  ;;  %v2162_v25 = vld [vmem:[#allocation7 + $0x488] sm:$0xff] }
 0x200   : > { %1833 = vmatprep.subr.mxu0 %v1796_v26  ;;  %1906 = vmatprep.subr.mxu1 %v1796_v26  ;;  %v2161_v26 = vld [vmem:[#allocation7 + $0x480] sm:$0xff] }
 0x201   : > { %1834 = vmatpush1.msra.mxu0 %v1795_v27  ;;  %1907 = vmatpush1.msra.mxu1 %v1795_v27  ;;  %v2160_v27 = vld [vmem:[#allocation7 + $0x478] sm:$0xff] }
 0x202   : > { %1835 = vmatprep.subr.mxu0 %v1794_v28  ;;  %1908 = vmatprep.subr.mxu1 %v1794_v28  ;;  %v2159_v28 = vld [vmem:[#allocation7 + $0x470] sm:$0xff] }
 0x203   : > { %1836 = vmatpush1.msra.mxu0 %v1793_v29  ;;  %1909 = vmatpush1.msra.mxu1 %v1793_v29  ;;  %v2158_v29 = vld [vmem:[#allocation7 + $0x468] sm:$0xff] }
 0x204   : > { %1837 = vmatprep.subr.mxu0 %v1792_v30  ;;  %1910 = vmatprep.subr.mxu1 %v1792_v30  ;;  %v2157_v30 = vld [vmem:[#allocation7 + $0x460] sm:$0xff] }
 0x205   : > { %1838 = vmatpush1.msra.mxu0 %v1791_v31  ;;  %1911 = vmatpush1.msra.mxu1 %v1791_v31  ;;  %v2156_v31 = vld [vmem:[#allocation7 + $0x458] sm:$0xff] }
 0x206   : > { %1839 = vmatprep.subr.mxu0 %v1790_v32  ;;  %1912 = vmatprep.subr.mxu1 %v1790_v32  ;;  %v2155_v32 = vld [vmem:[#allocation7 + $0x450] sm:$0xff] }
 0x207   : > { %1840 = vmatpush1.msra.mxu0 %v1789_v33  ;;  %1913 = vmatpush1.msra.mxu1 %v1789_v33  ;;  %v2154_v33 = vld [vmem:[#allocation7 + $0x448] sm:$0xff] }
 0x208   : > { %1841 = vmatprep.subr.mxu0 %v1788_v35  ;;  %1914 = vmatprep.subr.mxu1 %v1788_v35  ;;  %v2153_v35 = vld [vmem:[#allocation7 + $0x440] sm:$0xff] }
 0x209   : > { %1842 = vmatpush1.msra.mxu0 %v1787_v36  ;;  %1915 = vmatpush1.msra.mxu1 %v1787_v36  ;;  %v2152_v36 = vld [vmem:[#allocation7 + $0x438] sm:$0xff] }
 0x20a   : > { %1843 = vmatprep.subr.mxu0 %v1786_v37  ;;  %1916 = vmatprep.subr.mxu1 %v1786_v37  ;;  %v2151_v37 = vld [vmem:[#allocation7 + $0x430] sm:$0xff] }
 0x20b   : > { %1844 = vmatpush1.msra.mxu0 %v1785_v38  ;;  %1917 = vmatpush1.msra.mxu1 %v1785_v38  ;;  %v2150_v38 = vld [vmem:[#allocation7 + $0x428] sm:$0xff] }
 0x20c   : > { %1845 = vmatprep.subr.mxu0 %v1784_v39  ;;  %1918 = vmatprep.subr.mxu1 %v1784_v39  ;;  %v2149_v39 = vld [vmem:[#allocation7 + $0x420] sm:$0xff] }
 0x20d   : > { %1846 = vmatpush1.msra.mxu0 %v1783_v40  ;;  %1879 = vmatprep.mubr.f32.mxu0 %v3746_v0 }
 0x20e   : > { %1919 = vmatpush1.msra.mxu1 %v1783_v40  ;;  %1952 = vmatprep.mubr.f32.mxu1 %v3746_v0  ;;  %v2148_v40 = vld [vmem:[#allocation7 + $0x418] sm:$0xff] }
 0x20f   : > { %1880 = vmatmul.mubr.f32.vlgmr.msra.gmra.mxu0 %v3980_v41  ;;  %1953 = vmatmul.mubr.f32.vlgmr.msra.gmra.mxu1 %v3989_v43  ;;  %v1987_v41 = vld [vmem:[#allocation7 + $0x3b8] sm:$0xff] }
 0x210   : > { %1996 = vmatprep.subr.mxu0 %v1995_v42  ;;  %2069 = vmatprep.subr.mxu1 %v1995_v42  ;;  %v2147_v42 = vld [vmem:[#allocation7 + $0x410] sm:$0xff] }
 0x211   : > { %1997 = vmatpush1.msra.mxu0 %v1994_v44  ;;  %2070 = vmatpush1.msra.mxu1 %v1994_v44  ;;  %v2145_v44 = vld [vmem:[#allocation7 + $0x400] sm:$0xff] }
 0x212   : > { %1998 = vmatprep.subr.mxu0 %v1993_v45  ;;  %2071 = vmatprep.subr.mxu1 %v1993_v45  ;;  %v2249_v45 = vld [vmem:[#allocation2 + $0x5] ss:$2 sm:$0x1f] }
 0x213   : > { %1999 = vmatpush1.msra.mxu0 %v1992_v46  ;;  %2072 = vmatpush1.msra.mxu1 %v1992_v46  ;;  %v3098_v46 = vld [vmem:[%s4473_s5 + $0xf8] sm:$0xff] }
 0x214   : > { %2000 = vmatprep.subr.mxu0 %v1991_v47  ;;  %2073 = vmatprep.subr.mxu1 %v1991_v47  ;;  %v2354_v47 = vld [vmem:[%s4473_s5 + $0x78] sm:$0xff] }
 0x215   : > { %2001 = vmatpush1.msra.mxu0 %v1990_v34  ;;  %2074 = vmatpush1.msra.mxu1 %v1990_v34  ;;  %v3097_v34 = vld [vmem:[%s4473_s5 + $0xf0] sm:$0xff] }
 0x216   : > { %2002 = vmatprep.subr.mxu0 %v1989_v48  ;;  %2075 = vmatprep.subr.mxu1 %v1989_v48  ;;  %v2353_v48 = vld [vmem:[%s4473_s5 + $0x70] sm:$0xff] }
 0x217   : > { %2003 = vmatpush1.msra.mxu0 %v1988_v49  ;;  %2076 = vmatpush1.msra.mxu1 %v1988_v49  ;;  %v3096_v49 = vld [vmem:[%s4473_s5 + $0xe8] sm:$0xff] }
 0x218   : > { %2004 = vmatprep.subr.mxu0 %v1987_v41  ;;  %2077 = vmatprep.subr.mxu1 %v1987_v41  ;;  %v2352_v41 = vld [vmem:[%s4473_s5 + $0x68] sm:$0xff] }
 0x219   : > { %2005 = vmatpush1.msra.mxu0 %v1986_v50  ;;  %2078 = vmatpush1.msra.mxu1 %v1986_v50  ;;  %v3095_v50 = vld [vmem:[%s4473_s5 + $0xe0] sm:$0xff] }
 0x21a   : > { %2006 = vmatprep.subr.mxu0 %v1985_v51  ;;  %2079 = vmatprep.subr.mxu1 %v1985_v51  ;;  %v2351_v51 = vld [vmem:[%s4473_s5 + $0x60] sm:$0xff] }
 0x21b   : > { %2007 = vmatpush1.msra.mxu0 %v1984_v52  ;;  %2080 = vmatpush1.msra.mxu1 %v1984_v52  ;;  %v3094_v52 = vld [vmem:[%s4473_s5 + $0xd8] sm:$0xff] }
 0x21c   : > { %2008 = vmatprep.subr.mxu0 %v1983_v53  ;;  %2081 = vmatprep.subr.mxu1 %v1983_v53  ;;  %v2350_v53 = vld [vmem:[%s4473_s5 + $0x58] sm:$0xff] }
 0x21d   : > { %2009 = vmatpush1.msra.mxu0 %v1982_v54  ;;  %2082 = vmatpush1.msra.mxu1 %v1982_v54  ;;  %v3093_v54 = vld [vmem:[%s4473_s5 + $0xd0] sm:$0xff] }
 0x21e   : > { %2010 = vmatprep.subr.mxu0 %v1981_v55  ;;  %2083 = vmatprep.subr.mxu1 %v1981_v55  ;;  %v2349_v55 = vld [vmem:[%s4473_s5 + $0x50] sm:$0xff] }
 0x21f   : > { %2011 = vmatpush1.msra.mxu0 %v1980_v56  ;;  %2084 = vmatpush1.msra.mxu1 %v1980_v56  ;;  %v3092_v56 = vld [vmem:[%s4473_s5 + $0xc8] sm:$0xff] }
 0x220   : > { %2012 = vmatprep.subr.mxu0 %v1979_v57  ;;  %2085 = vmatprep.subr.mxu1 %v1979_v57  ;;  %v2348_v57 = vld [vmem:[%s4473_s5 + $0x48] sm:$0xff] }
 0x221   : > { %2013 = vmatpush1.msra.mxu0 %v1978_v58  ;;  %2086 = vmatpush1.msra.mxu1 %v1978_v58  ;;  %v3091_v58 = vld [vmem:[%s4473_s5 + $0xc0] sm:$0xff] }
 0x222   : > { %2014 = vmatprep.subr.mxu0 %v1977_v59  ;;  %2087 = vmatprep.subr.mxu1 %v1977_v59  ;;  %v2347_v59 = vld [vmem:[%s4473_s5 + $0x40] sm:$0xff] }
 0x223   : > { %2015 = vmatpush1.msra.mxu0 %v1976_v60  ;;  %2088 = vmatpush1.msra.mxu1 %v1976_v60  ;;  %v3090_v60 = vld [vmem:[%s4473_s5 + $0xb8] sm:$0xff] }
 0x224   : > { %2016 = vmatprep.subr.mxu0 %v1975_v61  ;;  %2089 = vmatprep.subr.mxu1 %v1975_v61  ;;  %v2346_v61 = vld [vmem:[%s4473_s5 + $0x38] sm:$0xff] }
 0x225   : > { %2017 = vmatpush1.msra.mxu0 %v1974_v62  ;;  %2090 = vmatpush1.msra.mxu1 %v1974_v62  ;;  %v3089_v62 = vld [vmem:[%s4473_s5 + $0xb0] sm:$0xff] }
 0x226   : > { %2018 = vmatprep.subr.mxu0 %v1973_v63  ;;  %2091 = vmatprep.subr.mxu1 %v1973_v63  ;;  %v2345_v63 = vld [vmem:[%s4473_s5 + $0x30] sm:$0xff] }
 0x227   : > { %2019 = vmatpush1.msra.mxu0 %v1972_v1  ;;  %2092 = vmatpush1.msra.mxu1 %v1972_v1  ;;  %v3088_v1 = vld [vmem:[%s4473_s5 + $0xa8] sm:$0xff] }
 0x228   : > { %2020 = vmatprep.subr.mxu0 %v1971_v2  ;;  %2093 = vmatprep.subr.mxu1 %v1971_v2  ;;  %v2344_v2 = vld [vmem:[%s4473_s5 + $0x28] sm:$0xff] }
 0x229   : > { %2021 = vmatpush1.msra.mxu0 %v1970_v3  ;;  %2094 = vmatpush1.msra.mxu1 %v1970_v3  ;;  %v3087_v3 = vld [vmem:[%s4473_s5 + $0xa0] sm:$0xff] }
 0x22a   : > { %2022 = vmatprep.subr.mxu0 %v1969_v4  ;;  %2095 = vmatprep.subr.mxu1 %v1969_v4  ;;  %v2343_v4 = vld [vmem:[%s4473_s5 + $0x20] sm:$0xff] }
 0x22b   : > { %2023 = vmatpush1.msra.mxu0 %v1968_v5  ;;  %2096 = vmatpush1.msra.mxu1 %v1968_v5  ;;  %v3086_v5 = vld [vmem:[%s4473_s5 + $0x98] sm:$0xff] }
 0x22c   : > { %2024 = vmatprep.subr.mxu0 %v1967_v6  ;;  %2097 = vmatprep.subr.mxu1 %v1967_v6  ;;  %v2342_v6 = vld [vmem:[%s4473_s5 + $0x18] sm:$0xff] }
 0x22d   : > { %2025 = vmatpush1.msra.mxu0 %v1966_v7  ;;  %2098 = vmatpush1.msra.mxu1 %v1966_v7  ;;  %v3085_v7 = vld [vmem:[%s4473_s5 + $0x90] sm:$0xff] }
 0x22e   : > { %2026 = vmatprep.subr.mxu0 %v1965_v8  ;;  %2099 = vmatprep.subr.mxu1 %v1965_v8  ;;  %v2341_v8 = vld [vmem:[%s4473_s5 + $0x10] sm:$0xff] }
 0x22f   : > { %2027 = vmatpush1.msra.mxu0 %v1964_v9  ;;  %2060 = vmatprep.mubr.f32.mxu0 %v3746_v0 }
 0x230   : > { %2100 = vmatpush1.msra.mxu1 %v1964_v9  ;;  %2133 = vmatprep.mubr.f32.mxu1 %v3746_v0  ;;  %v3084_v9 = vld [vmem:[%s4473_s5 + $0x88] sm:$0xff] }
 0x231   : > { %2061 = vmatmul.mubr.f32.vlgmr.msra.gmra.mxu0 %v3989_v43  ;;  %2134 = vmatmul.mubr.f32.vlgmr.msra.gmra.mxu1 %v3995_v11  ;;  %v2146_v43 = vld [vmem:[#allocation7 + $0x408] sm:$0xff] }
 0x232   : > { %2177 = vmatprep.subr.mxu0 %v2176_v10  ;;  %2250 = vmatprep.subr.mxu1 %v2176_v10  ;;  %v2340_v10 = vld [vmem:[%s4473_s5 + $0x8] sm:$0xff] }
 0x233   : > { %2178 = vmatpush1.msra.mxu0 %v2175_v12  ;;  %2251 = vmatpush1.msra.mxu1 %v2175_v12  ;;  %v2339_v12 = vld [vmem:[%s4473_s5] sm:$0xff] }
 0x234   : > { %2179 = vmatprep.subr.mxu0 %v2174_v13  ;;  %2252 = vmatprep.subr.mxu1 %v2174_v13 }
 0x235   : > { %2180 = vmatpush1.msra.mxu0 %v2173_v14  ;;  %2253 = vmatpush1.msra.mxu1 %v2173_v14 }
 0x236   : > { %2181 = vmatprep.subr.mxu0 %v2172_v15  ;;  %2254 = vmatprep.subr.mxu1 %v2172_v15 }
 0x237   : > { %2182 = vmatpush1.msra.mxu0 %v2171_v16  ;;  %2255 = vmatpush1.msra.mxu1 %v2171_v16 }
 0x238   : > { %2183 = vmatprep.subr.mxu0 %v2170_v17  ;;  %2256 = vmatprep.subr.mxu1 %v2170_v17 }
 0x239   : > { %2184 = vmatpush1.msra.mxu0 %v2169_v18  ;;  %2257 = vmatpush1.msra.mxu1 %v2169_v18 }
 0x23a   : > { %2185 = vmatprep.subr.mxu0 %v2168_v19  ;;  %2258 = vmatprep.subr.mxu1 %v2168_v19 }
 0x23b   : > { %2186 = vmatpush1.msra.mxu0 %v2167_v20  ;;  %2259 = vmatpush1.msra.mxu1 %v2167_v20 }
 0x23c   : > { %2187 = vmatprep.subr.mxu0 %v2166_v21  ;;  %2260 = vmatprep.subr.mxu1 %v2166_v21 }
 0x23d   : > { %2188 = vmatpush1.msra.mxu0 %v2165_v22  ;;  %2261 = vmatpush1.msra.mxu1 %v2165_v22 }
 0x23e   : > { %2189 = vmatprep.subr.mxu0 %v2164_v23  ;;  %2262 = vmatprep.subr.mxu1 %v2164_v23 }
 0x23f   : > { %2190 = vmatpush1.msra.mxu0 %v2163_v24  ;;  %2263 = vmatpush1.msra.mxu1 %v2163_v24 }
 0x240   : > { %2191 = vmatprep.subr.mxu0 %v2162_v25  ;;  %2264 = vmatprep.subr.mxu1 %v2162_v25 }
 0x241   : > { %2192 = vmatpush1.msra.mxu0 %v2161_v26  ;;  %2265 = vmatpush1.msra.mxu1 %v2161_v26 }
 0x242   : > { %2193 = vmatprep.subr.mxu0 %v2160_v27  ;;  %2266 = vmatprep.subr.mxu1 %v2160_v27 }
 0x243   : > { %2194 = vmatpush1.msra.mxu0 %v2159_v28  ;;  %2267 = vmatpush1.msra.mxu1 %v2159_v28 }
 0x244   : > { %2195 = vmatprep.subr.mxu0 %v2158_v29  ;;  %2268 = vmatprep.subr.mxu1 %v2158_v29 }
 0x245   : > { %2196 = vmatpush1.msra.mxu0 %v2157_v30  ;;  %2269 = vmatpush1.msra.mxu1 %v2157_v30 }
 0x246   : > { %2197 = vmatprep.subr.mxu0 %v2156_v31  ;;  %2270 = vmatprep.subr.mxu1 %v2156_v31 }
 0x247   : > { %2198 = vmatpush1.msra.mxu0 %v2155_v32  ;;  %2271 = vmatpush1.msra.mxu1 %v2155_v32 }
 0x248   : > { %2199 = vmatprep.subr.mxu0 %v2154_v33  ;;  %2272 = vmatprep.subr.mxu1 %v2154_v33 }
 0x249   : > { %2200 = vmatpush1.msra.mxu0 %v2153_v35  ;;  %2273 = vmatpush1.msra.mxu1 %v2153_v35 }
 0x24a   : > { %2201 = vmatprep.subr.mxu0 %v2152_v36  ;;  %2274 = vmatprep.subr.mxu1 %v2152_v36 }
 0x24b   : > { %2202 = vmatpush1.msra.mxu0 %v2151_v37  ;;  %2275 = vmatpush1.msra.mxu1 %v2151_v37 }
 0x24c   : > { %2203 = vmatprep.subr.mxu0 %v2150_v38  ;;  %2276 = vmatprep.subr.mxu1 %v2150_v38 }
 0x24d   : > { %2204 = vmatpush1.msra.mxu0 %v2149_v39  ;;  %2277 = vmatpush1.msra.mxu1 %v2149_v39 }
 0x24e   : > { %2205 = vmatprep.subr.mxu0 %v2148_v40  ;;  %2278 = vmatprep.subr.mxu1 %v2148_v40 }
 0x24f   : > { %2206 = vmatpush1.msra.mxu0 %v2147_v42  ;;  %2279 = vmatpush1.msra.mxu1 %v2147_v42 }
 0x250   : > { %2207 = vmatprep.subr.mxu0 %v2146_v43  ;;  %2280 = vmatprep.subr.mxu1 %v2146_v43 }
 0x251   : > { %2208 = vmatpush1.msra.mxu0 %v2145_v44  ;;  %2241 = vmatprep.mubr.f32.mxu0 %v3746_v0 }
 0x252   : > { %2281 = vmatpush1.msra.mxu1 %v2145_v44  ;;  %2314 = vmatprep.mubr.f32.mxu1 %v3746_v0 }
 0x253   : > { %2242 = vmatmul.mubr.f32.vlgmr.msra.gmra.mxu0 %v3995_v11  ;;  %2315 = vmatmul.mubr.f32.vlgmr.msra.gmra.mxu1 %v2249_v45  ;;  %v3083_v11 = vld [vmem:[%s4473_s5 + $0x80] sm:$0xff] }
 0x254   : > { %3270 = vmatprep.subr.mxu0 %v3746_v0  ;;  %3305 = vmatprep.subr.mxu1 %v3746_v0 }
 0x255   : > { %3271 = vmatpush3.msra.mxu0 %v3098_v46  ;;  %3306 = vmatpush3.msra.mxu1 %v2354_v47 }
 0x256   : > { %3272 = vmatprep.subr.mxu0 %v3746_v0  ;;  %3307 = vmatprep.subr.mxu1 %v3746_v0 }
 0x257   : > { %3273 = vmatpush3.msra.mxu0 %v3097_v34  ;;  %3308 = vmatpush3.msra.mxu1 %v2353_v48 }
 0x258   : > { %3274 = vmatprep.subr.mxu0 %v3746_v0  ;;  %3309 = vmatprep.subr.mxu1 %v3746_v0 }
 0x259   : > { %3275 = vmatpush3.msra.mxu0 %v3096_v49  ;;  %3310 = vmatpush3.msra.mxu1 %v2352_v41 }
 0x25a   : > { %3276 = vmatprep.subr.mxu0 %v3746_v0  ;;  %3311 = vmatprep.subr.mxu1 %v3746_v0 }
 0x25b   : > { %3277 = vmatpush3.msra.mxu0 %v3095_v50  ;;  %3312 = vmatpush3.msra.mxu1 %v2351_v51  ;;  %v3082_v51 = vld [vmem:[%s4472_s4] ss:$0 sm:$0xff] }
 0x25c   : > { %3278 = vmatprep.subr.mxu0 %v3746_v0  ;;  %3313 = vmatprep.subr.mxu1 %v3746_v0 }
 0x25d   : > { %3279 = vmatpush3.msra.mxu0 %v3094_v52  ;;  %3314 = vmatpush3.msra.mxu1 %v2350_v53 }
 0x25e   : > { %3280 = vmatprep.subr.mxu0 %v3746_v0  ;;  %3315 = vmatprep.subr.mxu1 %v3746_v0 }
 0x25f   : > { %3281 = vmatpush3.msra.mxu0 %v3093_v54  ;;  %3316 = vmatpush3.msra.mxu1 %v2349_v55  ;;  %v3114_v55 = vld [vmem:[%s4473_s5 + $0x178] sm:$0xff] }
 0x260   : > { %3282 = vmatprep.subr.mxu0 %v3746_v0  ;;  %3317 = vmatprep.subr.mxu1 %v3746_v0 }
 0x261   : > { %3283 = vmatpush3.msra.mxu0 %v3092_v56  ;;  %3318 = vmatpush3.msra.mxu1 %v2348_v57  ;;  %v3130_v56 = vld [vmem:[%s4473_s5 + $0x1f8] sm:$0xff] }
 0x262   : > { %3284 = vmatprep.subr.mxu0 %v3746_v0  ;;  %3319 = vmatprep.subr.mxu1 %v3746_v0 }
 0x263   : > { %3285 = vmatpush3.msra.mxu0 %v3091_v58  ;;  %3320 = vmatpush3.msra.mxu1 %v2347_v59  ;;  %v3113_v59 = vld [vmem:[%s4473_s5 + $0x170] sm:$0xff] }
 0x264   : > { %3286 = vmatprep.subr.mxu0 %v3746_v0  ;;  %3321 = vmatprep.subr.mxu1 %v3746_v0 }
 0x265   : > { %3287 = vmatpush3.msra.mxu0 %v3090_v60  ;;  %3322 = vmatpush3.msra.mxu1 %v2346_v61  ;;  %v3129_v60 = vld [vmem:[%s4473_s5 + $0x1f0] sm:$0xff]  ;;  %v3112_v61 = vld [vmem:[%s4473_s5 + $0x168] sm:$0xff] }
 0x266   : > { %3288 = vmatprep.subr.mxu0 %v3746_v0  ;;  %3323 = vmatprep.subr.mxu1 %v3746_v0 }
 0x267   : > { %3289 = vmatpush3.msra.mxu0 %v3089_v62  ;;  %3324 = vmatpush3.msra.mxu1 %v2345_v63  ;;  %v3128_v62 = vld [vmem:[%s4473_s5 + $0x1e8] sm:$0xff]  ;;  %v3111_v63 = vld [vmem:[%s4473_s5 + $0x160] sm:$0xff] }
 0x268   : > { %3290 = vmatprep.subr.mxu0 %v3746_v0  ;;  %3325 = vmatprep.subr.mxu1 %v3746_v0 }
 0x269   : > { %3291 = vmatpush3.msra.mxu0 %v3088_v1  ;;  %3326 = vmatpush3.msra.mxu1 %v2344_v2  ;;  %v3127_v1 = vld [vmem:[%s4473_s5 + $0x1e0] sm:$0xff]  ;;  %v3110_v2 = vld [vmem:[%s4473_s5 + $0x158] sm:$0xff] }
 0x26a   : > { %3292 = vmatprep.subr.mxu0 %v3746_v0  ;;  %3327 = vmatprep.subr.mxu1 %v3746_v0 }
 0x26b   : > { %3293 = vmatpush3.msra.mxu0 %v3087_v3  ;;  %3328 = vmatpush3.msra.mxu1 %v2343_v4  ;;  %v3126_v3 = vld [vmem:[%s4473_s5 + $0x1d8] sm:$0xff]  ;;  %v3109_v4 = vld [vmem:[%s4473_s5 + $0x150] sm:$0xff] }
 0x26c   : > { %3294 = vmatprep.subr.mxu0 %v3746_v0  ;;  %3329 = vmatprep.subr.mxu1 %v3746_v0 }
 0x26d   : > { %3295 = vmatpush3.msra.mxu0 %v3086_v5  ;;  %3330 = vmatpush3.msra.mxu1 %v2342_v6  ;;  %v3125_v5 = vld [vmem:[%s4473_s5 + $0x1d0] sm:$0xff]  ;;  %v3108_v6 = vld [vmem:[%s4473_s5 + $0x148] sm:$0xff] }
 0x26e   : > { %3296 = vmatprep.subr.mxu0 %v3746_v0  ;;  %3331 = vmatprep.subr.mxu1 %v3746_v0 }
 0x26f   : > { %3297 = vmatpush3.msra.mxu0 %v3085_v7  ;;  %3332 = vmatpush3.msra.mxu1 %v2341_v8  ;;  %v3124_v7 = vld [vmem:[%s4473_s5 + $0x1c8] sm:$0xff]  ;;  %v3107_v8 = vld [vmem:[%s4473_s5 + $0x140] sm:$0xff] }
 0x270   : > { %3298 = vmatprep.subr.mxu0 %v3746_v0  ;;  %3333 = vmatprep.subr.mxu1 %v3746_v0 }
 0x271   : > { %3299 = vmatpush3.msra.mxu0 %v3084_v9  ;;  %3334 = vmatpush3.msra.mxu1 %v2340_v10  ;;  %v3123_v9 = vld [vmem:[%s4473_s5 + $0x1c0] sm:$0xff]  ;;  %v3106_v10 = vld [vmem:[%s4473_s5 + $0x138] sm:$0xff] }
 0x272   : > { %3300 = vmatprep.subr.mxu0 %v3746_v0  ;;  %3335 = vmatprep.subr.mxu1 %v3746_v0 }
 0x273   : > { %3301 = vmatpush3.msra.mxu0 %v3083_v11  ;;  %3336 = vmatpush3.msra.mxu1 %v2339_v12  ;;  %v3122_v11 = vld [vmem:[%s4473_s5 + $0x1b8] sm:$0xff]  ;;  %v3105_v12 = vld [vmem:[%s4473_s5 + $0x130] sm:$0xff] }
 0x274   : > { %3302 = vmatprep.mubr.msk.f32.mxu0 %vm3747_vm0, %v3746_v0  ;;  %3337 = vmatprep.mubr.msk.f32.mxu1 %vm3747_vm0, %v3746_v0 }
 0x275   : > { %3340 = vmatprep.subr.mxu0 %v3746_v0  ;;  %3375 = vmatprep.subr.mxu1 %v3746_v0 }
 0x28c   : > { %v1562_v13 = vpop.f32.mrf.mxu0  ;;  %v1635_v14 = vpop.f32.mrf.mxu1 }
 0x28e   : > { %v1564_v15 = vpop.f32.mrf.mxu0  ;;  %v1637_v16 = vpop.f32.mrf.mxu1 }
 0x2ad   : > { %v1706_v17 = vpop.f32.mrf.mxu0  ;;  %v1777_v18 = vpop.f32.mrf.mxu1 }
 0x2ae   : > { %v1707_v27 = vadd.f32 %v1706_v17, %v1562_v13  ;;  %v1778_v28 = vadd.f32 %v1777_v18, %v1635_v14  ;;  %v3121_v13 = vld [vmem:[%s4473_s5 + $0x1b0] sm:$0xff]  ;;  %v3104_v14 = vld [vmem:[%s4473_s5 + $0x128] sm:$0xff]  ;;  %v3119_v17 = vld [vmem:[%s4473_s5 + $0x1a0] sm:$0xff] }
 0x2af   : > { %v1708_v19 = vpop.f32.mrf.mxu0  ;;  %v1779_v20 = vpop.f32.mrf.mxu1  ;;  %v3102_v18 = vld [vmem:[%s4473_s5 + $0x118] sm:$0xff] }
 0x2b0   : > { %v1709_v29 = vadd.f32 %v1708_v19, %v1564_v15  ;;  %v1780_v30 = vadd.f32 %v1779_v20, %v1637_v16  ;;  %v3120_v15 = vld [vmem:[%s4473_s5 + $0x1a8] sm:$0xff]  ;;  %v3103_v16 = vld [vmem:[%s4473_s5 + $0x120] sm:$0xff]  ;;  %v3118_v19 = vld [vmem:[%s4473_s5 + $0x198] sm:$0xff] }
 0x2b1   : > { %v3101_v20 = vld [vmem:[%s4473_s5 + $0x110] sm:$0xff] }
 0x2cf   : > { %v1881_v21 = vpop.f32.mrf.mxu0  ;;  %v1954_v22 = vpop.f32.mrf.mxu1 }
 0x2d0   : > { %v1959_v31 = vadd.f32 %v1881_v21, %v1707_v27  ;;  %v1961_v32 = vadd.f32 %v1954_v22, %v1778_v28  ;;  %v3117_v21 = vld [vmem:[%s4473_s5 + $0x190] sm:$0xff]  ;;  %v3100_v22 = vld [vmem:[%s4473_s5 + $0x108] sm:$0xff]  ;;  %v3146_v28 = vld [vmem:[%s4473_s5 + $0x278] sm:$0xff] }
 0x2d1   : > { %v1883_v23 = vpop.f32.mrf.mxu0  ;;  %v1956_v24 = vpop.f32.mrf.mxu1 }
 0x2d2   : > { %v1960_v36 = vadd.f32 %v1883_v23, %v1709_v29  ;;  %v1962_v37 = vadd.f32 %v1956_v24, %v1780_v30  ;;  %v3116_v23 = vld [vmem:[%s4473_s5 + $0x188] sm:$0xff]  ;;  %v3099_v24 = vld [vmem:[%s4473_s5 + $0x100] sm:$0xff]  ;;  %v3145_v29 = vld [vmem:[%s4473_s5 + $0x270] sm:$0xff] }
 0x2d3   : > { %v3144_v30 = vld [vmem:[%s4473_s5 + $0x268] sm:$0xff] }
 0x2f1   : > { %v2062_v25 = vpop.f32.mrf.mxu0  ;;  %v2135_v26 = vpop.f32.mrf.mxu1 }
 0x2f2   : > { %v2140_v38 = vadd.f32 %v2062_v25, %v1959_v31  ;;  %v2142_v39 = vadd.f32 %v2135_v26, %v1961_v32  ;;  %v3115_v25 = vld [vmem:[%s4473_s5 + $0x180] sm:$0xff]  ;;  %v3142_v32 = vld [vmem:[%s4473_s5 + $0x258] sm:$0xff] }
 0x2f3   : > { %v2064_v33 = vpop.f32.mrf.mxu0  ;;  %v2137_v35 = vpop.f32.mrf.mxu1  ;;  %v3143_v31 = vld [vmem:[%s4473_s5 + $0x260] sm:$0xff] }
 0x2f4   : > { %v2141_v43 = vadd.f32 %v2064_v33, %v1960_v36  ;;  %v2143_v44 = vadd.f32 %v2137_v35, %v1962_v37  ;;  %v3141_v33 = vld [vmem:[%s4473_s5 + $0x250] sm:$0xff]  ;;  %v3140_v35 = vld [vmem:[%s4473_s5 + $0x248] sm:$0xff]  ;;  %v3139_v36 = vld [vmem:[%s4473_s5 + $0x240] sm:$0xff] }
 0x2f5   : > { %v3138_v37 = vld [vmem:[%s4473_s5 + $0x238] sm:$0xff] }
 0x313   : > { %v2243_v40 = vpop.f32.mrf.mxu0  ;;  %v2316_v42 = vpop.f32.mrf.mxu1 }
 0x314   : > { %v2321_v45 = vadd.f32 %v2243_v40, %v2140_v38  ;;  %v2323_v46 = vadd.f32 %v2316_v42, %v2142_v39  ;;  %v3137_v38 = vld [vmem:[%s4473_s5 + $0x230] sm:$0xff]  ;;  %v3136_v39 = vld [vmem:[%s4473_s5 + $0x228] sm:$0xff]  ;;  %v3135_v40 = vld [vmem:[%s4473_s5 + $0x220] sm:$0xff] }
 0x315   : > { %v2245_v47 = vpop.f32.mrf.mxu0  ;;  %v2318_v34 = vpop.f32.mrf.mxu1  ;;  %v3134_v42 = vld [vmem:[%s4473_s5 + $0x218] sm:$0xff] }
 0x316   : > { %v2322_v48 = vadd.f32 %v2245_v47, %v2141_v43  ;;  %v2324_v49 = vadd.f32 %v2318_v34, %v2143_v44  ;;  %v2325_v41 = vmax.f32 %v2321_v45, %v2323_v46  ;;  %v3133_v43 = vld [vmem:[%s4473_s5 + $0x210] sm:$0xff]  ;;  %v3132_v44 = vld [vmem:[%s4473_s5 + $0x208] sm:$0xff]  ;;  %v3131_v45 = vld [vmem:[%s4473_s5 + $0x200] sm:$0xff] }
 0x317   : > { %v2798_v47 = vld [vmem:[%s4475_s7 + $0x78] sm:$0xff]  ;;  %v2797_v34 = vld [vmem:[%s4475_s7 + $0x70] sm:$0xff] }
 0x318   : > { %v2326_v50 = vmax.f32 %v2322_v48, %v2324_v49  ;;  %v2796_v48 = vld [vmem:[%s4475_s7 + $0x68] sm:$0xff]  ;;  %v2795_v49 = vld [vmem:[%s4475_s7 + $0x60] sm:$0xff] }
 0x31a   : > { %v2327_v52 = vmax.f32 %v2325_v41, %v2326_v50  ;;  %v2794_v41 = vld [vmem:[%s4475_s7 + $0x58] sm:$0xff]  ;;  %v2793_v50 = vld [vmem:[%s4475_s7 + $0x50] sm:$0xff] }
 0x31c   : > { %v2335_v53 = vadd.f32 %v3082_v51, %v2327_v52  ;;  %v2792_v51 = vld [vmem:[%s4475_s7 + $0x48] sm:$0xff]  ;;  %v2791_v52 = vld [vmem:[%s4475_s7 + $0x40] sm:$0xff] }
 0x31e   : > { %v2336_v54 = vmax.f32 %v2335_v53, 0.0  ;;  %v2790_v53 = vld [vmem:[%s4475_s7 + $0x38] sm:$0xff] }
 0x320   : > { %2337 = vst [vmem:[#allocation3] sm:$0x1f] %v2336_v54  ;;  %v2789_v54 = vld [vmem:[%s4475_s7 + $0x30] sm:$0xff] }
 0x327   : > { %v2355_v57 = vld [vmem:[#allocation3 + $0x1] sm:$0x1]  ;;  %v2338_v58 = vld [vmem:[#allocation3] sm:$0x1]  ;;  %v2513_v26 = vld [vmem:[#allocation3 + $0x2] sm:$0x1] }
 0x328   : > { %3303 = vmatmul.mubr.f32.vlgmr.msra.gmra.mxu0 %v2355_v57  ;;  %3338 = vmatmul.mubr.f32.vlgmr.msra.gmra.mxu1 %v2338_v58  ;;  %v2602_v27 = vld [vmem:[#allocation3 + $0x3] sm:$0x1]  ;;  %v2691_v46 = vld [vmem:[#allocation3 + $0x4] sm:$0x1]  ;;  %v2786_v57 = vld [vmem:[%s4475_s7 + $0x18] sm:$0xff] }
 0x329   : > { %3341 = vmatpush3.msra.mxu0 %v3114_v55  ;;  %3376 = vmatpush3.msra.mxu1 %v3130_v56  ;;  %v2788_v55 = vld [vmem:[%s4475_s7 + $0x28] sm:$0xff]  ;;  %v2787_v56 = vld [vmem:[%s4475_s7 + $0x20] sm:$0xff]  ;;  %v2785_v58 = vld [vmem:[%s4475_s7 + $0x10] sm:$0xff] }
 0x32a   : > { %3342 = vmatprep.subr.mxu0 %v3746_v0  ;;  %3377 = vmatprep.subr.mxu1 %v3746_v0 }
 0x32b   : > { %3343 = vmatpush3.msra.mxu0 %v3113_v59  ;;  %3378 = vmatpush3.msra.mxu1 %v3129_v60  ;;  %v2784_v59 = vld [vmem:[%s4475_s7 + $0x8] sm:$0xff]  ;;  %v2783_v60 = vld [vmem:[%s4475_s7] sm:$0xff] }
 0x32c   : > { %3344 = vmatprep.subr.mxu0 %v3746_v0  ;;  %3379 = vmatprep.subr.mxu1 %v3746_v0 }
 0x32d   : > { %3345 = vmatpush3.msra.mxu0 %v3112_v61  ;;  %3380 = vmatpush3.msra.mxu1 %v3128_v62  ;;  %v2886_v61 = vld [vmem:[#allocation9 + $0x78] sm:$0xff]  ;;  %v2885_v62 = vld [vmem:[#allocation9 + $0x70] sm:$0xff] }
 0x32e   : > { %3346 = vmatprep.subr.mxu0 %v3746_v0  ;;  %3381 = vmatprep.subr.mxu1 %v3746_v0 }
 0x32f   : > { %3347 = vmatpush3.msra.mxu0 %v3111_v63  ;;  %3382 = vmatpush3.msra.mxu1 %v3127_v1  ;;  %v2884_v63 = vld [vmem:[#allocation9 + $0x68] sm:$0xff]  ;;  %v2883_v1 = vld [vmem:[#allocation9 + $0x60] sm:$0xff] }
 0x330   : > { %3348 = vmatprep.subr.mxu0 %v3746_v0  ;;  %3383 = vmatprep.subr.mxu1 %v3746_v0 }
 0x331   : > { %3349 = vmatpush3.msra.mxu0 %v3110_v2  ;;  %3384 = vmatpush3.msra.mxu1 %v3126_v3  ;;  %v2882_v2 = vld [vmem:[#allocation9 + $0x58] sm:$0xff]  ;;  %v2881_v3 = vld [vmem:[#allocation9 + $0x50] sm:$0xff] }
 0x332   : > { %3350 = vmatprep.subr.mxu0 %v3746_v0  ;;  %3385 = vmatprep.subr.mxu1 %v3746_v0 }
 0x333   : > { %3351 = vmatpush3.msra.mxu0 %v3109_v4  ;;  %3386 = vmatpush3.msra.mxu1 %v3125_v5  ;;  %v2880_v4 = vld [vmem:[#allocation9 + $0x48] sm:$0xff]  ;;  %v2879_v5 = vld [vmem:[#allocation9 + $0x40] sm:$0xff] }
 0x334   : > { %3352 = vmatprep.subr.mxu0 %v3746_v0  ;;  %3387 = vmatprep.subr.mxu1 %v3746_v0 }
 0x335   : > { %3353 = vmatpush3.msra.mxu0 %v3108_v6  ;;  %3388 = vmatpush3.msra.mxu1 %v3124_v7  ;;  %v2878_v6 = vld [vmem:[#allocation9 + $0x38] sm:$0xff]  ;;  %v2877_v7 = vld [vmem:[#allocation9 + $0x30] sm:$0xff] }
 0x336   : > { %3354 = vmatprep.subr.mxu0 %v3746_v0  ;;  %3389 = vmatprep.subr.mxu1 %v3746_v0 }
 0x337   : > { %3355 = vmatpush3.msra.mxu0 %v3107_v8  ;;  %3390 = vmatpush3.msra.mxu1 %v3123_v9  ;;  %v2876_v8 = vld [vmem:[#allocation9 + $0x28] sm:$0xff]  ;;  %v2875_v9 = vld [vmem:[#allocation9 + $0x20] sm:$0xff] }
 0x338   : > { %3356 = vmatprep.subr.mxu0 %v3746_v0  ;;  %3391 = vmatprep.subr.mxu1 %v3746_v0 }
 0x339   : > { %3357 = vmatpush3.msra.mxu0 %v3106_v10  ;;  %3392 = vmatpush3.msra.mxu1 %v3122_v11  ;;  %v2874_v10 = vld [vmem:[#allocation9 + $0x18] sm:$0xff] }
 0x33a   : > { %3358 = vmatprep.subr.mxu0 %v3746_v0  ;;  %3393 = vmatprep.subr.mxu1 %v3746_v0 }
 0x33b   : > { %3359 = vmatpush3.msra.mxu0 %v3105_v12  ;;  %3394 = vmatpush3.msra.mxu1 %v3121_v13 }
 0x33c   : > { %3360 = vmatprep.subr.mxu0 %v3746_v0  ;;  %3395 = vmatprep.subr.mxu1 %v3746_v0 }
 0x33d   : > { %3361 = vmatpush3.msra.mxu0 %v3104_v14  ;;  %3396 = vmatpush3.msra.mxu1 %v3120_v15 }
 0x33e   : > { %3362 = vmatprep.subr.mxu0 %v3746_v0  ;;  %3397 = vmatprep.subr.mxu1 %v3746_v0 }
 0x33f   : > { %3363 = vmatpush3.msra.mxu0 %v3103_v16  ;;  %3398 = vmatpush3.msra.mxu1 %v3119_v17 }
 0x340   : > { %3364 = vmatprep.subr.mxu0 %v3746_v0  ;;  %3399 = vmatprep.subr.mxu1 %v3746_v0 }
 0x341   : > { %3365 = vmatpush3.msra.mxu0 %v3102_v18  ;;  %3400 = vmatpush3.msra.mxu1 %v3118_v19 }
 0x342   : > { %3366 = vmatprep.subr.mxu0 %v3746_v0  ;;  %3401 = vmatprep.subr.mxu1 %v3746_v0 }
 0x343   : > { %3367 = vmatpush3.msra.mxu0 %v3101_v20  ;;  %3402 = vmatpush3.msra.mxu1 %v3117_v21 }
 0x344   : > { %3368 = vmatprep.subr.mxu0 %v3746_v0  ;;  %3403 = vmatprep.subr.mxu1 %v3746_v0 }
 0x345   : > { %3369 = vmatpush3.msra.mxu0 %v3100_v22  ;;  %3404 = vmatpush3.msra.mxu1 %v3116_v23  ;;  %v2780_v23 = vld [vmem:[%s4474_s6] sm:$0x1] }
 0x346   : > { %3370 = vmatprep.subr.mxu0 %v3746_v0  ;;  %3405 = vmatprep.subr.mxu1 %v3746_v0 }
 0x347   : > { %3371 = vmatpush3.msra.mxu0 %v3099_v24  ;;  %3372 = vmatprep.mubr.msk.f32.mxu0 %vm3747_vm0, %v3746_v0 }
 0x348   : > { %3406 = vmatpush3.msra.mxu1 %v3115_v25  ;;  %3407 = vmatprep.mubr.msk.f32.mxu1 %vm3747_vm0, %v3746_v0 }
 0x349   : > { %3373 = vmatmul.mubr.f32.vlgmr.msra.gmra.mxu0 %v2513_v26  ;;  %3408 = vmatmul.mubr.f32.vlgmr.msra.gmra.mxu1 %v2602_v27 }
 0x34a   : > { %3410 = vmatprep.subr.mxu0 %v3746_v0  ;;  %3442 = vmatprep.mubr.msk.f32.mxu0 %vm3747_vm0, %v3746_v0 }
 0x34b   : > { %3411 = vmatpush3.msra.mxu0 %v3146_v28  ;;  %3445 = vmatprep.subr.mxu1 %v3746_v0  ;;  %v2873_v28 = vld [vmem:[#allocation9 + $0x10] sm:$0xff] }
 0x34c   : > { %3412 = vmatprep.subr.mxu0 %v3746_v0  ;;  %3477 = vmatprep.mubr.msk.f32.mxu1 %vm3747_vm0, %v3746_v0 }
 0x34d   : > { %3413 = vmatpush3.msra.mxu0 %v3145_v29  ;;  %3446 = vmatpush3.msra.mxu1 %v2798_v47  ;;  %v2872_v29 = vld [vmem:[#allocation9 + $0x8] sm:$0xff] }
 0x34e   : > { %3414 = vmatprep.subr.mxu0 %v3746_v0  ;;  %3447 = vmatprep.subr.mxu1 %v3746_v0 }
 0x34f   : > { %3415 = vmatpush3.msra.mxu0 %v3144_v30  ;;  %3448 = vmatpush3.msra.mxu1 %v2797_v34  ;;  %v2871_v30 = vld [vmem:[#allocation9] sm:$0xff] }
 0x350   : > { %3416 = vmatprep.subr.mxu0 %v3746_v0  ;;  %3449 = vmatprep.subr.mxu1 %v3746_v0 }
 0x351   : > { %3417 = vmatpush3.msra.mxu0 %v3143_v31  ;;  %3450 = vmatpush3.msra.mxu1 %v2796_v48  ;;  %v2799_v31 = vld [vmem:[%s4476_s8] sm:$0x1] }
 0x352   : > { %3418 = vmatprep.subr.mxu0 %v3746_v0  ;;  %3451 = vmatprep.subr.mxu1 %v3746_v0 }
 0x353   : > { %3419 = vmatpush3.msra.mxu0 %v3142_v32  ;;  %3452 = vmatpush3.msra.mxu1 %v2795_v49 }
 0x354   : > { %3420 = vmatprep.subr.mxu0 %v3746_v0  ;;  %3453 = vmatprep.subr.mxu1 %v3746_v0 }
 0x355   : > { %3421 = vmatpush3.msra.mxu0 %v3141_v33  ;;  %3454 = vmatpush3.msra.mxu1 %v2794_v41 }
 0x356   : > { %3422 = vmatprep.subr.mxu0 %v3746_v0  ;;  %3455 = vmatprep.subr.mxu1 %v3746_v0 }
 0x357   : > { %3423 = vmatpush3.msra.mxu0 %v3140_v35  ;;  %3456 = vmatpush3.msra.mxu1 %v2793_v50 }
 0x358   : > { %3424 = vmatprep.subr.mxu0 %v3746_v0  ;;  %3457 = vmatprep.subr.mxu1 %v3746_v0 }
 0x359   : > { %3425 = vmatpush3.msra.mxu0 %v3139_v36  ;;  %3458 = vmatpush3.msra.mxu1 %v2792_v51 }
 0x35a   : > { %3426 = vmatprep.subr.mxu0 %v3746_v0  ;;  %3459 = vmatprep.subr.mxu1 %v3746_v0 }
 0x35b   : > { %3427 = vmatpush3.msra.mxu0 %v3138_v37  ;;  %3460 = vmatpush3.msra.mxu1 %v2791_v52  ;;  %v2887_v37 = vld [vmem:[%s4478_s10] sm:$0x1] }
 0x35c   : > { %3428 = vmatprep.subr.mxu0 %v3746_v0  ;;  %3461 = vmatprep.subr.mxu1 %v3746_v0 }
 0x35d   : > { %3429 = vmatpush3.msra.mxu0 %v3137_v38  ;;  %3462 = vmatpush3.msra.mxu1 %v2790_v53 }
 0x35e   : > { %3430 = vmatprep.subr.mxu0 %v3746_v0  ;;  %3463 = vmatprep.subr.mxu1 %v3746_v0 }
 0x35f   : > { %3431 = vmatpush3.msra.mxu0 %v3136_v39  ;;  %3464 = vmatpush3.msra.mxu1 %v2789_v54 }
 0x360   : > { %3432 = vmatprep.subr.mxu0 %v3746_v0  ;;  %3465 = vmatprep.subr.mxu1 %v3746_v0 }
 0x361   : > { %3433 = vmatpush3.msra.mxu0 %v3135_v40  ;;  %3466 = vmatpush3.msra.mxu1 %v2788_v55 }
 0x362   : > { %3434 = vmatprep.subr.mxu0 %v3746_v0  ;;  %3467 = vmatprep.subr.mxu1 %v3746_v0 }
 0x363   : > { %3435 = vmatpush3.msra.mxu0 %v3134_v42  ;;  %3468 = vmatpush3.msra.mxu1 %v2787_v56 }
 0x364   : > { %3436 = vmatprep.subr.mxu0 %v3746_v0  ;;  %3469 = vmatprep.subr.mxu1 %v3746_v0 }
 0x365   : > { %3437 = vmatpush3.msra.mxu0 %v3133_v43  ;;  %3470 = vmatpush3.msra.mxu1 %v2786_v57 }
 0x366   : > { %3438 = vmatprep.subr.mxu0 %v3746_v0  ;;  %3471 = vmatprep.subr.mxu1 %v3746_v0 }
 0x367   : > { %3439 = vmatpush3.msra.mxu0 %v3132_v44  ;;  %3472 = vmatpush3.msra.mxu1 %v2785_v58 }
 0x368   : > { %3440 = vmatprep.subr.mxu0 %v3746_v0  ;;  %3473 = vmatprep.subr.mxu1 %v3746_v0 }
 0x369   : > { %3441 = vmatpush3.msra.mxu0 %v3131_v45  ;;  %3474 = vmatpush3.msra.mxu1 %v2784_v59 }
 0x36a   : > { %3443 = vmatmul.mubr.f32.vlgmr.msra.gmra.mxu0 %v2691_v46  ;;  %3480 = vmatprep.subr.mxu0 %v3746_v0 }
 0x36b   : > { %3512 = vmatprep.mubr.msk.f32.mxu0 %vm3747_vm0, %v3746_v0  ;;  %3475 = vmatprep.subr.mxu1 %v3746_v0 }
 0x36c   : > { %3476 = vmatpush3.msra.mxu1 %v2783_v60  ;;  %3481 = vmatpush3.msra.mxu0 %v2886_v61 }
 0x36d   : > { %3482 = vmatprep.subr.mxu0 %v3746_v0 }
 0x36e   : > { %3483 = vmatpush3.msra.mxu0 %v2885_v62 }
 0x36f   : > { %3484 = vmatprep.subr.mxu0 %v3746_v0 }
 0x370   : > { %3485 = vmatpush3.msra.mxu0 %v2884_v63 }
 0x371   : > { %3486 = vmatprep.subr.mxu0 %v3746_v0 }
 0x372   : > { %3487 = vmatpush3.msra.mxu0 %v2883_v1 }
 0x373   : > { %3488 = vmatprep.subr.mxu0 %v3746_v0 }
 0x374   : > { %3489 = vmatpush3.msra.mxu0 %v2882_v2 }
 0x375   : > { %3490 = vmatprep.subr.mxu0 %v3746_v0 }
 0x376   : > { %3491 = vmatpush3.msra.mxu0 %v2881_v3 }
 0x377   : > { %3492 = vmatprep.subr.mxu0 %v3746_v0 }
 0x378   : > { %3493 = vmatpush3.msra.mxu0 %v2880_v4 }
 0x379   : > { %3494 = vmatprep.subr.mxu0 %v3746_v0 }
 0x37a   : > { %3495 = vmatpush3.msra.mxu0 %v2879_v5 }
 0x37b   : > { %3496 = vmatprep.subr.mxu0 %v3746_v0 }
 0x37c   : > { %3497 = vmatpush3.msra.mxu0 %v2878_v6 }
 0x37d   : > { %3498 = vmatprep.subr.mxu0 %v3746_v0 }
 0x37e   : > { %3499 = vmatpush3.msra.mxu0 %v2877_v7 }
 0x37f   : > { %3500 = vmatprep.subr.mxu0 %v3746_v0 }
 0x380   : > { %3501 = vmatpush3.msra.mxu0 %v2876_v8 }
 0x381   : > { %3502 = vmatprep.subr.mxu0 %v3746_v0 }
 0x382   : > { %3503 = vmatpush3.msra.mxu0 %v2875_v9 }
 0x383   : > { %3504 = vmatprep.subr.mxu0 %v3746_v0 }
 0x384   : > { %3505 = vmatpush3.msra.mxu0 %v2874_v10 }
 0x385   : > { %3506 = vmatprep.subr.mxu0 %v3746_v0 }
 0x386   : > { %3507 = vmatpush3.msra.mxu0 %v2873_v28 }
 0x387   : > { %3508 = vmatprep.subr.mxu0 %v3746_v0 }
 0x388   : > { %3509 = vmatpush3.msra.mxu0 %v2872_v29 }
 0x389   : > { %3510 = vmatprep.subr.mxu0 %v3746_v0 }
 0x38a   : > { %3511 = vmatpush3.msra.mxu0 %v2871_v30 }
 0x3e8   : > { %v2439_v11 = vpop.f32.mrf.mxu0  ;;  %v2509_v12 = vpop.f32.mrf.mxu1 }
 0x3e9   : > { %v2510_v19 = vadd.f32 %v2509_v12, %v2439_v11 }
 0x3ea   : > { %v3304_v13 = vpop.f32.mrf.mxu0  ;;  %v3339_v14 = vpop.f32.mrf.mxu1 }
 0x409   : > { %v2597_v15 = vpop.f32.mrf.mxu0  ;;  %v2686_v16 = vpop.f32.mrf.mxu1 }
 0x40a   : > { %v2601_v20 = vadd.f32 %v2597_v15, %v2510_v19 }
 0x40b   : > { %v3374_v17 = vpop.f32.mrf.mxu0  ;;  %v3409_v18 = vpop.f32.mrf.mxu1 }
 0x40c   : > { %v2690_v21 = vadd.f32 %v2686_v16, %v2601_v20 }
 0x42a   : > { %v2775_v22 = vpop.f32.mrf.mxu0 }
 0x42b   : > { %v2779_v24 = vadd.f32 %v2775_v22, %v2690_v21 }
 0x42c   : > { %v3444_v25 = vpop.f32.mrf.mxu0 }
 0x42d   : > { %v2781_v26 = vadd.f32 %v2780_v23, %v2779_v24 }
 0x42f   : > { %v2782_v27 = vmax.f32 %v2781_v26, 0.0 }
 0x431   : > { %3478 = vmatmul.mubr.f32.vlgmr.msra.gmra.mxu1 %v2782_v27 }
 0x4f1   : > { %v2866_v32 = vpop.f32.mrf.mxu1 }
 0x4f2   : > { %v2867_v33 = vadd.f32 %v2866_v32, %v2799_v31 }
 0x4f3   : > { %v3479_v35 = vpop.f32.mrf.mxu1 }
 0x4f4   : > { %v2870_v36 = vmax.f32 %v2867_v33, 0.0 }
 0x4f6   : > { %3513 = vmatmul.mubr.f32.vlgmr.msra.gmra.mxu0 %v2870_v36 }
 0x5b6   : > { %v2954_v0 = vpop.f32.mrf.mxu0 }
 0x5b7   : > { %v2955_v38 = vadd.f32 %v2954_v0, %v2887_v37 }
 0x5b8   : > { %v3514_v39 = vpop.f32.mrf.mxu0 }
 0x5b9   : > { %2958 = vst [vmem:[%s422_s30] sm:$0x1] %v2955_v38 }
 0x5ba   : > { %3682 = shalt.err (!%p3679_p0)
}
 0x5bb   : > { %s3683_s22 = scalar_lea.hbm %s4433_s14, 16  ;;  %s3687_s30 = scalar_lea.hbm %s4479_s11, 32 }
 0x5bc   : > { %p3684_p6 = scmp.ne.s32.totalorder %s4433_s14, %s3683_s22  ;;  %p3688_p5 = scmp.lt.s32.totalorder %s4433_s14, %s4479_s11 }
 0x5bd   : > { %p3689_p1 = scmp.lt.s32.totalorder %s3687_s30, %s3683_s22 }
 0x5be   : > { %p3685_p9 = pnand %p3684_p6, %p4493_p3 }
 0x5bf   : > { %p3690_p10 = por %p3689_p1, %p3688_p5 }
 0x5c0   : > { %p3686_p13 = pneg %p3685_p9 }
 0x5c2   : > { %p3691_p12 = pnand %p3690_p10, %p3686_p13 }
 0x5c4   : > { %3694 = shalt.err (!%p3691_p12)
}
 0x5c5   : > { %3527 = dma.vmem_to_hbm [thread:$0]  (%p4493_p3), %s2973_s24, 16, %s4433_s14, %s2960_s16  }
 0x5c6 PF: > { %p3549_p2 = scmp.ge.s32.totalorder %s3737_s20, 2  ;;  %s2984_s19 = sand.u32 1, %s3725_s17  }
 0x5c7   : > { %p4494_p4 = scmp.ne.s32.totalorder %s4486_s28, 0  ;;  %s2985_s29 = scalar_lea.sflag [#allocation6], %s2984_s19 }
 0x5c9   : > { %p3540_p7 = pnand %p3549_p2, %p4494_p4 }
 0x5cb   : > { %p3541_p8 = pneg %p3540_p7 }
 0x5cd   : > { %3720 = dma.done.wait (%p3541_p8), %s2985_s29, 16  }
 0x5ce   : > { %3722 = vsyncadd (%p3541_p8), %s2985_s29, 4294967280  ;;  %s4495_s21 = sld [smem:[#allocation14_spill]]  ;;  %p23_p11 = scmp.ge.s32.totalorder %s3834_s23, 4  }
 0x5cf   : > { %s4496_s19 = sld [smem:[#allocation15_spill]]  ;;  %s4497_s17 = smov %s3729_s18 }
 0x5d0   : > { %s4499_s20 = smov %s3834_s23  ;;  %25 = sbr.rel (!%p23_p11) target bundleno = 5 (0x5), region = 140 }
 0x5d4   : > { %s4498_s18 = smov %s4495_s21 }
 0x5d5   :  { %2989 = vsyncpa [#allocation5], 1 }
 0x5d6   :  { %2991 = vsyncpa [#allocation5 + $0x1], 1 }
 0x5d7   :  { %2992 = vsyncpa [#allocation8], 1 }
 0x5d8   :  { %2993 = vsyncpa [#allocation6], 1 }
 0x5d9   :  { %2995 = vsyncpa [#allocation6 + $0x1], 1 }

</bundles_post_ra>
